<compile_context>
chip_gen: v7x
topology: tpu7x:2x2x1
jax: 0.10.0
libtpu: 0.0.40
codegen_flags: <defaults>
</compile_context>

<pallas_src>
import functools

import jax
import jax.numpy as jnp
from jax import lax
from jax.experimental import pallas as pl
from jax.experimental.pallas import tpu as pltpu


def _llama_mlp_kernel(x_ref, wgu_ref, bgu_ref, wd_ref, bd_ref, o_ref, acc_ref):
    # x_ref:   (tm, H)         current token tile
    # wgu_ref: (1, H, 2*tI)    fused [gate | up] weight slab for this I tile
    # bgu_ref: (1, 1, 2*tI)    fused [gate | up] bias slice
    # wd_ref:  (tI, H)         down-proj weight slice
    # bd_ref:  (1, H)          down-proj bias
    # o_ref:   (tm, H)         output tile (written only on the last I step)
    # acc_ref: (tm, H) f32     down-proj accumulator (VMEM scratch)
    j = pl.program_id(1)

    @pl.when(j == 0)
    def _init():
        acc_ref[...] = jnp.zeros_like(acc_ref)

    x = x_ref[...]
    # Single fused matmul for gate+up: (tm, H) @ (H, 2*tI) -> (tm, 2*tI)
    gu = jnp.dot(x, wgu_ref[0], preferred_element_type=jnp.float32) + bgu_ref[0]
    half = gu.shape[-1] // 2
    gate = gu[:, :half]
    up = gu[:, half:]
    # SiLU(gate) * up  (sigmoid goes to the EUP slot, hidden under the matmuls)
    h = (gate * jax.nn.sigmoid(gate)) * up

    # Partial down projection for this I slice, accumulated in f32.
    acc_ref[...] += jnp.dot(h.astype(wd_ref.dtype), wd_ref[...],
                            preferred_element_type=jnp.float32)

    @pl.when(j == pl.num_programs(1) - 1)
    def _finalize():
        o_ref[...] = (acc_ref[...] + bd_ref[...]).astype(o_ref.dtype)


def _pick_tile(dim, desired, align):
    """Largest tile <= desired that is a multiple of `align` and divides `dim`
    (falls back to the full dim for small / awkward sizes)."""
    if dim <= desired:
        return dim
    t = (desired // align) * align
    while t > align and dim % t != 0:
        t -= align
    return t if (t > 0 and dim % t == 0) else dim


def prepare_llama_mlp_params(wg, bg, wu, bu, wd, bd, *, tile_i=None):
    """One-time parameter re-layout (do this at init, NOT per forward call).

    PyTorch layouts in:  wg/wu (I, H), wd (H, I), biases (I,)/(H,).
    Returns: wgu (nI, H, 2*tI), bgu (nI, 1, 2*tI), wd_t (I, H), bd2 (1, H), tile_i.
    """
    I, H = wg.shape
    if tile_i is None:
        # tune per generation: ~512-1024 (v6e/v7x bf16), <=1024 / 128-aligned on v5e
        tile_i = _pick_tile(I, 512, 128)
    assert I % tile_i == 0, "tile_i must divide intermediate_size"
    n_i = I // tile_i

    wg_t = wg.T.reshape(H, n_i, tile_i).transpose(1, 0, 2)   # (nI, H, tI)
    wu_t = wu.T.reshape(H, n_i, tile_i).transpose(1, 0, 2)   # (nI, H, tI)
    wgu = jnp.concatenate([wg_t, wu_t], axis=-1)             # (nI, H, 2*tI)
    bgu = jnp.concatenate([bg.reshape(n_i, 1, tile_i),
                           bu.reshape(n_i, 1, tile_i)], axis=-1)  # (nI, 1, 2*tI)
    wd_t = wd.T                                              # (I, H)
    bd2 = bd.reshape(1, H)                                   # (1, H)
    return wgu, bgu, wd_t, bd2, tile_i


def llama_mlp(x, wgu, bgu, wd_t, bd2, tile_i, *, tile_m=256):
    """x: (B, S, H); params as produced by prepare_llama_mlp_params."""
    B, S, H = x.shape
    n_i = wgu.shape[0]
    gu_width = wgu.shape[-1]          # 2 * tile_i
    M = B * S
    tm = _pick_tile(M, tile_m, 8)
    x2 = x.reshape(M, H)

    grid = (M // tm, n_i)             # reduction axis (I tiles) last

    # TODO(synk): for very large H / tile_i also set vmem_limit_bytes with headroom
    # (re-derive the (tm, tile_i) budget per chip: 64 MiB VMEM on v7x vs 128 MiB).
    out2 = pl.pallas_call(
        _llama_mlp_kernel,
        out_shape=jax.ShapeDtypeStruct((M, H), x.dtype),
        grid_spec=pltpu.PrefetchScalarGridSpec(
            num_scalar_prefetch=0,
            grid=grid,
            in_specs=[
                pl.BlockSpec((tm, H), lambda i, j: (i, 0)),           # x tile (re-used across j)
                pl.BlockSpec((1, H, gu_width), lambda i, j: (j, 0, 0)),  # fused gate|up weights
                pl.BlockSpec((1, 1, gu_width), lambda i, j: (j, 0, 0)),  # fused gate|up biases
                pl.BlockSpec((tile_i, H), lambda i, j: (j, 0)),       # down-proj weight slice
                pl.BlockSpec((1, H), lambda i, j: (0, 0)),            # down-proj bias
            ],
            out_specs=pl.BlockSpec((tm, H), lambda i, j: (i, 0)),
            scratch_shapes=[pltpu.VMEM((tm, H), jnp.float32)],
        ),
        compiler_params=pltpu.CompilerParams(
            dimension_semantics=("parallel", "arbitrary")),
    )(x2, wgu, bgu, wd_t, bd2)

    return out2.reshape(B, S, H)


def _ref(x, wg, bg, wu, bu, wd, bd):
    hi = lax.Precision.HIGHEST
    gate = jnp.einsum("bsh,ih->bsi", x, wg, precision=hi) + bg
    up = jnp.einsum("bsh,ih->bsi", x, wu, precision=hi) + bu
    h = jax.nn.silu(gate) * up
    return jnp.einsum("bsi,hi->bsh", h, wd, precision=hi) + bd


if __name__ == "__main__":
    # Small but hardware-aligned shapes (multiples of 128) so the tiling over
    # both the M axis and the I reduction axis is actually exercised.
    B, S, H, I = 2, 256, 256, 512   # M = 512 -> 2 M-tiles; tile_i=256 -> 2 I-tiles

    key = jax.random.PRNGKey(0)
    kx, kg, kbg, ku, kbu, kd, kbd = jax.random.split(key, 7)

    x = jax.random.normal(kx, (B, S, H), dtype=jnp.float32)
    # PyTorch nn.Linear layouts: weight (out, in), bias (out,)
    wg = jax.random.normal(kg, (I, H), dtype=jnp.float32) * 0.05
    bg = jax.random.normal(kbg, (I,), dtype=jnp.float32) * 0.05
    wu = jax.random.normal(ku, (I, H), dtype=jnp.float32) * 0.05
    bu = jax.random.normal(kbu, (I,), dtype=jnp.float32) * 0.05
    wd = jax.random.normal(kd, (H, I), dtype=jnp.float32) * 0.05
    bd = jax.random.normal(kbd, (H,), dtype=jnp.float32) * 0.05

    # One-time parameter re-layout (outside the hot path).
    wgu, bgu, wd_t, bd2, tile_i = prepare_llama_mlp_params(
        wg, bg, wu, bu, wd, bd, tile_i=256)

    out = llama_mlp(x, wgu, bgu, wd_t, bd2, tile_i, tile_m=256)
    out = jax.block_until_ready(out)

    ref = _ref(x, wg, bg, wu, bu, wd, bd)
    assert out.shape == (B, S, H)
    assert jnp.allclose(out, ref, atol=1e-3, rtol=1e-3), "mismatch vs reference"

    print("KERNEL_OK")
</pallas_src>

<mosaic_0001>
module attributes {stable_mosaic.version = 11 : i64} {
  func.func @_llama_mlp_kernel(%arg0: i32, %arg1: i32, %arg2: memref<256x256xf32, #tpu.memory_space<vmem>>, %arg3: memref<1x256x512xf32, #tpu.memory_space<vmem>>, %arg4: memref<1x1x512xf32, #tpu.memory_space<vmem>>, %arg5: memref<256x256xf32, #tpu.memory_space<vmem>>, %arg6: memref<1x256xf32, #tpu.memory_space<vmem>>, %arg7: memref<256x256xf32, #tpu.memory_space<vmem>>, %arg8: memref<256x256xf32, #tpu.memory_space<vmem>>) attributes {dimension_semantics = [#tpu.dimension_semantics<parallel>, #tpu.dimension_semantics<arbitrary>], iteration_bounds = array<i64: 2, 2>, scalar_prefetch = 0 : i64, scratch_operands = 1 : i64, tpu.core_type = #tpu.core_type<tc>, window_params = [{transform_indices = @transform_0, window_bounds = array<i64: 256, 256>}, {transform_indices = @transform_1, window_bounds = array<i64: 1, 256, 512>}, {transform_indices = @transform_2, window_bounds = array<i64: 1, 1, 512>}, {transform_indices = @transform_3, window_bounds = array<i64: 256, 256>}, {pipeline_mode = #tpu.pipeline_mode<synchronous>, transform_indices = @transform_4, window_bounds = array<i64: 1, 256>}, {transform_indices = @transform_5, window_bounds = array<i64: 256, 256>}]} {
    %c0_i32 = arith.constant 0 : i32
    %0 = arith.cmpi eq, %arg1, %c0_i32 : i32
    %1 = arith.extui %0 : i1 to i32
    %c0_i32_0 = arith.constant 0 : i32
    %2 = arith.cmpi ne, %1, %c0_i32_0 : i32
    scf.if %2 {
      %cst_17 = arith.constant 0.000000e+00 : f32
      %28 = vector.broadcast %cst_17 : f32 to vector<256x256xf32>
      %c0_18 = arith.constant 0 : index
      %c0_19 = arith.constant 0 : index
      %29 = vector.load %arg8[%c0_18, %c0_19] : memref<256x256xf32, #tpu.memory_space<vmem>>, vector<256x256xf32>
      tpu.vector_store %arg8[%c0_18, %c0_19], %28 {strides = array<i32>} : memref<256x256xf32, #tpu.memory_space<vmem>>, vector<256x256xf32>,
    } else {
    }
    %c0 = arith.constant 0 : index
    %c0_1 = arith.constant 0 : index
    %3 = vector.load %arg2[%c0, %c0_1] : memref<256x256xf32, #tpu.memory_space<vmem>>, vector<256x256xf32>
    %c0_2 = arith.constant 0 : index
    %c0_3 = arith.constant 0 : index
    %c0_4 = arith.constant 0 : index
    %4 = vector.load %arg3[%c0_2, %c0_3, %c0_4] : memref<1x256x512xf32, #tpu.memory_space<vmem>>, vector<1x256x512xf32>
    %5 = vector.shape_cast %4 : vector<1x256x512xf32> to vector<256x512xf32>
    %cst = arith.constant dense<0.000000e+00> : vector<256x512xf32>
    %6 = tpu.matmul %3, %5, %cst {dimension_numbers = #tpu.dot_dimension_numbers<[1], [0], [0], [1], [0, 0, 1, 1], [], []>} : vector<256x256xf32>, vector<256x512xf32>, vector<256x512xf32> -> vector<256x512xf32>
    %c0_5 = arith.constant 0 : index
    %c0_6 = arith.constant 0 : index
    %c0_7 = arith.constant 0 : index
    %7 = vector.load %arg4[%c0_5, %c0_6, %c0_7] : memref<1x1x512xf32, #tpu.memory_space<vmem>>, vector<1x1x512xf32>
    %8 = vector.shape_cast %7 : vector<1x1x512xf32> to vector<1x512xf32>
    %9 = vector.broadcast %8 : vector<1x512xf32> to vector<256x512xf32>
    %10 = arith.addf %6, %9 : vector<256x512xf32>
    %11 = vector.extract_strided_slice %10 {offsets = [0, 0], sizes = [256, 256], strides = [1, 1]} : vector<256x512xf32> to vector<256x256xf32>
    %12 = vector.extract_strided_slice %10 {offsets = [0, 256], sizes = [256, 256], strides = [1, 1]} : vector<256x512xf32> to vector<256x256xf32>
    %13 = arith.negf %11 : vector<256x256xf32>
    %14 = math.exp %13 : vector<256x256xf32>
    %cst_8 = arith.constant 1.000000e+00 : f32
    %15 = vector.broadcast %cst_8 : f32 to vector<256x256xf32>
    %16 = arith.addf %15, %14 : vector<256x256xf32>
    %17 = arith.divf %15, %16 : vector<256x256xf32>
    %18 = arith.mulf %11, %17 : vector<256x256xf32>
    %19 = arith.mulf %18, %12 : vector<256x256xf32>
    %c0_9 = arith.constant 0 : index
    %c0_10 = arith.constant 0 : index
    %20 = vector.load %arg8[%c0_9, %c0_10] : memref<256x256xf32, #tpu.memory_space<vmem>>, vector<256x256xf32>
    %c0_11 = arith.constant 0 : index
    %c0_12 = arith.constant 0 : index
    %21 = vector.load %arg5[%c0_11, %c0_12] : memref<256x256xf32, #tpu.memory_space<vmem>>, vector<256x256xf32>
    %cst_13 = arith.constant dense<0.000000e+00> : vector<256x256xf32>
    %22 = tpu.matmul %19, %21, %cst_13 {dimension_numbers = #tpu.dot_dimension_numbers<[1], [0], [0], [1], [0, 0, 1, 1], [], []>} : vector<256x256xf32>, vector<256x256xf32>, vector<256x256xf32> -> vector<256x256xf32>
    %23 = arith.addf %20, %22 : vector<256x256xf32>
    %c0_14 = arith.constant 0 : index
    %c0_15 = arith.constant 0 : index
    %24 = vector.load %arg8[%c0_14, %c0_15] : memref<256x256xf32, #tpu.memory_space<vmem>>, vector<256x256xf32>
    tpu.vector_store %arg8[%c0_14, %c0_15], %23 {strides = array<i32>} : memref<256x256xf32, #tpu.memory_space<vmem>>, vector<256x256xf32>,
    %c1_i32 = arith.constant 1 : i32
    %25 = arith.cmpi eq, %arg1, %c1_i32 : i32
    %26 = arith.extui %25 : i1 to i32
    %c0_i32_16 = arith.constant 0 : i32
    %27 = arith.cmpi ne, %26, %c0_i32_16 : i32
    scf.if %27 {
      %c0_17 = arith.constant 0 : index
      %c0_18 = arith.constant 0 : index
      %28 = vector.load %arg8[%c0_17, %c0_18] : memref<256x256xf32, #tpu.memory_space<vmem>>, vector<256x256xf32>
      %c0_19 = arith.constant 0 : index
      %c0_20 = arith.constant 0 : index
      %29 = vector.load %arg6[%c0_19, %c0_20] : memref<1x256xf32, #tpu.memory_space<vmem>>, vector<1x256xf32>
      %30 = vector.broadcast %29 : vector<1x256xf32> to vector<256x256xf32>
      %31 = arith.addf %28, %30 : vector<256x256xf32>
      %c0_21 = arith.constant 0 : index
      %c0_22 = arith.constant 0 : index
      %32 = vector.load %arg7[%c0_21, %c0_22] : memref<256x256xf32, #tpu.memory_space<vmem>>, vector<256x256xf32>
      tpu.vector_store %arg7[%c0_21, %c0_22], %31 {strides = array<i32>} : memref<256x256xf32, #tpu.memory_space<vmem>>, vector<256x256xf32>,
    } else {
    }
    return
  }
  func.func @transform_0(%arg0: i32, %arg1: i32) -> (i32, i32) {
    %c0_i32 = arith.constant 0 : i32
    %c0_i32_0 = arith.constant 0 : i32
    return %arg0, %c0_i32 : i32, i32
  }
  func.func @transform_1(%arg0: i32, %arg1: i32) -> (i32, i32, i32) {
    %c0_i32 = arith.constant 0 : i32
    %c0_i32_0 = arith.constant 0 : i32
    %c0_i32_1 = arith.constant 0 : i32
    return %arg1, %c0_i32, %c0_i32_0 : i32, i32, i32
  }
  func.func @transform_2(%arg0: i32, %arg1: i32) -> (i32, i32, i32) {
    %c0_i32 = arith.constant 0 : i32
    %c0_i32_0 = arith.constant 0 : i32
    %c0_i32_1 = arith.constant 0 : i32
    return %arg1, %c0_i32, %c0_i32_0 : i32, i32, i32
  }
  func.func @transform_3(%arg0: i32, %arg1: i32) -> (i32, i32) {
    %c0_i32 = arith.constant 0 : i32
    %c0_i32_0 = arith.constant 0 : i32
    return %arg1, %c0_i32 : i32, i32
  }
  func.func @transform_4(%arg0: i32, %arg1: i32) -> (i32, i32) {
    %c0_i32 = arith.constant 0 : i32
    %c0_i32_0 = arith.constant 0 : i32
    %c0_i32_1 = arith.constant 0 : i32
    return %c0_i32, %c0_i32_0 : i32, i32
  }
  func.func @transform_5(%arg0: i32, %arg1: i32) -> (i32, i32) {
    %c0_i32 = arith.constant 0 : i32
    %c0_i32_0 = arith.constant 0 : i32
    return %arg0, %c0_i32 : i32, i32
  }
}

</mosaic_0001>

<bundles_post_ra>
// kernel: tpu_custom_call.1
= control target key start
LH: loop header
LB: loop body
LE: loop exit
PB: predicated region body
PF: predicated region fallthrough
CT: control target
= control target key end

     0   :  { %s5320_s0 = inlined_call_operand.hbm [shape: f32[512,256], index: 0, kind: input, shape index: {}]   ;;  %s5321_s1 = inlined_call_operand.hbm [shape: f32[2,256,512], index: 1, kind: input, shape index: {}]   ;;  %s5322_s2 = inlined_call_operand.hbm [shape: f32[2,1,512], index: 2, kind: input, shape index: {}]   ;;  %s5323_s3 = inlined_call_operand.hbm [shape: f32[512,256], index: 3, kind: input, shape index: {}]   ;;  %s5324_s4 = inlined_call_operand.vmem [shape: f32[1,256], index: 4, kind: input, shape index: {}]   ;;  %s5325_s5 = inlined_call_operand.hbm [shape: f32[512,256], index: 5, kind: output, shape index: {}]  }
   0x1   :  { %5383 = sst [smem:[#allocation57_spill]] %s5320_s0 }
   0x2   :  { %5384 = sst [smem:[#allocation58_spill]] %s5321_s1 }
   0x3   :  { %5385 = sst [smem:[#allocation59_spill]] %s5324_s4 }
   0x4   :  { %5386 = sst [smem:[#allocation60_spill]] %s5325_s5 }
   0x5   :  { %10 = vsyncpa [#allocation4], 0 }
   0x6   :  { %12 = vsyncpa [#allocation4 + $0x1], 0 }
   0x7   :  { %13 = vsyncpa [#allocation7], 0 }
   0x8   :  { %15 = vsyncpa [#allocation7 + $0x1], 0 }
   0x9   :  { %16 = vsyncpa [#allocation10], 0 }
   0xa   :  { %18 = vsyncpa [#allocation10 + $0x1], 0 }
   0xb   :  { %19 = vsyncpa [#allocation5], 0 }
   0xc   :  { %21 = vsyncpa [#allocation5 + $0x1], 0  ;;  %s3571_s18 = smov 0   ;;  %s3573_s19 = smov 0  }
   0xd   :  { %s3575_s20 = smov 0   ;;  %s3577_s21 = smov 0  }
   0xe   :  { %s3579_s22 = smov 0   ;;  %s3581_s23 = smov 0  }
   0xf   :  { %s3583_s24 = smov 0   ;;  %s3585_s25 = smov 0  }
  0x10   :  { %s3587_s26 = smov 0   ;;  %s3589_s27 = smov 0  }
  0x11   :  { %s3591_s28 = smov 0  }
  0x12 LB: > { %5387 = sst [smem:[#allocation16_spill]] %s3495_s20  ;;  %s36_s29 = sadd.s32 1, %s3519_s26  ;;  %s3527_s28 = sphi %s3591_s28, %s27_s28   ;;  %s3523_s27 = sphi %s3589_s27, %s5516_s27   ;;  %s3519_s26 = sphi %s3587_s26, %s5522_s26   ;;  %s3515_s25 = sphi %s3585_s25, %s5514_s25   ;;  %s3511_s24 = sphi %s3583_s24, %s5521_s24   ;;  %s3507_s23 = sphi %s3581_s23, %s5513_s23   ;;  %s3503_s22 = sphi %s3579_s22, %s5520_s22   ;;  %s3499_s21 = sphi %s3577_s21, %s5519_s21   ;;  %s3495_s20 = sphi %s3575_s20, %s5511_s20   ;;  %s3491_s19 = sphi %s3573_s19, %s5518_s19   ;;  %s3487_s18 = sphi %s3571_s18, %s5517_s18  }
  0x13   : > { %5388 = sst [smem:[#allocation17_spill]] %s3507_s23  ;;  %p5328_p0 = scmp.eq.s32.totalorder %s3527_s28, 0 }
  0x14   : > { %5389 = sst [smem:[#allocation18_spill]] %s3511_s24  ;;  %p3628_p1 = scmp.ge.s32.totalorder %s36_s29, 2 }
  0x15   : > { %5390 = sst [smem:[#allocation19_spill]] %s3515_s25  ;;  %s72_s6 = sadd.s32 1, %s3495_s20 }
  0x16   : > { %5391 = sst [smem:[#allocation20_spill]] %s3523_s27  ;;  %p79_p2 = scmp.ne.s32.totalorder %s3495_s20, %s3491_s19 }
  0x17   : > { %s5392_s30 = scalar_select %p3628_p1, 1, 0 }
  0x18   : > { %s5524_s29 = smov (%p3628_p1, %s36_s29), 0  ;;  %p81_p4 = por %p79_p2, %p5328_p0 }
  0x19   : > { %5393 = sst [smem:[#allocation21_spill]] %s5524_s29  ;;  %s69_s7 = ssub.s32 %s3519_s26, %s5524_s29 }
  0x1a   : > { %p5327_p5 = scmp.lt.s32.totalorder %s3527_s28, 4  ;;  %p70_p6 = scmp.eq.s32.totalorder %s69_s7, 0 }
  0x1b   : > { %s233_s8 = sand.u32 1, %s3527_s28   ;;  %s3648_s9 = sand.u32 1, %s3495_s20  }
  0x1c   : > { %s3651_s10 = scalar_select %p70_p6, %s3495_s20, %s72_s6  }
  0x1d   : > { %s2577_s11 = sshll.u32 %s3648_s9, 10  ;;  %s2667_s12 = sshll.u32 %s3519_s26, 14 }
  0x1e   : > { %5394 = sst [smem:[#allocation22_spill]] %s3651_s10  ;;  %s5395_s1 = sld [smem:[#allocation58_spill]] }
  0x1f   : > { %s237_s16 = scalar_lea.vmem [#allocation6], %s2577_s11  ;;  %p3662_p7 = pnand %p5327_p5, %p81_p4 }
  0x20   : > { %s244_s17 = sshll.u32 %s237_s16, 4  ;;  %s3668_s6 = scalar_lea.sflag [#allocation7], %s233_s8  ;;  %s3666_s17 = int_to_ptr.vmem [resolvable:$true] %s244_s17 }
  0x21   : > { %s5396_s7 = scalar_select %p3662_p7, 1, 0 }
  0x22   : > { %p3674_p9 = pneg %p3662_p7 }
  0x24   : > { %s3658_s15 = scalar_lea.hbm %s5395_s1, %s2667_s12  ;;  %s3282_s14 = scalar_lea.hbm %s5395_s1, 32768 }
  0x25   : > { %s3277_s29 = scalar_lea.hbm %s3658_s15, 16384  ;;  %p3283_p12 = scmp.lt.u32.totalorder %s3658_s15, %s5395_s1 }
  0x26   : > { %p3278_p8 = scmp.ne.s32.totalorder %s3658_s15, %s3277_s29  ;;  %p3284_p13 = scmp.lt.u32.totalorder %s3282_s14, %s3277_s29 }
  0x27   : > { %p3286_p4 = scmp.lt.u32.totalorder %s3277_s29, %s3658_s15 }
  0x28   : > { %p3280_p10 = pnand %p3674_p9, %p3278_p8  ;;  %p3285_p2 = por %p3284_p13, %p3283_p12 }
  0x2a   : > { %p3281_p11 = pneg %p3280_p10  ;;  %p3287_p6 = por %p3286_p4, %p3285_p2 }
  0x2c   : > { %p3288_p5 = pnand %p3287_p6, %p3281_p11 }
  0x2e   : > { %3291 = shalt.err (!%p3288_p5)
}
  0x2f   : > { %s3292_s8 = scalar_lea.vmem %s3666_s17, 16384  ;;  %s3529_s11 = smov [#allocation6]  }
  0x30   : > { %p3293_p8 = scmp.ne.s32.totalorder %s3666_s17, %s3292_s8  ;;  %s3297_s13 = sshll.u32 %s3529_s11, 4  ;;  %s3298_s13 = int_to_ptr.vmem [resolvable:$false] %s3297_s13 }
  0x31   : > { %s3299_s10 = scalar_lea.vmem %s3298_s13, 32768  ;;  %p3300_p0 = scmp.lt.s32.totalorder %s3666_s17, %s3298_s13 }
  0x32   : > { %p3295_p10 = pnand %p3293_p8, %p3674_p9  ;;  %p3301_p1 = scmp.lt.s32.totalorder %s3299_s10, %s3292_s8 }
  0x34   : > { %p3296_p3 = pneg %p3295_p10  ;;  %p3302_p12 = por %p3301_p1, %p3300_p0 }
  0x36   : > { %p3303_p13 = pnand %p3302_p12, %p3296_p3 }
  0x38   : > { %3306 = shalt.err (!%p3303_p13)
}
  0x39   : > { %s3530_s29 = smov 512   ;;  %s3531_s14 = smov 32  }
  0x3a   : > { %2913 = dma.hbm_to_vmem [thread:$0]  (!%p3662_p7), %s3658_s15, 16384, %s3666_s17, %s3668_s6, %s3530_s29, %s3530_s29, %s3531_s14  }
  0x3b   : > { %p2587_p0 = scmp.ge.s32.totalorder %s3527_s28, 1  ;;  %p293_p1 = scmp.lt.s32.totalorder %s3527_s28, 5 }
  0x3c   : > { %s3705_s8 = sadd.s32 4294967295, %s3527_s28   ;;  %s2570_s11 = sadd.s32 4294967294, %s3527_s28  }
  0x3d   : > { %p3700_p3 = pnand %p2587_p0, %p293_p1  ;;  %s39_s13 = sadd.s32 1, %s3523_s27 }
  0x3e   : > { %p5399_p5 = scmp.ne.s32.totalorder %s5392_s30, 0  ;;  %s46_s15 = sadd.s32 1, %s3507_s23 }
  0x3f   : > { %s5398_s16 = scalar_select %p3700_p3, 1, 0 }
  0x40   : > { %s5526_s13 = smov (!%p5399_p5, %s39_s13), %s3523_s27  ;;  %p53_p11 = scmp.ne.s32.totalorder %s3507_s23, %s3503_s22 }
  0x41   : > { %p41_p2 = scmp.ge.s32.totalorder %s5526_s13, 2  ;;  %p59_p4 = scmp.ne.s32.totalorder %s3503_s22, %s3499_s21 }
  0x42   : > { %p5400_p6 = scmp.eq.s32.totalorder %s3527_s28, 0  ;;  %p60_p10 = scmp.eq.s32.totalorder %s3705_s8, 0 }
  0x43   : > { %s5528_s13 = smov (%p41_p2, %s5526_s13), 0  ;;  %p5404_p13 = scmp.ne.s32.totalorder %s3491_s19, %s3487_s18 }
  0x44   : > { %p3719_p8 = por %p5400_p6, %p53_p11  ;;  %5402 = sst [smem:[#allocation23_spill]] %s5528_s13 }
  0x45   : > { %p3729_p12 = por %p60_p10, %p59_p4  ;;  %p3736_p0 = por %p5404_p13, %p60_p10 }
  0x46   : > { %s43_s29 = ssub.s32 %s3523_s27, %s5528_s13  ;;  %p182_p1 = scmp.eq.s32.totalorder %s3705_s8, 3 }
  0x47   : > { %s5403_s30 = scalar_select %p3729_p12, 1, 0 }
  0x48   : > { %s5405_s10 = scalar_select %p3736_p0, 1, 0 }
  0x49   : > { %p44_p5 = scmp.eq.s32.totalorder %s43_s29, 0  ;;  %p188_p6 = scmp.eq.s32.totalorder %s2570_s11, 3 }
  0x4a   : > { %p3743_p3 = por %p182_p1, %p53_p11  ;;  %s211_s1 = sand.u32 1, %s3507_s23  }
  0x4b   : > { %s3749_s20 = scalar_select %p44_p5, %s3507_s23, %s46_s15  }
  0x4c   : > { %s5406_s14 = scalar_select %p3743_p3, 1, 0 }
  0x4d   : > { %5407 = sst [smem:[#allocation24_spill]] %s3749_s20  ;;  %p3754_p2 = por %p188_p6, %p59_p4 }
  0x4e   : > { %s2573_s18 = sshll.u32 %s211_s1, 9  ;;  %s2666_s25 = sshll.u32 %s3523_s27, 13 }
  0x4f   : > { %s5408_s5 = scalar_select %p3754_p2, 1, 0 }
  0x50   : > { %s5409_s0 = sld [smem:[#allocation57_spill]]  ;;  %s215_s11 = scalar_lea.vmem [#allocation3], %s2573_s18 }
  0x51   : > { %s223_s29 = sshll.u32 %s215_s11, 4  ;;  %p5410_p11 = scmp.lt.s32.totalorder %s3527_s28, 4  ;;  %s3772_s29 = int_to_ptr.vmem [resolvable:$true] %s223_s29 }
  0x52   : > { %s3774_s27 = scalar_lea.sflag [#allocation4], %s211_s1 }
  0x53   : > { %p3768_p10 = pnand %p5410_p11, %p3719_p8 }
  0x55   : > { %p3309_p13 = pneg %p3768_p10 }
  0x56   : > { %s3762_s13 = scalar_lea.hbm %s5409_s0, %s2666_s25  ;;  %s3312_s17 = scalar_lea.hbm %s5409_s0, 16384 }
  0x57   : > { %s3307_s4 = scalar_lea.hbm %s3762_s13, 8192  ;;  %p3313_p8 = scmp.lt.u32.totalorder %s3762_s13, %s5409_s0 }
  0x58   : > { %p3308_p4 = scmp.ne.s32.totalorder %s3762_s13, %s3307_s4  ;;  %p3314_p6 = scmp.lt.u32.totalorder %s3312_s17, %s3307_s4 }
  0x59   : > { %p3316_p2 = scmp.lt.u32.totalorder %s3307_s4, %s3762_s13 }
  0x5a   : > { %p3310_p1 = pnand %p3309_p13, %p3308_p4  ;;  %p3315_p11 = por %p3314_p6, %p3313_p8 }
  0x5c   : > { %p3311_p5 = pneg %p3310_p1  ;;  %p3317_p3 = por %p3316_p2, %p3315_p11 }
  0x5e   : > { %p3318_p0 = pnand %p3317_p3, %p3311_p5 }
  0x60   : > { %3321 = shalt.err (!%p3318_p0)
}
  0x61   : > { %s3322_s1 = scalar_lea.vmem %s3772_s29, 8192  ;;  %s3532_s24 = smov [#allocation3]  }
  0x62   : > { %p3323_p4 = scmp.ne.s32.totalorder %s3772_s29, %s3322_s1  ;;  %s3327_s25 = sshll.u32 %s3532_s24, 4  ;;  %s3328_s25 = int_to_ptr.vmem [resolvable:$false] %s3327_s25 }
  0x63   : > { %s3329_s18 = scalar_lea.vmem %s3328_s25, 16384  ;;  %p3330_p7 = scmp.lt.s32.totalorder %s3772_s29, %s3328_s25 }
  0x64   : > { %p3325_p1 = pnand %p3323_p4, %p3309_p13  ;;  %p3331_p8 = scmp.lt.s32.totalorder %s3329_s18, %s3322_s1 }
  0x66   : > { %p3326_p12 = pneg %p3325_p1  ;;  %p3332_p6 = por %p3331_p8, %p3330_p7 }
  0x68   : > { %p3333_p2 = pnand %p3332_p6, %p3326_p12 }
  0x6a   : > { %3336 = shalt.err (!%p3333_p2)
}
  0x6b   : > { %s3533_s4 = smov 256   ;;  %s3534_s17 = smov 16  }
  0x6c   : > { %2910 = dma.hbm_to_vmem [thread:$0]  (!%p3768_p10), %s3762_s13, 8192, %s3772_s29, %s3774_s27, %s3533_s4, %s3533_s4, %s3534_s17  }
  0x6d   : > { %s2580_s11 = sshll.u32 %s3648_s9, 2  ;;  %s2668_s1 = sshll.u32 %s3519_s26, 6 }
  0x6e   : > { %s3810_s18 = scalar_lea.hbm %s5322_s2, %s2668_s1  ;;  %s258_s0 = scalar_lea.vmem [#allocation8], %s2580_s11 }
  0x6f   : > { %s266_s20 = sshll.u32 %s258_s0, 4  ;;  %s2583_s23 = sshll.u32 %s3648_s9, 9  ;;  %s267_s20 = int_to_ptr.vmem [resolvable:$true] %s266_s20 }
  0x70   : > { %s3337_s15 = scalar_lea.hbm %s3810_s18, 64  ;;  %s3342_s29 = scalar_lea.hbm %s5322_s2, 128 }
  0x71   : > { %p3338_p7 = scmp.ne.s32.totalorder %s3810_s18, %s3337_s15  ;;  %p3343_p0 = scmp.lt.u32.totalorder %s3810_s18, %s5322_s2 }
  0x72   : > { %p3344_p10 = scmp.lt.u32.totalorder %s3342_s29, %s3337_s15  ;;  %p3346_p5 = scmp.lt.u32.totalorder %s3337_s15, %s3810_s18 }
  0x73   : > { %p3340_p3 = pnand %p3338_p7, %p3674_p9 }
  0x74   : > { %p3345_p13 = por %p3344_p10, %p3343_p0 }
  0x75   : > { %p3341_p12 = pneg %p3340_p3 }
  0x76   : > { %p3347_p11 = por %p3346_p5, %p3345_p13 }
  0x78   : > { %p3348_p4 = pnand %p3347_p11, %p3341_p12 }
  0x7a   : > { %3351 = shalt.err (!%p3348_p4)
}
  0x7b   : > { %s3352_s0 = scalar_lea.vmem %s267_s20, 64  ;;  %s3535_s11 = smov [#allocation8]  }
  0x7c   : > { %p3353_p1 = scmp.ne.s32.totalorder %s267_s20, %s3352_s0  ;;  %s3357_s25 = sshll.u32 %s3535_s11, 4  ;;  %s3358_s25 = int_to_ptr.vmem [resolvable:$false] %s3357_s25 }
  0x7d   : > { %s3359_s27 = scalar_lea.vmem %s3358_s25, 128  ;;  %p3360_p2 = scmp.lt.s32.totalorder %s267_s20, %s3358_s25 }
  0x7e   : > { %p3355_p8 = pnand %p3353_p1, %p3674_p9  ;;  %p3361_p7 = scmp.lt.s32.totalorder %s3359_s27, %s3352_s0 }
  0x80   : > { %p3356_p6 = pneg %p3355_p8  ;;  %p3362_p3 = por %p3361_p7, %p3360_p2 }
  0x82   : > { %p3363_p0 = pnand %p3362_p3, %p3356_p6 }
  0x84   : > { %3366 = shalt.err (!%p3363_p0)
}
  0x85   : > { %p5412_p10 = scmp.ne.s32.totalorder %s5396_s7, 0  ;;  %s2670_s15 = sshll.u32 %s3519_s26, 13 }
  0x86   : > { %s3835_s24 = scalar_lea.hbm %s5323_s3, %s2670_s15  ;;  %s277_s1 = scalar_lea.vmem [#allocation9], %s2583_s23 }
  0x87   : > { %2916 = dma.hbm_to_vmem [thread:$0]  (!%p5412_p10), %s3810_s18, 64, %s267_s20, %s3668_s6  }
  0x88   : > { %s285_s0 = sshll.u32 %s277_s1, 4  ;;  %s274_s11 = scalar_lea.sflag [#allocation10], %s3648_s9  ;;  %s3839_s0 = int_to_ptr.vmem [resolvable:$true] %s285_s0 }
  0x89   : > { %s3367_s25 = scalar_lea.hbm %s3835_s24, 8192  ;;  %s3372_s18 = scalar_lea.hbm %s5323_s3, 16384 }
  0x8a   : > { %p3368_p12 = scmp.ne.s32.totalorder %s3835_s24, %s3367_s25  ;;  %p3373_p11 = scmp.lt.u32.totalorder %s3835_s24, %s5323_s3 }
  0x8b   : > { %p3374_p4 = scmp.lt.u32.totalorder %s3372_s18, %s3367_s25  ;;  %p3376_p8 = scmp.lt.u32.totalorder %s3367_s25, %s3835_s24 }
  0x8c   : > { %p3370_p13 = pnand %p3368_p12, %p3674_p9 }
  0x8d   : > { %p3375_p1 = por %p3374_p4, %p3373_p11 }
  0x8e   : > { %p3371_p5 = pneg %p3370_p13 }
  0x8f   : > { %p3377_p6 = por %p3376_p8, %p3375_p1 }
  0x91   : > { %p3378_p2 = pnand %p3377_p6, %p3371_p5 }
  0x93   : > { %3381 = shalt.err (!%p3378_p2)
}
  0x94   : > { %s3382_s23 = scalar_lea.vmem %s3839_s0, 8192  ;;  %s3536_s13 = smov [#allocation9]  }
  0x95   : > { %p3383_p7 = scmp.ne.s32.totalorder %s3839_s0, %s3382_s23  ;;  %s3387_s29 = sshll.u32 %s3536_s13, 4  ;;  %s3388_s29 = int_to_ptr.vmem [resolvable:$false] %s3387_s29 }
  0x96   : > { %s3389_s1 = scalar_lea.vmem %s3388_s29, 16384  ;;  %p3390_p12 = scmp.lt.s32.totalorder %s3839_s0, %s3388_s29 }
  0x97   : > { %p3385_p3 = pnand %p3383_p7, %p3674_p9  ;;  %p3391_p13 = scmp.lt.s32.totalorder %s3389_s1, %s3382_s23 }
  0x99   : > { %p3386_p0 = pneg %p3385_p3  ;;  %p3392_p11 = por %p3391_p13, %p3390_p12 }
  0x9b   : > { %p3393_p4 = pnand %p3392_p11, %p3386_p0 }
  0x9d   : > { %3396 = shalt.err (!%p3393_p4)
}
  0x9e   : > { %2919 = dma.hbm_to_vmem [thread:$0]  (!%p5412_p10), %s3835_s24, 8192, %s3839_s0, %s274_s11, %s3533_s4, %s3533_s4, %s3534_s17  }
  0x9f   : > { %p5413_p9 = scmp.ne.s32.totalorder %s5398_s16, 0 }
  0xa1   : > { %297 = sbr.rel (%p5413_p9) target bundleno = 972 (0x3cc), region = 40 }
  0xa8   : > { %s3871_s12 = sand.u32 1, %s3503_s22   ;;  %p5414_p5 = scmp.ne.s32.totalorder %s5403_s30, 0 }
  0xa9   : > { %s2588_s25 = sshll.u32 %s3871_s12, 9  ;;  %s300_s20 = scalar_lea.sflag [#allocation4], %s3871_s12 }
  0xaa   : > { %s3875_s7 = scalar_lea.vmem [#allocation3], %s2588_s25 }
  0xab   : > { %3470 = dma.done.wait (%p5414_p5), %s300_s20, 8192  }
  0xac   : > { %3472 = vsyncadd (%p5414_p5), %s300_s20, 4294959104  ;;  %s308_s9 = sand.u32 1, %s3705_s8   ;;  %s310_s16 = sand.u32 1, %s3491_s19  }
  0xad   : > { %s2589_s4 = sshll.u32 %s310_s16, 10  ;;  %s309_s17 = scalar_lea.sflag [#allocation7], %s308_s9 }
  0xae   : > { %s3883_s24 = scalar_lea.vmem [#allocation6], %s2589_s4  ;;  %p5415_p10 = scmp.ne.s32.totalorder %s5405_s10, 0 }
  0xb0   : > { %3474 = dma.done.wait (%p5415_p10), %s309_s17, 16448  }
  0xb1   : > { %3476 = vsyncadd (%p5415_p10), %s309_s17, 4294950848  ;;  %s2590_s0 = sshll.u32 %s310_s16, 2  ;;  %s2591_s11 = sshll.u32 %s310_s16, 9 }
  0xb2   : > { %s3889_s6 = scalar_lea.vmem [#allocation8], %s2590_s0  ;;  %s327_s30 = scalar_lea.sflag [#allocation10], %s310_s16 }
  0xb3   : > { %s3891_s18 = scalar_lea.vmem [#allocation9], %s2591_s11 }
  0xb4   : > { %3478 = dma.done.wait (%p5415_p10), %s327_s30, 8192  }
  0xb5   : > { %3480 = vsyncadd (%p5415_p10), %s327_s30, 4294959104  ;;  %s3897_s8 = scalar_lea.vmem [#allocation11], %s2588_s25  ;;  %s5416_s27 = sld [smem:[#allocation18_spill]] }
  0xbb   : > { %p2593_p1 = scmp.ne.s32.totalorder %s5416_s27, 0 }
  0xbc   : > { %v3537_v0 = vmov (!%p2593_p1), 0.0  }
  0xbd   : > { %378 = sbr.rel (%p2593_p1) target bundleno = 221 (0xdd), region = 60  ;;  %379 = vst [vmem:[#allocation2] sm:$0xff] (!%p2593_p1), %v3537_v0  ;;  %380 = vst [vmem:[#allocation2 + $0x8] sm:$0xff] (!%p2593_p1), %v3537_v0 }
  0xbe   : > { %381 = vst [vmem:[#allocation2 + $0x10] sm:$0xff] (!%p2593_p1), %v3537_v0  ;;  %382 = vst [vmem:[#allocation2 + $0x18] sm:$0xff] (!%p2593_p1), %v3537_v0 }
  0xbf   : > { %383 = vst [vmem:[#allocation2 + $0x20] sm:$0xff] (!%p2593_p1), %v3537_v0  ;;  %384 = vst [vmem:[#allocation2 + $0x28] sm:$0xff] (!%p2593_p1), %v3537_v0 }
  0xc0   : > { %385 = vst [vmem:[#allocation2 + $0x30] sm:$0xff] (!%p2593_p1), %v3537_v0  ;;  %386 = vst [vmem:[#allocation2 + $0x38] sm:$0xff] (!%p2593_p1), %v3537_v0 }
  0xc1   : > { %387 = vst [vmem:[#allocation2 + $0x40] sm:$0xff] (!%p2593_p1), %v3537_v0  ;;  %388 = vst [vmem:[#allocation2 + $0x48] sm:$0xff] (!%p2593_p1), %v3537_v0 }
  0xc2   : > { %389 = vst [vmem:[#allocation2 + $0x50] sm:$0xff] (!%p2593_p1), %v3537_v0  ;;  %390 = vst [vmem:[#allocation2 + $0x58] sm:$0xff] (!%p2593_p1), %v3537_v0 }
  0xc3   : > { %391 = vst [vmem:[#allocation2 + $0x60] sm:$0xff] (!%p2593_p1), %v3537_v0  ;;  %392 = vst [vmem:[#allocation2 + $0x68] sm:$0xff] (!%p2593_p1), %v3537_v0 }
  0xc4   : > { %393 = vst [vmem:[#allocation2 + $0x70] sm:$0xff] %v3537_v0  ;;  %394 = vst [vmem:[#allocation2 + $0x78] sm:$0xff] %v3537_v0 }
  0xc5   : > { %395 = vst [vmem:[#allocation2 + $0x80] sm:$0xff] %v3537_v0  ;;  %396 = vst [vmem:[#allocation2 + $0x88] sm:$0xff] %v3537_v0 }
  0xc6   : > { %397 = vst [vmem:[#allocation2 + $0x90] sm:$0xff] %v3537_v0  ;;  %398 = vst [vmem:[#allocation2 + $0x98] sm:$0xff] %v3537_v0 }
  0xc7   : > { %399 = vst [vmem:[#allocation2 + $0xa0] sm:$0xff] %v3537_v0  ;;  %400 = vst [vmem:[#allocation2 + $0xa8] sm:$0xff] %v3537_v0 }
  0xc8   : > { %401 = vst [vmem:[#allocation2 + $0xb0] sm:$0xff] %v3537_v0  ;;  %402 = vst [vmem:[#allocation2 + $0xb8] sm:$0xff] %v3537_v0 }
  0xc9   : > { %403 = vst [vmem:[#allocation2 + $0xc0] sm:$0xff] %v3537_v0  ;;  %404 = vst [vmem:[#allocation2 + $0xc8] sm:$0xff] %v3537_v0 }
  0xca   : > { %405 = vst [vmem:[#allocation2 + $0xd0] sm:$0xff] %v3537_v0  ;;  %406 = vst [vmem:[#allocation2 + $0xd8] sm:$0xff] %v3537_v0 }
  0xcb   : > { %407 = vst [vmem:[#allocation2 + $0xe0] sm:$0xff] %v3537_v0  ;;  %408 = vst [vmem:[#allocation2 + $0xe8] sm:$0xff] %v3537_v0 }
  0xcc   : > { %409 = vst [vmem:[#allocation2 + $0xf0] sm:$0xff] %v3537_v0  ;;  %410 = vst [vmem:[#allocation2 + $0xf8] sm:$0xff] %v3537_v0 }
  0xcd   : > { %411 = vst [vmem:[#allocation2 + $0x100] sm:$0xff] %v3537_v0  ;;  %412 = vst [vmem:[#allocation2 + $0x108] sm:$0xff] %v3537_v0 }
  0xce   : > { %413 = vst [vmem:[#allocation2 + $0x110] sm:$0xff] %v3537_v0  ;;  %414 = vst [vmem:[#allocation2 + $0x118] sm:$0xff] %v3537_v0 }
  0xcf   : > { %415 = vst [vmem:[#allocation2 + $0x120] sm:$0xff] %v3537_v0  ;;  %416 = vst [vmem:[#allocation2 + $0x128] sm:$0xff] %v3537_v0 }
  0xd0   : > { %417 = vst [vmem:[#allocation2 + $0x130] sm:$0xff] %v3537_v0  ;;  %418 = vst [vmem:[#allocation2 + $0x138] sm:$0xff] %v3537_v0 }
  0xd1   : > { %419 = vst [vmem:[#allocation2 + $0x140] sm:$0xff] %v3537_v0  ;;  %420 = vst [vmem:[#allocation2 + $0x148] sm:$0xff] %v3537_v0 }
  0xd2   : > { %421 = vst [vmem:[#allocation2 + $0x150] sm:$0xff] %v3537_v0  ;;  %422 = vst [vmem:[#allocation2 + $0x158] sm:$0xff] %v3537_v0 }
  0xd3   : > { %423 = vst [vmem:[#allocation2 + $0x160] sm:$0xff] %v3537_v0  ;;  %424 = vst [vmem:[#allocation2 + $0x168] sm:$0xff] %v3537_v0 }
  0xd4   : > { %425 = vst [vmem:[#allocation2 + $0x170] sm:$0xff] %v3537_v0  ;;  %426 = vst [vmem:[#allocation2 + $0x178] sm:$0xff] %v3537_v0 }
  0xd5   : > { %427 = vst [vmem:[#allocation2 + $0x180] sm:$0xff] %v3537_v0  ;;  %428 = vst [vmem:[#allocation2 + $0x188] sm:$0xff] %v3537_v0 }
  0xd6   : > { %429 = vst [vmem:[#allocation2 + $0x190] sm:$0xff] %v3537_v0  ;;  %430 = vst [vmem:[#allocation2 + $0x198] sm:$0xff] %v3537_v0 }
  0xd7   : > { %431 = vst [vmem:[#allocation2 + $0x1a0] sm:$0xff] %v3537_v0  ;;  %432 = vst [vmem:[#allocation2 + $0x1a8] sm:$0xff] %v3537_v0 }
  0xd8   : > { %433 = vst [vmem:[#allocation2 + $0x1b0] sm:$0xff] %v3537_v0  ;;  %434 = vst [vmem:[#allocation2 + $0x1b8] sm:$0xff] %v3537_v0 }
  0xd9   : > { %435 = vst [vmem:[#allocation2 + $0x1c0] sm:$0xff] %v3537_v0  ;;  %436 = vst [vmem:[#allocation2 + $0x1c8] sm:$0xff] %v3537_v0 }
  0xda   : > { %437 = vst [vmem:[#allocation2 + $0x1d0] sm:$0xff] %v3537_v0  ;;  %438 = vst [vmem:[#allocation2 + $0x1d8] sm:$0xff] %v3537_v0 }
  0xdb   : > { %439 = vst [vmem:[#allocation2 + $0x1e0] sm:$0xff] %v3537_v0  ;;  %440 = vst [vmem:[#allocation2 + $0x1e8] sm:$0xff] %v3537_v0 }
  0xdc   : > { %441 = vst [vmem:[#allocation2 + $0x1f0] sm:$0xff] %v3537_v0  ;;  %442 = vst [vmem:[#allocation2 + $0x1f8] sm:$0xff] %v3537_v0 }
  0xdd PF: > { %v508_v1 = vld [vmem:[%s3883_s24 + $0x8] sm:$0xff]  ;;  %v507_v3 = vld [vmem:[%s3883_s24] sm:$0xff]  ;;  %s5501_s10 = sld [smem:[#allocation18_spill]] }
  0xde   : > { %v512_v2 = vld [vmem:[%s3883_s24 + $0x28] sm:$0xff]  ;;  %v511_v5 = vld [vmem:[%s3883_s24 + $0x20] sm:$0xff] }
  0xdf   : > { %v2673_v4 = vpack.c.bf16 %v512_v2, %v508_v1  ;;  %v516_v6 = vld [vmem:[%s3883_s24 + $0x48] sm:$0xff]  ;;  %v2675_v8 = vpack.c.bf16 %v511_v5, %v507_v3  ;;  %v515_v10 = vld [vmem:[%s3883_s24 + $0x40] sm:$0xff] }
  0xe0   : > { %v520_v7 = vld [vmem:[%s3883_s24 + $0x68] sm:$0xff]  ;;  %v519_v11 = vld [vmem:[%s3883_s24 + $0x60] sm:$0xff] }
  0xe1   : > { %v2677_v9 = vpack.c.bf16 %v520_v7, %v516_v6  ;;  %v524_v12 = vld [vmem:[%s3883_s24 + $0x88] sm:$0xff]  ;;  %2865 = vmatprep.subr.bf16.mxu1 %v2673_v4  ;;  %2674 = vmatprep.subr.bf16.mxu0 %v2673_v4  ;;  %v2679_v14 = vpack.c.bf16 %v519_v11, %v515_v10  ;;  %v523_v16 = vld [vmem:[%s3883_s24 + $0x80] sm:$0xff] }
  0xe2   : > { %v528_v13 = vld [vmem:[%s3883_s24 + $0xa8] sm:$0xff]  ;;  %2881 = vmatpush1.bf16.msra.mxu1 %v2675_v8  ;;  %2676 = vmatpush1.bf16.msra.mxu0 %v2675_v8  ;;  %v527_v17 = vld [vmem:[%s3883_s24 + $0xa0] sm:$0xff] }
  0xe3   : > { %2866 = vmatprep.subr.bf16.mxu1 %v2677_v9  ;;  %v2681_v15 = vpack.c.bf16 %v528_v13, %v524_v12  ;;  %2678 = vmatprep.subr.bf16.mxu0 %v2677_v9  ;;  %v532_v18 = vld [vmem:[%s3883_s24 + $0xc8] sm:$0xff]  ;;  %v2683_v20 = vpack.c.bf16 %v527_v17, %v523_v16  ;;  %v531_v22 = vld [vmem:[%s3883_s24 + $0xc0] sm:$0xff]  ;;  %p2658_p8 = scmp.ne.s32.totalorder %s5501_s10, 1 }
  0xe4   : > { %v536_v19 = vld [vmem:[%s3883_s24 + $0xe8] sm:$0xff]  ;;  %v535_v23 = vld [vmem:[%s3883_s24 + $0xe0] sm:$0xff]  ;;  %s5502_s13 = sld [smem:[#allocation59_spill]] (!%p2658_p8) }
  0xe5   : > { %v2685_v21 = vpack.c.bf16 %v536_v19, %v532_v18  ;;  %v540_v24 = vld [vmem:[%s3883_s24 + $0x108] sm:$0xff]  ;;  %v2687_v26 = vpack.c.bf16 %v535_v23, %v531_v22  ;;  %v539_v28 = vld [vmem:[%s3883_s24 + $0x100] sm:$0xff] }
  0xe6   : > { %2882 = vmatpush1.bf16.msra.mxu1 %v2679_v14  ;;  %2680 = vmatpush1.bf16.msra.mxu0 %v2679_v14  ;;  %v544_v25 = vld [vmem:[%s3883_s24 + $0x128] sm:$0xff]  ;;  %v543_v29 = vld [vmem:[%s3883_s24 + $0x120] sm:$0xff] }
  0xe7   : > { %2867 = vmatprep.subr.bf16.mxu1 %v2681_v15  ;;  %2682 = vmatprep.subr.bf16.mxu0 %v2681_v15  ;;  %v2689_v27 = vpack.c.bf16 %v544_v25, %v540_v24  ;;  %v548_v30 = vld [vmem:[%s3883_s24 + $0x148] sm:$0xff]  ;;  %v2691_v32 = vpack.c.bf16 %v543_v29, %v539_v28  ;;  %v547_v34 = vld [vmem:[%s3883_s24 + $0x140] sm:$0xff] }
  0xe8   : > { %v552_v31 = vld [vmem:[%s3883_s24 + $0x168] sm:$0xff]  ;;  %v551_v35 = vld [vmem:[%s3883_s24 + $0x160] sm:$0xff] }
  0xe9   : > { %v2693_v33 = vpack.c.bf16 %v552_v31, %v548_v30  ;;  %v556_v36 = vld [vmem:[%s3883_s24 + $0x188] sm:$0xff]  ;;  %v2695_v38 = vpack.c.bf16 %v551_v35, %v547_v34  ;;  %v555_v40 = vld [vmem:[%s3883_s24 + $0x180] sm:$0xff]  ;;  %v510_v34 = vld [vmem:[%s3883_s24 + $0x18] sm:$0xff] }
  0xea   : > { %2883 = vmatpush1.bf16.msra.mxu1 %v2683_v20  ;;  %2684 = vmatpush1.bf16.msra.mxu0 %v2683_v20  ;;  %v560_v37 = vld [vmem:[%s3883_s24 + $0x1a8] sm:$0xff]  ;;  %v559_v41 = vld [vmem:[%s3883_s24 + $0x1a0] sm:$0xff]  ;;  %v514_v35 = vld [vmem:[%s3883_s24 + $0x38] sm:$0xff] }
  0xeb   : > { %2868 = vmatprep.subr.bf16.mxu1 %v2685_v21  ;;  %2686 = vmatprep.subr.bf16.mxu0 %v2685_v21  ;;  %v2697_v39 = vpack.c.bf16 %v560_v37, %v556_v36  ;;  %v3993_v42 = vld [vmem:[%s3875_s7 + $0x108] sm:$0xff]  ;;  %v2699_v45 = vpack.c.bf16 %v559_v41, %v555_v40  ;;  %v563_v47 = vld [vmem:[%s3883_s24 + $0x1c0] sm:$0xff]  ;;  %v2737_v37 = vpack.c.bf16 %v514_v35, %v510_v34  ;;  %v518_v40 = vld [vmem:[%s3883_s24 + $0x58] sm:$0xff] }
  0xec   : > { %v564_v43 = vld [vmem:[%s3883_s24 + $0x1c8] sm:$0xff]  ;;  %817 = vmatprep.mubr.f32.mxu1 %v3993_v42  ;;  %v567_v48 = vld [vmem:[%s3883_s24 + $0x1e0] sm:$0xff]  ;;  %v522_v41 = vld [vmem:[%s3883_s24 + $0x78] sm:$0xff] }
  0xed   : > { %v568_v44 = vld [vmem:[%s3883_s24 + $0x1e8] sm:$0xff]  ;;  %v2703_v52 = vpack.c.bf16 %v567_v48, %v563_v47  ;;  %v571_v54 = vld [vmem:[%s3883_s24 + $0x200] sm:$0xff]  ;;  %v2741_v47 = vpack.c.bf16 %v522_v41, %v518_v40  ;;  %v517_v48 = vld [vmem:[%s3883_s24 + $0x50] sm:$0xff] }
  0xee   : > { %2884 = vmatpush1.bf16.msra.mxu1 %v2687_v26  ;;  %2688 = vmatpush1.bf16.msra.mxu0 %v2687_v26  ;;  %v2701_v46 = vpack.c.bf16 %v568_v44, %v564_v43  ;;  %v572_v49 = vld [vmem:[%s3883_s24 + $0x208] sm:$0xff]  ;;  %v575_v55 = vld [vmem:[%s3883_s24 + $0x220] sm:$0xff]  ;;  %v557_v35 = vld [vmem:[%s3883_s24 + $0x190] sm:$0xff] }
  0xef   : > { %2869 = vmatprep.subr.bf16.mxu1 %v2689_v27  ;;  %2690 = vmatprep.subr.bf16.mxu0 %v2689_v27  ;;  %v576_v50 = vld [vmem:[%s3883_s24 + $0x228] sm:$0xff]  ;;  %v2707_v58 = vpack.c.bf16 %v575_v55, %v571_v54  ;;  %v579_v60 = vld [vmem:[%s3883_s24 + $0x240] sm:$0xff]  ;;  %v4062_v54 = vld [vmem:[%s3875_s7 + $0x110] sm:$0xff] }
  0xf0   : > { %v4003_v51 = vld [vmem:[%s3875_s7 + $0x8] sm:$0xff]  ;;  %v2705_v53 = vpack.c.bf16 %v576_v50, %v572_v49  ;;  %v583_v61 = vld [vmem:[%s3883_s24 + $0x260] sm:$0xff]  ;;  %v521_v49 = vld [vmem:[%s3883_s24 + $0x70] sm:$0xff] }
  0xf1   : > { %721 = vmatprep.mubr.f32.mxu0 %v4003_v51  ;;  %v580_v56 = vld [vmem:[%s3883_s24 + $0x248] sm:$0xff]  ;;  %v2711_v0 = vpack.c.bf16 %v583_v61, %v579_v60  ;;  %v587_v2 = vld [vmem:[%s3883_s24 + $0x280] sm:$0xff]  ;;  %v526_v50 = vld [vmem:[%s3883_s24 + $0x98] sm:$0xff]  ;;  %v2743_v55 = vpack.c.bf16 %v521_v49, %v517_v48 }
  0xf2   : > { %2885 = vmatpush1.bf16.msra.mxu1 %v2691_v32  ;;  %2692 = vmatpush1.bf16.msra.mxu0 %v2691_v32  ;;  %v584_v57 = vld [vmem:[%s3883_s24 + $0x268] sm:$0xff]  ;;  %v591_v3 = vld [vmem:[%s3883_s24 + $0x2a0] sm:$0xff]  ;;  %v529_v60 = vld [vmem:[%s3883_s24 + $0xb0] sm:$0xff] }
  0xf3   : > { %2870 = vmatprep.subr.bf16.mxu1 %v2693_v33  ;;  %2694 = vmatprep.subr.bf16.mxu0 %v2693_v33  ;;  %v2709_v59 = vpack.c.bf16 %v584_v57, %v580_v56  ;;  %v588_v62 = vld [vmem:[%s3883_s24 + $0x288] sm:$0xff]  ;;  %v2715_v6 = vpack.c.bf16 %v591_v3, %v587_v2  ;;  %v595_v8 = vld [vmem:[%s3883_s24 + $0x2c0] sm:$0xff]  ;;  %v4065_v56 = vld [vmem:[%s3875_s7 + $0x10] sm:$0xff] }
  0xf4   : > { %v592_v63 = vld [vmem:[%s3883_s24 + $0x2a8] sm:$0xff]  ;;  %v599_v9 = vld [vmem:[%s3883_s24 + $0x2e0] sm:$0xff]  ;;  %v534_v61 = vld [vmem:[%s3883_s24 + $0xd8] sm:$0xff] }
  0xf5   : > { %v2713_v1 = vpack.c.bf16 %v592_v63, %v588_v62  ;;  %v596_v4 = vld [vmem:[%s3883_s24 + $0x2c8] sm:$0xff]  ;;  %v2719_v12 = vpack.c.bf16 %v599_v9, %v595_v8  ;;  %v603_v14 = vld [vmem:[%s3883_s24 + $0x300] sm:$0xff]  ;;  %v538_v62 = vld [vmem:[%s3883_s24 + $0xf8] sm:$0xff] }
  0xf6   : > { %2886 = vmatpush1.bf16.msra.mxu1 %v2695_v38  ;;  %2696 = vmatpush1.bf16.msra.mxu0 %v2695_v38  ;;  %v600_v5 = vld [vmem:[%s3883_s24 + $0x2e8] sm:$0xff]  ;;  %v607_v15 = vld [vmem:[%s3883_s24 + $0x320] sm:$0xff]  ;;  %v509_v38 = vld [vmem:[%s3883_s24 + $0x10] sm:$0xff] }
  0xf7   : > { %2871 = vmatprep.subr.bf16.mxu1 %v2697_v39  ;;  %2698 = vmatprep.subr.bf16.mxu0 %v2697_v39  ;;  %v2717_v7 = vpack.c.bf16 %v600_v5, %v596_v4  ;;  %v604_v10 = vld [vmem:[%s3883_s24 + $0x308] sm:$0xff]  ;;  %v2723_v18 = vpack.c.bf16 %v607_v15, %v603_v14  ;;  %v611_v20 = vld [vmem:[%s3883_s24 + $0x340] sm:$0xff]  ;;  %v513_v39 = vld [vmem:[%s3883_s24 + $0x30] sm:$0xff]  ;;  %v2749_v4 = vpack.c.bf16 %v538_v62, %v534_v61 }
  0xf8   : > { %v608_v11 = vld [vmem:[%s3883_s24 + $0x328] sm:$0xff]  ;;  %v615_v21 = vld [vmem:[%s3883_s24 + $0x360] sm:$0xff]  ;;  %v2739_v44 = vpack.c.bf16 %v513_v39, %v509_v38  ;;  %v4088_v3 = vld [vmem:[%s3875_s7 + $0x138] sm:$0xff] }
  0xf9   : > { %v2721_v13 = vpack.c.bf16 %v608_v11, %v604_v10  ;;  %v612_v16 = vld [vmem:[%s3883_s24 + $0x348] sm:$0xff]  ;;  %v2727_v24 = vpack.c.bf16 %v615_v21, %v611_v20  ;;  %v619_v26 = vld [vmem:[%s3883_s24 + $0x380] sm:$0xff]  ;;  %v533_v5 = vld [vmem:[%s3883_s24 + $0xd0] sm:$0xff] }
  0xfa   : > { %2887 = vmatpush1.bf16.msra.mxu1 %v2699_v45  ;;  %2700 = vmatpush1.bf16.msra.mxu0 %v2699_v45  ;;  %v616_v17 = vld [vmem:[%s3883_s24 + $0x368] sm:$0xff]  ;;  %v623_v27 = vld [vmem:[%s3883_s24 + $0x3a0] sm:$0xff]  ;;  %v546_v8 = vld [vmem:[%s3883_s24 + $0x138] sm:$0xff] }
  0xfb   : > { %2872 = vmatprep.subr.bf16.mxu1 %v2701_v46  ;;  %2702 = vmatprep.subr.bf16.mxu0 %v2701_v46  ;;  %v2725_v19 = vpack.c.bf16 %v616_v17, %v612_v16  ;;  %v620_v22 = vld [vmem:[%s3883_s24 + $0x388] sm:$0xff]  ;;  %v2731_v30 = vpack.c.bf16 %v623_v27, %v619_v26  ;;  %v627_v32 = vld [vmem:[%s3883_s24 + $0x3c0] sm:$0xff]  ;;  %v4049_v46 = vld [vmem:[%s3875_s7 + $0x118] sm:$0xff] }
  0xfc   : > { %v624_v23 = vld [vmem:[%s3883_s24 + $0x3a8] sm:$0xff]  ;;  %v631_v33 = vld [vmem:[%s3883_s24 + $0x3e0] sm:$0xff]  ;;  %v4096_v9 = vld [vmem:[%s3875_s7 + $0x38] sm:$0xff] }
  0xfd   : > { %v2729_v25 = vpack.c.bf16 %v624_v23, %v620_v22  ;;  %v628_v28 = vld [vmem:[%s3883_s24 + $0x3c8] sm:$0xff]  ;;  %v2735_v36 = vpack.c.bf16 %v631_v33, %v627_v32  ;;  %v4043_v43 = vld [vmem:[%s3875_s7 + $0x100] sm:$0xff]  ;;  %v4102_v10 = vld [vmem:[%s3875_s7 + $0x130] sm:$0xff] }
  0xfe   : > { %2888 = vmatpush1.bf16.msra.mxu1 %v2703_v52  ;;  %2704 = vmatpush1.bf16.msra.mxu0 %v2703_v52  ;;  %v632_v29 = vld [vmem:[%s3883_s24 + $0x3e8] sm:$0xff]  ;;  %v4046_v45 = vld [vmem:[%s3875_s7] sm:$0xff]  ;;  %v530_v52 = vld [vmem:[%s3883_s24 + $0xb8] sm:$0xff] }
  0xff   : > { %2873 = vmatprep.subr.bf16.mxu1 %v2705_v53  ;;  %2706 = vmatprep.subr.bf16.mxu0 %v2705_v53  ;;  %v2733_v31 = vpack.c.bf16 %v632_v29, %v628_v28  ;;  %v4056_v53 = vld [vmem:[%s3875_s7 + $0x18] sm:$0xff]  ;;  %v4068_v57 = vld [vmem:[%s3875_s7 + $0x128] sm:$0xff]  ;;  %v4085_v2 = vld [vmem:[%s3875_s7 + $0x20] sm:$0xff] }
 0x100   : > { %v4076_v63 = vld [vmem:[%s3875_s7 + $0x28] sm:$0xff]  ;;  %v541_v15 = vld [vmem:[%s3883_s24 + $0x110] sm:$0xff]  ;;  %v550_v17 = vld [vmem:[%s3883_s24 + $0x158] sm:$0xff] }
 0x101   : > { %v545_v16 = vld [vmem:[%s3883_s24 + $0x130] sm:$0xff]  ;;  %v4122_v20 = vld [vmem:[%s3875_s7 + $0x140] sm:$0xff]  ;;  %v4128_v23 = vld [vmem:[%s3875_s7 + $0x158] sm:$0xff] }
 0x102   : > { %2889 = vmatpush1.bf16.msra.mxu1 %v2707_v58  ;;  %2708 = vmatpush1.bf16.msra.mxu0 %v2707_v58  ;;  %v2745_v58 = vpack.c.bf16 %v530_v52, %v526_v50  ;;  %v2755_v21 = vpack.c.bf16 %v545_v16, %v541_v15  ;;  %v4125_v22 = vld [vmem:[%s3875_s7 + $0x40] sm:$0xff]  ;;  %v553_v26 = vld [vmem:[%s3883_s24 + $0x170] sm:$0xff]  ;;  %v558_v27 = vld [vmem:[%s3883_s24 + $0x198] sm:$0xff] }
 0x103   : > { %2874 = vmatprep.subr.bf16.mxu1 %v2709_v59  ;;  %2710 = vmatprep.subr.bf16.mxu0 %v2709_v59  ;;  %v525_v59 = vld [vmem:[%s3883_s24 + $0x90] sm:$0xff]  ;;  %v562_v28 = vld [vmem:[%s3883_s24 + $0x1b8] sm:$0xff]  ;;  %v4148_v33 = vld [vmem:[%s3875_s7 + $0x168] sm:$0xff] }
 0x104   : > { %v4136_v29 = vld [vmem:[%s3875_s7 + $0x58] sm:$0xff]  ;;  %v4145_v32 = vld [vmem:[%s3875_s7 + $0x50] sm:$0xff]  ;;  %v2761_v34 = vpack.c.bf16 %v562_v28, %v558_v27  ;;  %v4156_v39 = vld [vmem:[%s3875_s7 + $0x68] sm:$0xff] }
 0x105   : > { %v570_v38 = vld [vmem:[%s3883_s24 + $0x1f8] sm:$0xff]  ;;  %v4162_v40 = vld [vmem:[%s3875_s7 + $0x160] sm:$0xff]  ;;  %v565_v49 = vld [vmem:[%s3883_s24 + $0x1d0] sm:$0xff] }
 0x106   : > { %2890 = vmatpush1.bf16.msra.mxu1 %v2711_v0  ;;  %2712 = vmatpush1.bf16.msra.mxu0 %v2711_v0  ;;  %v4082_v0 = vld [vmem:[%s3875_s7 + $0x120] sm:$0xff]  ;;  %v569_v50 = vld [vmem:[%s3883_s24 + $0x1f0] sm:$0xff]  ;;  %v574_v52 = vld [vmem:[%s3883_s24 + $0x218] sm:$0xff] }
 0x107   : > { %2875 = vmatprep.subr.bf16.mxu1 %v2713_v1  ;;  %2714 = vmatprep.subr.bf16.mxu0 %v2713_v1  ;;  %v2747_v1 = vpack.c.bf16 %v529_v60, %v525_v59  ;;  %v4182_v59 = vld [vmem:[%s3875_s7 + $0x170] sm:$0xff]  ;;  %v2767_v60 = vpack.c.bf16 %v569_v50, %v565_v49  ;;  %v4188_v62 = vld [vmem:[%s3875_s7 + $0x188] sm:$0xff]  ;;  %v4205_v15 = vld [vmem:[%s3875_s7 + $0x80] sm:$0xff] }
 0x108   : > { %v4185_v61 = vld [vmem:[%s3875_s7 + $0x70] sm:$0xff]  ;;  %v4208_v16 = vld [vmem:[%s3875_s7 + $0x198] sm:$0xff]  ;;  %v4242_v49 = vld [vmem:[%s3875_s7 + $0x1a0] sm:$0xff] }
 0x109   : > { %v4222_v27 = vld [vmem:[%s3875_s7 + $0x190] sm:$0xff]  ;;  %5418 = vst [vmem:[#allocation26_spill] sm:$0xff] %v4242_v49 }
 0x10a   : > { %2891 = vmatpush1.bf16.msra.mxu1 %v2715_v6  ;;  %2716 = vmatpush1.bf16.msra.mxu0 %v2715_v6  ;;  %v537_v6 = vld [vmem:[%s3883_s24 + $0xf0] sm:$0xff] }
 0x10b   : > { %2876 = vmatprep.subr.bf16.mxu1 %v2717_v7  ;;  %2718 = vmatprep.subr.bf16.mxu0 %v2717_v7  ;;  %v542_v7 = vld [vmem:[%s3883_s24 + $0x118] sm:$0xff]  ;;  %v2751_v11 = vpack.c.bf16 %v537_v6, %v533_v5  ;;  %v577_v5 = vld [vmem:[%s3883_s24 + $0x230] sm:$0xff] }
 0x10c   : > { %v2753_v14 = vpack.c.bf16 %v546_v8, %v542_v7  ;;  %v582_v6 = vld [vmem:[%s3883_s24 + $0x258] sm:$0xff]  ;;  %v4196_v8 = vld [vmem:[%s3875_s7 + $0x88] sm:$0xff] }
 0x10d   : > { %v586_v7 = vld [vmem:[%s3883_s24 + $0x278] sm:$0xff] }
 0x10e   : > { %2892 = vmatpush1.bf16.msra.mxu1 %v2719_v12  ;;  %2720 = vmatpush1.bf16.msra.mxu0 %v2719_v12  ;;  %v4105_v12 = vld [vmem:[%s3875_s7 + $0x30] sm:$0xff] }
 0x10f   : > { %2877 = vmatprep.subr.bf16.mxu1 %v2721_v13  ;;  %2722 = vmatprep.subr.bf16.mxu0 %v2721_v13  ;;  %v4108_v13 = vld [vmem:[%s3875_s7 + $0x148] sm:$0xff] }
 0x112   : > { %2893 = vmatpush1.bf16.msra.mxu1 %v2723_v18  ;;  %2724 = vmatpush1.bf16.msra.mxu0 %v2723_v18  ;;  %v554_v18 = vld [vmem:[%s3883_s24 + $0x178] sm:$0xff] }
 0x113   : > { %2878 = vmatprep.subr.bf16.mxu1 %v2725_v19  ;;  %2726 = vmatprep.subr.bf16.mxu0 %v2725_v19  ;;  %v4116_v19 = vld [vmem:[%s3875_s7 + $0x48] sm:$0xff] }
 0x116   : > { %2894 = vmatpush1.bf16.msra.mxu1 %v2727_v24  ;;  %2728 = vmatpush1.bf16.msra.mxu0 %v2727_v24  ;;  %v2757_v24 = vpack.c.bf16 %v554_v18, %v550_v17  ;;  %v2773_v17 = vpack.c.bf16 %v586_v7, %v582_v6  ;;  %v581_v18 = vld [vmem:[%s3883_s24 + $0x250] sm:$0xff]  ;;  %v610_v6 = vld [vmem:[%s3883_s24 + $0x338] sm:$0xff] }
 0x117   : > { %2879 = vmatprep.subr.bf16.mxu1 %v2729_v25  ;;  %2730 = vmatprep.subr.bf16.mxu0 %v2729_v25  ;;  %v549_v25 = vld [vmem:[%s3883_s24 + $0x150] sm:$0xff]  ;;  %v4256_v7 = vld [vmem:[%s3875_s7 + $0xb8] sm:$0xff] }
 0x11a   : > { %2895 = vmatpush1.bf16.msra.mxu1 %v2731_v30  ;;  %2732 = vmatpush1.bf16.msra.mxu0 %v2731_v30  ;;  %v4142_v30 = vld [vmem:[%s3875_s7 + $0x150] sm:$0xff] }
 0x11b   : > { %2880 = vmatprep.subr.bf16.mxu1 %v2733_v31  ;;  %2734 = vmatprep.subr.bf16.mxu0 %v2733_v31  ;;  %v2759_v31 = vpack.c.bf16 %v553_v26, %v549_v25  ;;  %v594_v25 = vld [vmem:[%s3883_s24 + $0x2b8] sm:$0xff] }
 0x11c   : > { %v4216_v26 = vld [vmem:[%s3875_s7 + $0x98] sm:$0xff] }
 0x11e   : > { %2896 = vmatpush1.bf16.msra.mxu1 %v2735_v36  ;;  %2736 = vmatpush1.bf16.msra.mxu0 %v2735_v36  ;;  %v561_v36 = vld [vmem:[%s3883_s24 + $0x1b0] sm:$0xff] }
 0x11f   : > { %2738 = vmatprep.subr.bf16.mxu1 %v2737_v37  ;;  %v566_v37 = vld [vmem:[%s3883_s24 + $0x1d8] sm:$0xff]  ;;  %v2763_v41 = vpack.c.bf16 %v561_v36, %v557_v35  ;;  %v589_v36 = vld [vmem:[%s3883_s24 + $0x290] sm:$0xff] }
 0x120   : > { %v2765_v48 = vpack.c.bf16 %v570_v38, %v566_v37  ;;  %v593_v37 = vld [vmem:[%s3883_s24 + $0x2b0] sm:$0xff]  ;;  %v598_v38 = vld [vmem:[%s3883_s24 + $0x2d8] sm:$0xff] }
 0x121   : > { %818 = vmatmul.mubr.f32.vlgmr.msra.gmra.mrb[0].mxu1 %v4043_v43  ;;  %722 = vmatmul.mubr.f32.vlgmr.msra.gmra.mrb[0].mxu0 %v4046_v45  ;;  %v2779_v50 = vpack.c.bf16 %v593_v37, %v589_v36  ;;  %v618_v36 = vld [vmem:[%s3883_s24 + $0x378] sm:$0xff]  ;;  %v4276_v37 = vld [vmem:[%s3875_s7 + $0xc8] sm:$0xff] }
 0x122   : > { %2740 = vmatpush1.bf16.msra.mxu1 %v2739_v44  ;;  %823 = vmatprep.mubr.f32.mxu1 %v4049_v46  ;;  %v4165_v44 = vld [vmem:[%s3875_s7 + $0x60] sm:$0xff] }
 0x123   : > { %2742 = vmatprep.subr.bf16.mxu1 %v2741_v47  ;;  %727 = vmatprep.mubr.f32.mxu0 %v4056_v53  ;;  %v4168_v47 = vld [vmem:[%s3875_s7 + $0x178] sm:$0xff] }
 0x125   : > { %824 = vmatmul.mubr.f32.gmra.mrb[2].mxu1 %v4062_v54  ;;  %728 = vmatmul.mubr.f32.gmra.mrb[2].mxu0 %v4065_v56 }
 0x126   : > { %2744 = vmatpush1.bf16.msra.mxu1 %v2743_v55  ;;  %829 = vmatprep.mubr.f32.mxu1 %v4068_v57  ;;  %v578_v55 = vld [vmem:[%s3883_s24 + $0x238] sm:$0xff] }
 0x127   : > { %2746 = vmatprep.subr.bf16.mxu1 %v2745_v58  ;;  %733 = vmatprep.mubr.f32.mxu0 %v4076_v63  ;;  %v4176_v58 = vld [vmem:[%s3875_s7 + $0x78] sm:$0xff] }
 0x129   : > { %830 = vmatmul.mubr.f32.gmra.mrb[4].mxu1 %v4082_v0  ;;  %734 = vmatmul.mubr.f32.gmra.mrb[4].mxu0 %v4085_v2 }
 0x12a   : > { %2748 = vmatpush1.bf16.msra.mxu1 %v2747_v1  ;;  %835 = vmatprep.mubr.f32.mxu1 %v4088_v3  ;;  %v2769_v1 = vpack.c.bf16 %v578_v55, %v574_v52  ;;  %v4245_v52 = vld [vmem:[%s3875_s7 + $0xa0] sm:$0xff]  ;;  %v4248_v55 = vld [vmem:[%s3875_s7 + $0x1b8] sm:$0xff] }
 0x12b   : > { %2750 = vmatprep.subr.bf16.mxu1 %v2749_v4  ;;  %739 = vmatprep.mubr.f32.mxu0 %v4096_v9  ;;  %v573_v4 = vld [vmem:[%s3883_s24 + $0x210] sm:$0xff]  ;;  %5419 = vst [vmem:[#allocation27_spill] sm:$0xff] %v4248_v55 }
 0x12d   : > { %836 = vmatmul.mubr.f32.gmra.mrb[6].mxu1 %v4102_v10  ;;  %740 = vmatmul.mubr.f32.gmra.mrb[6].mxu0 %v4105_v12 }
 0x12e   : > { %2752 = vmatpush1.bf16.msra.mxu1 %v2751_v11  ;;  %841 = vmatprep.mubr.f32.mxu1 %v4108_v13  ;;  %v4202_v11 = vld [vmem:[%s3875_s7 + $0x180] sm:$0xff] }
 0x12f   : > { %2754 = vmatprep.subr.bf16.mxu1 %v2753_v14  ;;  %745 = vmatprep.mubr.f32.mxu0 %v4116_v19  ;;  %v2771_v14 = vpack.c.bf16 %v577_v5, %v573_v4  ;;  %v601_v4 = vld [vmem:[%s3883_s24 + $0x2f0] sm:$0xff]  ;;  %v606_v5 = vld [vmem:[%s3883_s24 + $0x318] sm:$0xff] }
 0x131   : > { %842 = vmatmul.mubr.f32.gmra.mrb[8].mxu1 %v4122_v20  ;;  %746 = vmatmul.mubr.f32.gmra.mrb[8].mxu0 %v4125_v22 }
 0x132   : > { %2756 = vmatpush1.bf16.msra.mxu1 %v2755_v21  ;;  %847 = vmatprep.mubr.f32.mxu1 %v4128_v23  ;;  %v585_v21 = vld [vmem:[%s3883_s24 + $0x270] sm:$0xff] }
 0x133   : > { %2758 = vmatprep.subr.bf16.mxu1 %v2757_v24  ;;  %751 = vmatprep.mubr.f32.mxu0 %v4136_v29  ;;  %v590_v24 = vld [vmem:[%s3883_s24 + $0x298] sm:$0xff]  ;;  %v2775_v28 = vpack.c.bf16 %v585_v21, %v581_v18  ;;  %v4265_v18 = vld [vmem:[%s3875_s7 + $0xb0] sm:$0xff]  ;;  %v4268_v21 = vld [vmem:[%s3875_s7 + $0x1c8] sm:$0xff] }
 0x134   : > { %v2777_v35 = vpack.c.bf16 %v594_v25, %v590_v24  ;;  %5421 = vst [vmem:[#allocation29_spill] sm:$0xff] %v4268_v21  ;;  %v2785_v24 = vpack.c.bf16 %v610_v6, %v606_v5  ;;  %v605_v25 = vld [vmem:[%s3883_s24 + $0x310] sm:$0xff]  ;;  %v622_v6 = vld [vmem:[%s3883_s24 + $0x398] sm:$0xff] }
 0x135   : > { %848 = vmatmul.mubr.f32.gmra.mrb[10].mxu1 %v4142_v30  ;;  %752 = vmatmul.mubr.f32.gmra.mrb[10].mxu0 %v4145_v32  ;;  %v617_v5 = vld [vmem:[%s3883_s24 + $0x370] sm:$0xff] }
 0x136   : > { %2760 = vmatpush1.bf16.msra.mxu1 %v2759_v31  ;;  %853 = vmatprep.mubr.f32.mxu1 %v4148_v33  ;;  %v4225_v31 = vld [vmem:[%s3875_s7 + $0x90] sm:$0xff] }
 0x137   : > { %2762 = vmatprep.subr.bf16.mxu1 %v2761_v34  ;;  %757 = vmatprep.mubr.f32.mxu0 %v4156_v39  ;;  %v4228_v34 = vld [vmem:[%s3875_s7 + $0x1a8] sm:$0xff] }
 0x138   : > { %5417 = vst [vmem:[#allocation25_spill] sm:$0xff] %v4228_v34 }
 0x139   : > { %854 = vmatmul.mubr.f32.gmra.mrb[12].mxu1 %v4162_v40  ;;  %758 = vmatmul.mubr.f32.gmra.mrb[12].mxu0 %v4165_v44 }
 0x13a   : > { %2764 = vmatpush1.bf16.msra.mxu1 %v2763_v41  ;;  %859 = vmatprep.mubr.f32.mxu1 %v4168_v47  ;;  %v602_v41 = vld [vmem:[%s3883_s24 + $0x2f8] sm:$0xff] }
 0x13b   : > { %2766 = vmatprep.subr.bf16.mxu1 %v2765_v48  ;;  %763 = vmatprep.mubr.f32.mxu0 %v4176_v58  ;;  %v4236_v48 = vld [vmem:[%s3875_s7 + $0xa8] sm:$0xff] }
 0x13d   : > { %860 = vmatmul.mubr.f32.gmra.mrb[14].mxu1 %v4182_v59  ;;  %764 = vmatmul.mubr.f32.gmra.mrb[14].mxu0 %v4185_v61 }
 0x13e   : > { %2768 = vmatpush1.bf16.msra.mxu1 %v2767_v60  ;;  %865 = vmatprep.mubr.f32.mxu1 %v4188_v62  ;;  %v2781_v60 = vpack.c.bf16 %v602_v41, %v598_v38  ;;  %v4282_v38 = vld [vmem:[%s3875_s7 + $0x1c0] sm:$0xff] }
 0x13f   : > { %2770 = vmatprep.subr.bf16.mxu1 %v2769_v1  ;;  %769 = vmatprep.mubr.f32.mxu0 %v4196_v8  ;;  %v597_v1 = vld [vmem:[%s3883_s24 + $0x2d0] sm:$0xff]  ;;  %5422 = vst [vmem:[#allocation30_spill] sm:$0xff] %v4282_v38 }
 0x141   : > { %866 = vmatmul.mubr.f32.gmra.mrb[16].mxu1 %v4202_v11  ;;  %770 = vmatmul.mubr.f32.gmra.mrb[16].mxu0 %v4205_v15 }
 0x142   : > { %2772 = vmatpush1.bf16.msra.mxu1 %v2771_v14  ;;  %871 = vmatprep.mubr.f32.mxu1 %v4208_v16  ;;  %v4262_v14 = vld [vmem:[%s3875_s7 + $0x1b0] sm:$0xff] }
 0x143   : > { %2774 = vmatprep.subr.bf16.mxu1 %v2773_v17  ;;  %775 = vmatprep.mubr.f32.mxu0 %v4216_v26  ;;  %5420 = vst [vmem:[#allocation28_spill] sm:$0xff] %v4262_v14  ;;  %v2783_v17 = vpack.c.bf16 %v601_v4, %v597_v1  ;;  %v613_v4 = vld [vmem:[%s3883_s24 + $0x350] sm:$0xff] }
 0x145   : > { %872 = vmatmul.mubr.f32.gmra.mrb[18].mxu1 %v4222_v27  ;;  %776 = vmatmul.mubr.f32.gmra.mrb[18].mxu0 %v4225_v31 }
 0x146   : > { %2776 = vmatpush1.bf16.msra.mxu1 %v2775_v28  ;;  %877 = vmatprep.mubr.f32.mxu1 %v4228_v34  ;;  %v609_v28 = vld [vmem:[%s3883_s24 + $0x330] sm:$0xff] }
 0x147   : > { %2778 = vmatprep.subr.bf16.mxu1 %v2777_v35  ;;  %781 = vmatprep.mubr.f32.mxu0 %v4236_v48  ;;  %v614_v35 = vld [vmem:[%s3883_s24 + $0x358] sm:$0xff]  ;;  %v2787_v41 = vpack.c.bf16 %v609_v28, %v605_v25  ;;  %v2791_v25 = vpack.c.bf16 %v617_v5, %v613_v4  ;;  %v4305_v28 = vld [vmem:[%s3875_s7 + $0xd0] sm:$0xff]  ;;  %v4325_v5 = vld [vmem:[%s3875_s7 + $0xe0] sm:$0xff] }
 0x148   : > { %v2789_v1 = vpack.c.bf16 %v618_v36, %v614_v35  ;;  %v4308_v35 = vld [vmem:[%s3875_s7 + $0x1e8] sm:$0xff]  ;;  %v633_v34 = vld [vmem:[%s3883_s24 + $0x3f0] sm:$0xff] }
 0x149   : > { %878 = vmatmul.mubr.f32.gmra.mrb[20].mxu1 %v4242_v49  ;;  %782 = vmatmul.mubr.f32.gmra.mrb[20].mxu0 %v4245_v52  ;;  %v629_v49 = vld [vmem:[%s3883_s24 + $0x3d0] sm:$0xff] }
 0x14a   : > { %2780 = vmatpush1.bf16.msra.mxu1 %v2779_v50  ;;  %883 = vmatprep.mubr.f32.mxu1 %v4248_v55  ;;  %v4285_v50 = vld [vmem:[%s3875_s7 + $0xc0] sm:$0xff]  ;;  %v4316_v55 = vld [vmem:[%s3875_s7 + $0xe8] sm:$0xff] }
 0x14b   : > { %2782 = vmatprep.subr.bf16.mxu1 %v2781_v60  ;;  %787 = vmatprep.mubr.f32.mxu0 %v4256_v7  ;;  %v4288_v60 = vld [vmem:[%s3875_s7 + $0x1d8] sm:$0xff] }
 0x14c   : > { %5423 = vst [vmem:[#allocation31_spill] sm:$0xff] %v4288_v60 }
 0x14d   : > { %884 = vmatmul.mubr.f32.gmra.mrb[22].mxu1 %v4262_v14  ;;  %788 = vmatmul.mubr.f32.gmra.mrb[22].mxu0 %v4265_v18  ;;  %v621_v14 = vld [vmem:[%s3883_s24 + $0x390] sm:$0xff] }
 0x14e   : > { %2784 = vmatpush1.bf16.msra.mxu1 %v2783_v17  ;;  %889 = vmatprep.mubr.f32.mxu1 %v4268_v21  ;;  %v626_v17 = vld [vmem:[%s3883_s24 + $0x3b8] sm:$0xff] }
 0x14f   : > { %2786 = vmatprep.subr.bf16.mxu1 %v2785_v24  ;;  %793 = vmatprep.mubr.f32.mxu0 %v4276_v37  ;;  %v4296_v21 = vld [vmem:[%s3875_s7 + $0xd8] sm:$0xff]  ;;  %v4302_v24 = vld [vmem:[%s3875_s7 + $0x1d0] sm:$0xff]  ;;  %v2793_v36 = vpack.c.bf16 %v626_v17, %v622_v6 }
 0x150   : > { %5424 = vst [vmem:[#allocation32_spill] sm:$0xff] %v4302_v24  ;;  %v4328_v6 = vld [vmem:[%s3875_s7 + $0x1f8] sm:$0xff] }
 0x151   : > { %890 = vmatmul.mubr.f32.gmra.mrb[24].mxu1 %v4282_v38  ;;  %794 = vmatmul.mubr.f32.gmra.mrb[24].mxu0 %v4285_v50  ;;  %v625_v38 = vld [vmem:[%s3883_s24 + $0x3b0] sm:$0xff] }
 0x152   : > { %2788 = vmatpush1.bf16.msra.mxu1 %v2787_v41  ;;  %895 = vmatprep.mubr.f32.mxu1 %v4288_v60  ;;  %v630_v41 = vld [vmem:[%s3883_s24 + $0x3d8] sm:$0xff]  ;;  %v2795_v4 = vpack.c.bf16 %v625_v38, %v621_v14  ;;  %v4340_v14 = vld [vmem:[%s3875_s7 + $0x1f0] sm:$0xff]  ;;  %v2799_v38 = vpack.c.bf16 %v633_v34, %v629_v49 }
 0x153   : > { %2790 = vmatprep.subr.bf16.mxu1 %v2789_v1  ;;  %799 = vmatprep.mubr.f32.mxu0 %v4296_v21  ;;  %v634_v60 = vld [vmem:[%s3883_s24 + $0x3f8] sm:$0xff]  ;;  %v4322_v1 = vld [vmem:[%s3875_s7 + $0x1e0] sm:$0xff] }
 0x154   : > { %v2797_v17 = vpack.c.bf16 %v634_v60, %v630_v41  ;;  %v1761_v49 = vld [vmem:[%s3891_s18 + $0x70] sm:$0xff] }
 0x155   : > { %896 = vmatmul.mubr.f32.gmra.mrb[26].mxu1 %v4302_v24  ;;  %800 = vmatmul.mubr.f32.gmra.mrb[26].mxu0 %v4305_v28  ;;  %v4334_v24 = vld [vmem:[%s3875_s7 + $0xf8] sm:$0xff] }
 0x156   : > { %2792 = vmatpush1.bf16.msra.mxu1 %v2791_v25  ;;  %901 = vmatprep.mubr.f32.mxu1 %v4308_v35  ;;  %v4343_v25 = vld [vmem:[%s3875_s7 + $0xf0] sm:$0xff]  ;;  %v1765_v41 = vld [vmem:[%s3891_s18 + $0x90] sm:$0xff] }
 0x157   : > { %2794 = vmatprep.subr.bf16.mxu1 %v2793_v36  ;;  %805 = vmatprep.mubr.f32.mxu0 %v4316_v55  ;;  %v1763_v36 = vld [vmem:[%s3891_s18 + $0x80] sm:$0xff] }
 0x159   : > { %902 = vmatmul.mubr.f32.gmra.mrb[28].mxu1 %v4322_v1  ;;  %806 = vmatmul.mubr.f32.gmra.mrb[28].mxu0 %v4325_v5 }
 0x15a   : > { %2796 = vmatpush1.bf16.msra.mxu1 %v2795_v4  ;;  %907 = vmatprep.mubr.f32.mxu1 %v4328_v6  ;;  %v1770_v4 = vld [vmem:[%s3891_s18 + $0xb8] sm:$0xff] }
 0x15b   : > { %2798 = vmatprep.subr.bf16.mxu1 %v2797_v17  ;;  %811 = vmatprep.mubr.f32.mxu0 %v4334_v24  ;;  %v1767_v17 = vld [vmem:[%s3891_s18 + $0xa0] sm:$0xff] }
 0x15d   : > { %908 = vmatmul.mubr.f32.gmra.mrb[30].mxu1 %v4340_v14  ;;  %812 = vmatmul.mubr.f32.gmra.mrb[30].mxu0 %v4343_v25 }
 0x15e   : > { %2800 = vmatpush1.bf16.msra.mxu1 %v2799_v38  ;;  %978 = vmatprep.mubr.f32.mxu1 %v4003_v51  ;;  %v1748_v51 = vld [vmem:[%s3891_s18 + $0x8] sm:$0xff]  ;;  %v1769_v38 = vld [vmem:[%s3891_s18 + $0xb0] sm:$0xff] }
 0x161   : > { %979 = vmatmul.mubr.f32.vlgmr.msra.gmra.mrb[32].mxu1 %v4046_v45  ;;  %v1750_v45 = vld [vmem:[%s3891_s18 + $0x18] sm:$0xff] }
 0x162   : > { %984 = vmatprep.mubr.f32.mxu1 %v4056_v53  ;;  %v2801_v53 = vpack.c.bf16 %v1750_v45, %v1748_v51  ;;  %v2823_v51 = vpack.c.bf16 %v1769_v38, %v1767_v17  ;;  %v1773_v45 = vld [vmem:[%s3891_s18 + $0xd0] sm:$0xff] }
 0x164   : > { %2802 = vmatprep.subr.bf16.mxu0 %v2801_v53  ;;  %v1777_v53 = vld [vmem:[%s3891_s18 + $0xf0] sm:$0xff] }
 0x165   : > { %985 = vmatmul.mubr.f32.gmra.mrb[34].mxu1 %v4065_v56  ;;  %v1747_v56 = vld [vmem:[%s3891_s18] sm:$0xff] }
 0x166   : > { %990 = vmatprep.mubr.f32.mxu1 %v4076_v63  ;;  %v1749_v63 = vld [vmem:[%s3891_s18 + $0x10] sm:$0xff] }
 0x169   : > { %991 = vmatmul.mubr.f32.gmra.mrb[36].mxu1 %v4085_v2  ;;  %v2803_v2 = vpack.c.bf16 %v1749_v63, %v1747_v56  ;;  %v1779_v63 = vld [vmem:[%s3891_s18 + $0x100] sm:$0xff] }
 0x16a   : > { %996 = vmatprep.mubr.f32.mxu1 %v4096_v9  ;;  %v1752_v9 = vld [vmem:[%s3891_s18 + $0x28] sm:$0xff] }
 0x16b   : > { %2804 = vmatpush1.bf16.msra.mxu0 %v2803_v2  ;;  %v1781_v2 = vld [vmem:[%s3891_s18 + $0x110] sm:$0xff] }
 0x16d   : > { %997 = vmatmul.mubr.f32.gmra.mrb[38].mxu1 %v4105_v12  ;;  %v1754_v12 = vld [vmem:[%s3891_s18 + $0x38] sm:$0xff] }
 0x16e   : > { %1002 = vmatprep.mubr.f32.mxu1 %v4116_v19  ;;  %v2805_v19 = vpack.c.bf16 %v1754_v12, %v1752_v9  ;;  %v2835_v9 = vpack.c.bf16 %v1781_v2, %v1779_v63  ;;  %v1785_v12 = vld [vmem:[%s3891_s18 + $0x130] sm:$0xff] }
 0x170   : > { %2806 = vmatprep.subr.bf16.mxu0 %v2805_v19  ;;  %v1789_v19 = vld [vmem:[%s3891_s18 + $0x150] sm:$0xff] }
 0x171   : > { %1003 = vmatmul.mubr.f32.gmra.mrb[40].mxu1 %v4125_v22  ;;  %v1751_v22 = vld [vmem:[%s3891_s18 + $0x20] sm:$0xff] }
 0x172   : > { %1008 = vmatprep.mubr.f32.mxu1 %v4136_v29  ;;  %v1753_v29 = vld [vmem:[%s3891_s18 + $0x30] sm:$0xff] }
 0x175   : > { %1009 = vmatmul.mubr.f32.gmra.mrb[42].mxu1 %v4145_v32  ;;  %v2807_v32 = vpack.c.bf16 %v1753_v29, %v1751_v22  ;;  %v5425_v22 = vld [vmem:[#allocation25_spill] sm:$0xff]  ;;  %v5426_v29 = vld [vmem:[#allocation26_spill] sm:$0xff] }
 0x176   : > { %1014 = vmatprep.mubr.f32.mxu1 %v4156_v39  ;;  %v1756_v39 = vld [vmem:[%s3891_s18 + $0x48] sm:$0xff] }
 0x177   : > { %2808 = vmatpush1.bf16.msra.mxu0 %v2807_v32  ;;  %v5427_v32 = vld [vmem:[#allocation27_spill] sm:$0xff] }
 0x179   : > { %1015 = vmatmul.mubr.f32.gmra.mrb[44].mxu1 %v4165_v44  ;;  %v1758_v44 = vld [vmem:[%s3891_s18 + $0x58] sm:$0xff] }
 0x17a   : > { %1020 = vmatprep.mubr.f32.mxu1 %v4176_v58  ;;  %v2809_v58 = vpack.c.bf16 %v1758_v44, %v1756_v39  ;;  %v1793_v44 = vld [vmem:[%s3891_s18 + $0x170] sm:$0xff] }
 0x17c   : > { %2810 = vmatprep.subr.bf16.mxu0 %v2809_v58 }
 0x17d   : > { %1021 = vmatmul.mubr.f32.gmra.mrb[46].mxu1 %v4185_v61  ;;  %v1755_v61 = vld [vmem:[%s3891_s18 + $0x40] sm:$0xff] }
 0x17e   : > { %1026 = vmatprep.mubr.f32.mxu1 %v4196_v8  ;;  %v1757_v8 = vld [vmem:[%s3891_s18 + $0x50] sm:$0xff] }
 0x181   : > { %1027 = vmatmul.mubr.f32.gmra.mrb[48].mxu1 %v4205_v15  ;;  %v2811_v15 = vpack.c.bf16 %v1757_v8, %v1755_v61  ;;  %v5428_v61 = vld [vmem:[#allocation28_spill] sm:$0xff]  ;;  %v5429_v8 = vld [vmem:[#allocation29_spill] sm:$0xff] }
 0x182   : > { %1032 = vmatprep.mubr.f32.mxu1 %v4216_v26  ;;  %v1760_v26 = vld [vmem:[%s3891_s18 + $0x68] sm:$0xff] }
 0x183   : > { %2812 = vmatpush1.bf16.msra.mxu0 %v2811_v15  ;;  %v1796_v15 = vld [vmem:[%s3891_s18 + $0x188] sm:$0xff] }
 0x185   : > { %1033 = vmatmul.mubr.f32.gmra.mrb[50].mxu1 %v4225_v31  ;;  %v1762_v31 = vld [vmem:[%s3891_s18 + $0x78] sm:$0xff] }
 0x186   : > { %1038 = vmatprep.mubr.f32.mxu1 %v4236_v48  ;;  %v2813_v34 = vpack.c.bf16 %v1762_v31, %v1760_v26  ;;  %v1759_v48 = vld [vmem:[%s3891_s18 + $0x60] sm:$0xff]  ;;  %v1798_v26 = vld [vmem:[%s3891_s18 + $0x198] sm:$0xff] }
 0x187   : > { %v2849_v31 = vpack.c.bf16 %v1798_v26, %v1796_v15 }
 0x188   : > { %2814 = vmatprep.subr.bf16.mxu0 %v2813_v34  ;;  %v5430_v34 = vld [vmem:[#allocation30_spill] sm:$0xff] }
 0x189   : > { %1039 = vmatmul.mubr.f32.gmra.mrb[52].mxu1 %v4245_v52  ;;  %v2815_v52 = vpack.c.bf16 %v1761_v49, %v1759_v48  ;;  %v5431_v48 = vld [vmem:[#allocation31_spill] sm:$0xff]  ;;  %v1795_v49 = vld [vmem:[%s3891_s18 + $0x180] sm:$0xff] }
 0x18a   : > { %1044 = vmatprep.mubr.f32.mxu1 %v4256_v7  ;;  %v1764_v7 = vld [vmem:[%s3891_s18 + $0x88] sm:$0xff] }
 0x18b   : > { %2816 = vmatpush1.bf16.msra.mxu0 %v2815_v52  ;;  %v1797_v52 = vld [vmem:[%s3891_s18 + $0x190] sm:$0xff] }
 0x18d   : > { %1045 = vmatmul.mubr.f32.gmra.mrb[54].mxu1 %v4265_v18  ;;  %v1766_v18 = vld [vmem:[%s3891_s18 + $0x98] sm:$0xff] }
 0x18e   : > { %1050 = vmatprep.mubr.f32.mxu1 %v4276_v37  ;;  %v2817_v60 = vpack.c.bf16 %v1766_v18, %v1764_v7  ;;  %v2819_v37 = vpack.c.bf16 %v1765_v41, %v1763_v36  ;;  %v2851_v7 = vpack.c.bf16 %v1797_v52, %v1795_v49  ;;  %v5432_v18 = vld [vmem:[#allocation32_spill] sm:$0xff] }
 0x18f   : > { %v1802_v36 = vld [vmem:[%s3891_s18 + $0x1b8] sm:$0xff] }
 0x190   : > { %2818 = vmatprep.subr.bf16.mxu0 %v2817_v60  ;;  %v1800_v60 = vld [vmem:[%s3891_s18 + $0x1a8] sm:$0xff] }
 0x191   : > { %1051 = vmatmul.mubr.f32.gmra.mrb[56].mxu1 %v4285_v50  ;;  %2820 = vmatpush1.bf16.msra.mxu0 %v2819_v37  ;;  %v1768_v50 = vld [vmem:[%s3891_s18 + $0xa8] sm:$0xff]  ;;  %v2853_v41 = vpack.c.bf16 %v1802_v36, %v1800_v60  ;;  %v1799_v37 = vld [vmem:[%s3891_s18 + $0x1a0] sm:$0xff] }
 0x192   : > { %1056 = vmatprep.mubr.f32.mxu1 %v4296_v21  ;;  %v2821_v21 = vpack.c.bf16 %v1770_v4, %v1768_v50  ;;  %v1801_v50 = vld [vmem:[%s3891_s18 + $0x1b0] sm:$0xff] }
 0x193   : > { %v2855_v4 = vpack.c.bf16 %v1801_v50, %v1799_v37 }
 0x194   : > { %2822 = vmatprep.subr.bf16.mxu0 %v2821_v21  ;;  %v1806_v21 = vld [vmem:[%s3891_s18 + $0x1d8] sm:$0xff] }
 0x195   : > { %1057 = vmatmul.mubr.f32.gmra.mrb[58].mxu1 %v4305_v28  ;;  %2824 = vmatpush1.bf16.msra.mxu0 %v2823_v51  ;;  %v1774_v28 = vld [vmem:[%s3891_s18 + $0xd8] sm:$0xff]  ;;  %v1808_v51 = vld [vmem:[%s3891_s18 + $0x1e8] sm:$0xff] }
 0x196   : > { %1062 = vmatprep.mubr.f32.mxu1 %v4316_v55  ;;  %v1772_v55 = vld [vmem:[%s3891_s18 + $0xc8] sm:$0xff] }
 0x199   : > { %1063 = vmatmul.mubr.f32.gmra.mrb[60].mxu1 %v4325_v5  ;;  %v1771_v5 = vld [vmem:[%s3891_s18 + $0xc0] sm:$0xff] }
 0x19a   : > { %1068 = vmatprep.mubr.f32.mxu1 %v4334_v24  ;;  %v2825_v24 = vpack.c.bf16 %v1774_v28, %v1772_v55  ;;  %v1810_v55 = vld [vmem:[%s3891_s18 + $0x1f8] sm:$0xff] }
 0x19b   : > { %v2861_v28 = vpack.c.bf16 %v1810_v55, %v1808_v51 }
 0x19c   : > { %2826 = vmatprep.subr.bf16.mxu0 %v2825_v24  ;;  %v1807_v24 = vld [vmem:[%s3891_s18 + $0x1e0] sm:$0xff] }
 0x19d   : > { %1069 = vmatmul.mubr.f32.gmra.mrb[62].mxu1 %v4343_v25  ;;  %v2827_v25 = vpack.c.bf16 %v1773_v45, %v1771_v5  ;;  %v1809_v5 = vld [vmem:[%s3891_s18 + $0x1f0] sm:$0xff] }
 0x19e   : > { %1074 = vmatprep.mubr.f32.mxu1 %v3993_v42  ;;  %v1776_v42 = vld [vmem:[%s3891_s18 + $0xe8] sm:$0xff]  ;;  %v2863_v45 = vpack.c.bf16 %v1809_v5, %v1807_v24 }
 0x19f   : > { %2828 = vmatpush1.bf16.msra.mxu0 %v2827_v25 }
 0x1a1   : > { %1075 = vmatmul.mubr.f32.gmra.mrb[64].mxu1 %v4043_v43  ;;  %v1778_v43 = vld [vmem:[%s3891_s18 + $0xf8] sm:$0xff] }
 0x1a2   : > { %1080 = vmatprep.mubr.f32.mxu1 %v4049_v46  ;;  %v2829_v46 = vpack.c.bf16 %v1778_v43, %v1776_v42  ;;  %v4480_v43 = vld [vmem:[%s3889_s6] sm:$0xf] }
 0x1a4   : > { %2830 = vmatprep.subr.bf16.mxu0 %v2829_v46 }
 0x1a5   : > { %1081 = vmatmul.mubr.f32.gmra.mrb[66].mxu1 %v4062_v54  ;;  %v1775_v54 = vld [vmem:[%s3891_s18 + $0xe0] sm:$0xff] }
 0x1a6   : > { %1086 = vmatprep.mubr.f32.mxu1 %v4068_v57  ;;  %v2831_v56 = vpack.c.bf16 %v1777_v53, %v1775_v54  ;;  %v1780_v57 = vld [vmem:[%s3891_s18 + $0x108] sm:$0xff] }
 0x1a8   : > { %2832 = vmatpush1.bf16.msra.mxu0 %v2831_v56 }
 0x1a9   : > { %1087 = vmatmul.mubr.f32.gmra.mrb[68].mxu1 %v4082_v0  ;;  %v1782_v0 = vld [vmem:[%s3891_s18 + $0x118] sm:$0xff] }
 0x1aa   : > { %1092 = vmatprep.mubr.f32.mxu1 %v4088_v3  ;;  %v2833_v3 = vpack.c.bf16 %v1782_v0, %v1780_v57 }
 0x1ac   : > { %2834 = vmatprep.subr.bf16.mxu0 %v2833_v3 }
 0x1ad   : > { %1093 = vmatmul.mubr.f32.gmra.mrb[70].mxu1 %v4102_v10  ;;  %2836 = vmatpush1.bf16.msra.mxu0 %v2835_v9  ;;  %v1784_v10 = vld [vmem:[%s3891_s18 + $0x128] sm:$0xff] }
 0x1ae   : > { %1098 = vmatprep.mubr.f32.mxu1 %v4108_v13  ;;  %v1786_v13 = vld [vmem:[%s3891_s18 + $0x138] sm:$0xff] }
 0x1b1   : > { %1099 = vmatmul.mubr.f32.gmra.mrb[72].mxu1 %v4122_v20  ;;  %v2837_v20 = vpack.c.bf16 %v1786_v13, %v1784_v10 }
 0x1b2   : > { %1104 = vmatprep.mubr.f32.mxu1 %v4128_v23  ;;  %v1783_v23 = vld [vmem:[%s3891_s18 + $0x120] sm:$0xff] }
 0x1b3   : > { %2838 = vmatprep.subr.bf16.mxu0 %v2837_v20 }
 0x1b5   : > { %1105 = vmatmul.mubr.f32.gmra.mrb[74].mxu1 %v4142_v30  ;;  %v2839_v30 = vpack.c.bf16 %v1785_v12, %v1783_v23 }
 0x1b6   : > { %1110 = vmatprep.mubr.f32.mxu1 %v4148_v33  ;;  %v1788_v33 = vld [vmem:[%s3891_s18 + $0x148] sm:$0xff] }
 0x1b7   : > { %2840 = vmatpush1.bf16.msra.mxu0 %v2839_v30 }
 0x1b9   : > { %1111 = vmatmul.mubr.f32.gmra.mrb[76].mxu1 %v4162_v40  ;;  %v1790_v40 = vld [vmem:[%s3891_s18 + $0x158] sm:$0xff] }
 0x1ba   : > { %1116 = vmatprep.mubr.f32.mxu1 %v4168_v47  ;;  %v2841_v47 = vpack.c.bf16 %v1790_v40, %v1788_v33 }
 0x1bc   : > { %2842 = vmatprep.subr.bf16.mxu0 %v2841_v47 }
 0x1bd   : > { %1117 = vmatmul.mubr.f32.gmra.mrb[78].mxu1 %v4182_v59  ;;  %v1787_v59 = vld [vmem:[%s3891_s18 + $0x140] sm:$0xff] }
 0x1be   : > { %1122 = vmatprep.mubr.f32.mxu1 %v4188_v62  ;;  %v2843_v62 = vpack.c.bf16 %v1789_v19, %v1787_v59 }
 0x1c0   : > { %2844 = vmatpush1.bf16.msra.mxu0 %v2843_v62 }
 0x1c1   : > { %1123 = vmatmul.mubr.f32.gmra.mrb[80].mxu1 %v4202_v11  ;;  %v1792_v11 = vld [vmem:[%s3891_s18 + $0x168] sm:$0xff] }
 0x1c2   : > { %1128 = vmatprep.mubr.f32.mxu1 %v4208_v16  ;;  %v1794_v16 = vld [vmem:[%s3891_s18 + $0x178] sm:$0xff] }
 0x1c3   : > { %v2845_v39 = vpack.c.bf16 %v1794_v16, %v1792_v11 }
 0x1c5   : > { %1129 = vmatmul.mubr.f32.gmra.mrb[82].mxu1 %v4222_v27  ;;  %v1791_v27 = vld [vmem:[%s3891_s18 + $0x160] sm:$0xff]  ;;  %2846 = vmatprep.subr.bf16.mxu0 %v2845_v39 }
 0x1c6   : > { %1134 = vmatprep.mubr.f32.mxu1 %v5425_v22  ;;  %v2847_v58 = vpack.c.bf16 %v1793_v44, %v1791_v27 }
 0x1c8   : > { %2848 = vmatpush1.bf16.msra.mxu0 %v2847_v58 }
 0x1c9   : > { %1135 = vmatmul.mubr.f32.gmra.mrb[84].mxu1 %v5426_v29  ;;  %2850 = vmatprep.subr.bf16.mxu0 %v2849_v31 }
 0x1ca   : > { %1140 = vmatprep.mubr.f32.mxu1 %v5427_v32 }
 0x1cc   : > { %2852 = vmatpush1.bf16.msra.mxu0 %v2851_v7 }
 0x1cd   : > { %1141 = vmatmul.mubr.f32.gmra.mrb[86].mxu1 %v5428_v61  ;;  %2854 = vmatprep.subr.bf16.mxu0 %v2853_v41 }
 0x1ce   : > { %1146 = vmatprep.mubr.f32.mxu1 %v5429_v8 }
 0x1d0   : > { %2856 = vmatpush1.bf16.msra.mxu0 %v2855_v4 }
 0x1d1   : > { %1147 = vmatmul.mubr.f32.gmra.mrb[88].mxu1 %v5430_v34 }
 0x1d2   : > { %1152 = vmatprep.mubr.f32.mxu1 %v5431_v48 }
 0x1d5   : > { %1153 = vmatmul.mubr.f32.gmra.mrb[90].mxu1 %v5432_v18 }
 0x1d6   : > { %1158 = vmatprep.mubr.f32.mxu1 %v4308_v35  ;;  %v1804_v35 = vld [vmem:[%s3891_s18 + $0x1c8] sm:$0xff] }
 0x1d7   : > { %v2857_v17 = vpack.c.bf16 %v1806_v21, %v1804_v35 }
 0x1d9   : > { %1159 = vmatmul.mubr.f32.gmra.mrb[92].mxu1 %v4322_v1  ;;  %v1803_v1 = vld [vmem:[%s3891_s18 + $0x1c0] sm:$0xff]  ;;  %2858 = vmatprep.subr.bf16.mxu0 %v2857_v17 }
 0x1da   : > { %1164 = vmatprep.mubr.f32.mxu1 %v4328_v6  ;;  %v1805_v6 = vld [vmem:[%s3891_s18 + $0x1d0] sm:$0xff] }
 0x1db   : > { %v2859_v38 = vpack.c.bf16 %v1805_v6, %v1803_v1 }
 0x1dd   : > { %1165 = vmatmul.mubr.f32.gmra.mrb[94].mxu1 %v4340_v14  ;;  %v637_v14 = vlaneseq  ;;  %2860 = vmatpush1.bf16.msra.mxu0 %v2859_v38 }
 0x1de   : > { %2862 = vmatprep.subr.bf16.mxu0 %v2861_v28 }
 0x1df   : > { %v4476_v25 = vshrl.u32 %v637_v14, 7 }
 0x1e1   : > { %5433 = vst [vmem:[#allocation25_spill] sm:$0xff] %v4476_v25  ;;  %2864 = vmatpush1.bf16.msra.mxu0 %v2863_v45  ;;  %v5349_v42 = vsub.s32 0, %v4476_v25  ;;  %v5348_v46 = vsub.s32 1, %v4476_v25 }
 0x1e3   : > { %v4486_v54 = vrot.slane %v4480_v43, %v5349_v42  ;;  %v4491_v53 = vrot.slane %v4480_v43, %v5348_v46 }
 0x1f4   : > { %v819_v56 = vpop.f32.mrb[0].mxu1  ;;  %v723_v57 = vpop.f32.mrb[0].mxu0 }
 0x1f5   : > { %v4494_v0 = vadd.f32 %v819_v56, %v4486_v54  ;;  %v821_v3 = vpop.f32.mrb[1].mxu1  ;;  %v725_v63 = vpop.f32.mrb[1].mxu0  ;;  %v4538_v7 = vadd.f32 %v723_v57, %v4486_v54 }
 0x1f6   : > { %v4497_v2 = vadd.f32 %v821_v3, %v4491_v53  ;;  %v4551_v50 = vadd.f32 %v725_v63, %v4491_v53 }
 0x1f7   : > { %5434 = vst [vmem:[#allocation26_spill] sm:$0xff] %v4494_v0  ;;  %v2594_v35 = vmul.f32 -1.442695, %v4538_v7 }
 0x1f8   : > { %5435 = vst [vmem:[#allocation27_spill] sm:$0xff] %v4497_v2  ;;  %v825_v9 = vpop.f32.mrb[2].mxu1  ;;  %v729_v10 = vpop.f32.mrb[2].mxu0  ;;  %v2595_v51 = vmul.f32 -1.442695, %v4551_v50 }
 0x1f9   : > { %v4500_v13 = vadd.f32 %v825_v9, %v4486_v54  ;;  %v827_v20 = vpop.f32.mrb[3].mxu1  ;;  %v731_v23 = vpop.f32.mrb[3].mxu0  ;;  %v4560_v6 = vadd.f32 %v729_v10, %v4486_v54  ;;  %3021 = vpow2.f32 %v2594_v35  ;;  %v2626_v9 = vmul.f32 -1.442695, %v4494_v0 }
 0x1fa   : > { %v4503_v12 = vadd.f32 %v827_v20, %v4491_v53  ;;  %v4569_v55 = vadd.f32 %v731_v23, %v4491_v53  ;;  %3023 = vpow2.f32 %v2595_v51 }
 0x1fb   : > { %5436 = vst [vmem:[#allocation28_spill] sm:$0xff] %v4500_v13  ;;  %v2596_v57 = vmul.f32 -1.442695, %v4560_v6 }
 0x1fc   : > { %5437 = vst [vmem:[#allocation29_spill] sm:$0xff] %v4503_v12  ;;  %v831_v30 = vpop.f32.mrb[4].mxu1  ;;  %v735_v33 = vpop.f32.mrb[4].mxu0  ;;  %v2597_v20 = vmul.f32 -1.442695, %v4569_v55 }
 0x1fd   : > { %v4506_v40 = vadd.f32 %v831_v30, %v4486_v54  ;;  %v833_v47 = vpop.f32.mrb[5].mxu1  ;;  %v737_v59 = vpop.f32.mrb[5].mxu0  ;;  %v4580_v3 = vadd.f32 %v735_v33, %v4486_v54  ;;  %3025 = vpow2.f32 %v2596_v57 }
 0x1fe   : > { %v4509_v19 = vadd.f32 %v833_v47, %v4491_v53  ;;  %v4587_v10 = vadd.f32 %v737_v59, %v4491_v53  ;;  %v2627_v47 = vmul.f32 -1.442695, %v4497_v2  ;;  %3027 = vpow2.f32 %v2626_v9 }
 0x1ff   : > { %5438 = vst [vmem:[#allocation30_spill] sm:$0xff] %v4506_v40  ;;  %3029 = vpow2.f32 %v2597_v20 }
 0x200   : > { %5439 = vst [vmem:[#allocation31_spill] sm:$0xff] %v4509_v19  ;;  %v837_v22 = vpop.f32.mrb[6].mxu1  ;;  %v741_v62 = vpop.f32.mrb[6].mxu0  ;;  %3031 = vpow2.f32 %v2627_v47 }
 0x201   : > { %v4512_v29 = vadd.f32 %v837_v22, %v4486_v54  ;;  %v839_v11 = vpop.f32.mrb[7].mxu1  ;;  %v743_v16 = vpop.f32.mrb[7].mxu0 }
 0x202   : > { %v4515_v32 = vadd.f32 %v839_v11, %v4491_v53 }
 0x203   : > { %5440 = vst [vmem:[#allocation32_spill] sm:$0xff] %v4512_v29 }
 0x204   : > { %v843_v39 = vpop.f32.mrb[8].mxu1  ;;  %v4520_v58 = vpop.f32.mrb[8].mxu0 }
 0x205   : > { %v4518_v27 = vadd.f32 %v843_v39, %v4486_v54  ;;  %v845_v44 = vpop.f32.mrb[9].mxu1  ;;  %v4525_v8 = vpop.f32.mrb[9].mxu0  ;;  %v2598_v39 = vmul.f32 -1.442695, %v4580_v3  ;;  %v4625_v9 = vadd.f32 %v4520_v58, %v4486_v54 }
 0x206   : > { %v4523_v61 = vadd.f32 %v845_v44, %v4491_v53  ;;  %v2599_v44 = vmul.f32 -1.442695, %v4587_v10 }
 0x207   : > { %3033 = vpow2.f32 %v2598_v39  ;;  %v2631_v39 = vmul.f32 -1.442695, %v4509_v19 }
 0x208   : > { %v849_v15 = vpop.f32.mrb[10].mxu1  ;;  %v4530_v34 = vpop.f32.mrb[10].mxu0  ;;  %3035 = vpow2.f32 %v2599_v44 }
 0x209   : > { %v4528_v26 = vadd.f32 %v849_v15, %v4486_v54  ;;  %v851_v31 = vpop.f32.mrb[11].mxu1  ;;  %v4535_v49 = vpop.f32.mrb[11].mxu0  ;;  %v4604_v15 = vadd.f32 %v741_v62, %v4486_v54  ;;  %v4642_v46 = vadd.f32 %v4530_v34, %v4486_v54 }
 0x20a   : > { %v4533_v48 = vadd.f32 %v851_v31, %v4491_v53  ;;  %v2628_v31 = vmul.f32 -1.442695, %v4500_v13  ;;  %v647_v13 = vsub.s32 2, %v4476_v25 }
 0x20b   : > { %v2600_v57 = vmul.f32 -1.442695, %v4604_v15 }
 0x20c   : > { %v855_v52 = vpop.f32.mrb[12].mxu1  ;;  %v4543_v36 = vpop.f32.mrb[12].mxu0  ;;  %3037 = vpow2.f32 %v2628_v31 }
 0x20d   : > { %v4541_v18 = vadd.f32 %v855_v52, %v4486_v54  ;;  %v857_v60 = vpop.f32.mrb[13].mxu1  ;;  %v4548_v37 = vpop.f32.mrb[13].mxu0  ;;  %v4608_v52 = vadd.f32 %v743_v16, %v4491_v53 }
 0x20e   : > { %v4546_v41 = vadd.f32 %v857_v60, %v4491_v53  ;;  %v3022_v16 = vpop.eup %3021 }
 0x20f   : > { %v2601_v20 = vmul.f32 -1.442695, %v4608_v52  ;;  %v3024_v58 = vpop.eup %3023  ;;  %v1363_v31 = vadd.f32 1.0, %v3022_v16 }
 0x210   : > { %v861_v4 = vpop.f32.mrb[14].mxu1  ;;  %v4557_v1 = vpop.f32.mrb[14].mxu0  ;;  %v1364_v34 = vadd.f32 1.0, %v3024_v58 }
 0x211   : > { %v4555_v21 = vadd.f32 %v861_v4, %v4486_v54  ;;  %v863_v17 = vpop.f32.mrb[15].mxu1  ;;  %v4565_v14 = vpop.f32.mrb[15].mxu0  ;;  %v2629_v4 = vmul.f32 -1.442695, %v4503_v12 }
 0x212   : > { %v4563_v38 = vadd.f32 %v863_v17, %v4491_v53  ;;  %v3026_v42 = vpop.eup %3025 }
 0x213   : > { %5441 = vst [vmem:[#allocation33_spill] sm:$0xff] %v4555_v21  ;;  %3039 = vpow2.f32 %v2629_v4  ;;  %v2602_v4 = vmul.f32 -1.442695, %v4625_v9  ;;  %v1365_v19 = vadd.f32 1.0, %v3026_v42 }
 0x214   : > { %5442 = vst [vmem:[#allocation34_spill] sm:$0xff] %v4563_v38  ;;  %v867_v28 = vpop.f32.mrb[16].mxu1  ;;  %v4571_v24 = vpop.f32.mrb[16].mxu0 }
 0x215   : > { %v4574_v5 = vadd.f32 %v867_v28, %v4486_v54  ;;  %v869_v45 = vpop.f32.mrb[17].mxu1  ;;  %v4576_v56 = vpop.f32.mrb[17].mxu0  ;;  %v2630_v28 = vmul.f32 -1.442695, %v4506_v40 }
 0x216   : > { %v4583_v63 = vadd.f32 %v869_v45, %v4491_v53 }
 0x217   : > { %5443 = vst [vmem:[#allocation35_spill] sm:$0xff] %v4574_v5  ;;  %3041 = vpow2.f32 %v2630_v28 }
 0x218   : > { %5444 = vst [vmem:[#allocation36_spill] sm:$0xff] %v4583_v63  ;;  %v873_v23 = vpop.f32.mrb[18].mxu1  ;;  %v4590_v30 = vpop.f32.mrb[18].mxu0  ;;  %3043 = vpow2.f32 %v2600_v57 }
 0x219   : > { %v4594_v22 = vadd.f32 %v873_v23, %v4486_v54  ;;  %v875_v33 = vpop.f32.mrb[19].mxu1  ;;  %v4596_v11 = vpop.f32.mrb[19].mxu0  ;;  %v4630_v23 = vadd.f32 %v4525_v8, %v4491_v53  ;;  %3045 = vpow2.f32 %v2601_v20  ;;  %v2604_v20 = vmul.f32 -1.442695, %v4642_v46 }
 0x21a   : > { %v4600_v59 = vadd.f32 %v875_v33, %v4491_v53  ;;  %3047 = vpow2.f32 %v2631_v39 }
 0x21b   : > { %5445 = vst [vmem:[#allocation37_spill] sm:$0xff] %v4594_v22  ;;  %3049 = vrcp.f32 %v1363_v31 }
 0x21c   : > { %5446 = vst [vmem:[#allocation38_spill] sm:$0xff] %v4600_v59  ;;  %v879_v60 = vpop.f32.mrb[20].mxu1  ;;  %v4614_v51 = vpop.f32.mrb[20].mxu0  ;;  %3051 = vpow2.f32 %v2602_v4 }
 0x21d   : > { %v4612_v35 = vadd.f32 %v879_v60, %v4486_v54  ;;  %v881_v17 = vpop.f32.mrb[21].mxu1  ;;  %v4620_v45 = vpop.f32.mrb[21].mxu0 }
 0x21e   : > { %v4618_v62 = vadd.f32 %v881_v17, %v4491_v53 }
 0x21f   : > { %5447 = vst [vmem:[#allocation39_spill] sm:$0xff] %v4612_v35 }
 0x220   : > { %5448 = vst [vmem:[#allocation40_spill] sm:$0xff] %v4618_v62  ;;  %v885_v47 = vpop.f32.mrb[22].mxu1  ;;  %v4632_v33 = vpop.f32.mrb[22].mxu0 }
 0x221   : > { %v4636_v44 = vadd.f32 %v885_v47, %v4486_v54  ;;  %v887_v60 = vpop.f32.mrb[23].mxu1  ;;  %v4638_v17 = vpop.f32.mrb[23].mxu0  ;;  %v2603_v47 = vmul.f32 -1.442695, %v4630_v23 }
 0x222   : > { %v4645_v8 = vadd.f32 %v887_v60, %v4491_v53  ;;  %v4653_v62 = vpop.eup %3027 }
 0x223   : > { %5449 = vst [vmem:[#allocation41_spill] sm:$0xff] %v4636_v44  ;;  %v4651_v44 = vadd.f32 %v4535_v49, %v4491_v53  ;;  %v3030_v35 = vpop.eup %3029  ;;  %3053 = vpow2.f32 %v2603_v47 }
 0x224   : > { %5450 = vst [vmem:[#allocation42_spill] sm:$0xff] %v4645_v8  ;;  %v891_v28 = vpop.f32.mrb[24].mxu1  ;;  %v795_v16 = vpop.f32.mrb[24].mxu0  ;;  %3055 = vrcp.f32 %v1364_v34  ;;  %v1366_v40 = vadd.f32 1.0, %v3030_v35 }
 0x225   : > { %v4656_v60 = vadd.f32 %v891_v28, %v4486_v54  ;;  %v893_v57 = vpop.f32.mrb[25].mxu1  ;;  %v797_v8 = vpop.f32.mrb[25].mxu0  ;;  %v4663_v49 = vadd.f32 %v795_v16, %v4486_v54  ;;  %v2605_v28 = vmul.f32 -1.442695, %v4651_v44  ;;  %3057 = vpow2.f32 %v2604_v20 }
 0x226   : > { %v4660_v59 = vadd.f32 %v893_v57, %v4491_v53  ;;  %v4665_v22 = vpop.eup %3031  ;;  %v4668_v39 = vadd.f32 %v797_v8, %v4491_v53  ;;  %v4673_v57 = vadd.f32 %v4543_v36, %v4486_v54  ;;  %v4682_v8 = vadd.f32 %v4548_v37, %v4491_v53 }
 0x227   : > { %5451 = vst [vmem:[#allocation43_spill] sm:$0xff] %v4656_v60  ;;  %v3034_v58 = vpop.eup %3033  ;;  %3059 = vrcp.f32 %v1365_v19  ;;  %v651_v19 = vsub.s32 3, %v4476_v25  ;;  %v4719_v25 = vadd.f32 %v4565_v14, %v4491_v53 }
 0x228   : > { %5452 = vst [vmem:[#allocation44_spill] sm:$0xff] %v4660_v59  ;;  %v897_v31 = vpop.f32.mrb[26].mxu1  ;;  %v3036_v60 = vpop.eup %3035  ;;  %3061 = vpow2.f32 %v2605_v28  ;;  %v2607_v0 = vmul.f32 -1.442695, %v4682_v8 }
 0x229   : > { %v4676_v16 = vadd.f32 %v897_v31, %v4486_v54  ;;  %v899_v42 = vpop.f32.mrb[27].mxu1  ;;  %v801_v4 = vpop.f32.mrb[26].mxu0  ;;  %v1367_v31 = vadd.f32 1.0, %v3034_v58  ;;  %v1368_v20 = vadd.f32 1.0, %v3036_v60  ;;  %3063 = vrcp.f32 %v1366_v40 }
 0x22a   : > { %v4678_v59 = vpop.eup %3037  ;;  %v4685_v47 = vadd.f32 %v899_v42, %v4491_v53  ;;  %v4688_v35 = vadd.f32 %v801_v4, %v4486_v54  ;;  %v803_v36 = vpop.f32.mrb[27].mxu0  ;;  %v2606_v4 = vmul.f32 -1.442695, %v4673_v57  ;;  %v4706_v60 = vadd.f32 %v4557_v1, %v4486_v54 }
 0x22b   : > { %5453 = vst [vmem:[#allocation45_spill] sm:$0xff] %v4676_v16  ;;  %v4690_v34 = vpop.eup %3039  ;;  %v4693_v16 = vadd.f32 %v803_v36, %v4491_v53  ;;  %3065 = vrcp.f32 %v1367_v31  ;;  %v4731_v14 = vrot.slane %v4480_v43, %v651_v19 }
 0x22c   : > { %5454 = vst [vmem:[#allocation46_spill] sm:$0xff] %v4685_v47  ;;  %5455 = vst [vmem:[#allocation47_spill] sm:$0xff] %v4688_v35  ;;  %v4695_v12 = vpop.eup %3041  ;;  %v903_v37 = vpop.f32.mrb[28].mxu1  ;;  %3067 = vrcp.f32 %v1368_v20  ;;  %v2608_v20 = vmul.f32 -1.442695, %v4706_v60 }
 0x22d   : > { %5456 = vst [vmem:[#allocation48_spill] sm:$0xff] %v4693_v16  ;;  %v3044_v42 = vpop.eup %3043  ;;  %v4700_v47 = vadd.f32 %v903_v37, %v4486_v54  ;;  %v905_v2 = vpop.f32.mrb[29].mxu1  ;;  %3069 = vpow2.f32 %v2606_v4  ;;  %v2609_v4 = vmul.f32 -1.442695, %v4719_v25 }
 0x22e   : > { %v807_v58 = vpop.f32.mrb[28].mxu0  ;;  %v3046_v36 = vpop.eup %3045  ;;  %v4709_v28 = vadd.f32 %v905_v2, %v4491_v53  ;;  %v1369_v2 = vadd.f32 1.0, %v3044_v42  ;;  %3071 = vpow2.f32 %v2607_v0  ;;  %v4746_v0 = vadd.f32 %v4571_v24, %v4486_v54 }
 0x22f   : > { %5457 = vst [vmem:[#allocation49_spill] sm:$0xff] %v4700_v47  ;;  %v4712_v40 = vadd.f32 %v807_v58, %v4486_v54  ;;  %v809_v63 = vpop.f32.mrb[29].mxu0  ;;  %v4714_v37 = vpop.eup %3047  ;;  %v2632_v47 = vmul.f32 -1.442695, %v4512_v29  ;;  %v4725_v58 = vrot.slane %v4480_v43, %v647_v13  ;;  %v1370_v35 = vadd.f32 1.0, %v3046_v36 }
 0x230   : > { %5458 = vst [vmem:[#allocation50_spill] sm:$0xff] %v4709_v28  ;;  %v4722_v5 = vadd.f32 %v809_v63, %v4491_v53  ;;  %v3050_v1 = vpop.eup %3049  ;;  %v909_v28 = vpop.f32.mrb[30].mxu1 }
 0x231   : > { %5459 = vst [vmem:[#allocation51_spill] sm:$0xff] %v4712_v40  ;;  %v813_v40 = vpop.f32.mrb[30].mxu0  ;;  %v3052_v16 = vpop.eup %3051  ;;  %v4728_v31 = vadd.f32 %v909_v28, %v4486_v54  ;;  %3073 = vpow2.f32 %v2632_v47 }
 0x232   : > { %5460 = vst [vmem:[#allocation52_spill] sm:$0xff] %v4722_v5  ;;  %v911_v29 = vpop.f32.mrb[31].mxu1  ;;  %v815_v63 = vpop.f32.mrb[31].mxu0  ;;  %v4738_v13 = vadd.f32 %v813_v40, %v4486_v54  ;;  %3075 = vrcp.f32 %v1369_v2  ;;  %v1371_v19 = vadd.f32 1.0, %v3052_v16 }
 0x233   : > { %5461 = vst [vmem:[#allocation53_spill] sm:$0xff] %v4728_v31  ;;  %v3054_v5 = vpop.eup %3053  ;;  %v4735_v42 = vadd.f32 %v911_v29, %v4491_v53  ;;  %v4742_v28 = vadd.f32 %v815_v63, %v4491_v53  ;;  %3077 = vrcp.f32 %v1370_v35  ;;  %v1395_v63 = vadd.f32 1.0, %v4653_v62 }
 0x234   : > { %5463 = vst [vmem:[#allocation55_spill] sm:$0xff] %v4738_v13  ;;  %v3056_v36 = vpop.eup %3055  ;;  %v980_v31 = vpop.f32.mrb[32].mxu1  ;;  %v1372_v40 = vadd.f32 1.0, %v3054_v5  ;;  %3079 = vpow2.f32 %v2608_v20  ;;  %v4756_v5 = vadd.f32 %v4576_v56, %v4491_v53 }
 0x235   : > { %5462 = vst [vmem:[#allocation54_spill] sm:$0xff] %v4735_v42  ;;  %5464 = vst [vmem:[#allocation56_spill] sm:$0xff] %v4742_v28  ;;  %v3058_v43 = vpop.eup %3057  ;;  %v1555_v42 = vmul.f32 %v3050_v1, %v4538_v7  ;;  %v981_v47 = vadd.f32 %v980_v31, %v4725_v58  ;;  %v982_v13 = vpop.f32.mrb[33].mxu1  ;;  %v1556_v28 = vmul.f32 %v3056_v36, %v4551_v50  ;;  %3081 = vpow2.f32 %v2609_v4 }
 0x236   : > { %v3060_v29 = vpop.eup %3059  ;;  %v983_v16 = vadd.f32 %v982_v13, %v4731_v14  ;;  %v1373_v24 = vadd.f32 1.0, %v3058_v43  ;;  %3083 = vrcp.f32 %v1371_v19  ;;  %v2610_v7 = vmul.f32 -1.442695, %v4746_v0 }
 0x237   : > { %v3062_v38 = vpop.eup %3061  ;;  %v1619_v21 = vmul.f32 %v1555_v42, %v981_v47  ;;  %v1557_v62 = vmul.f32 %v3060_v29, %v4560_v6  ;;  %3085 = vrcp.f32 %v1372_v40  ;;  %v1396_v42 = vadd.f32 1.0, %v4665_v22 }
 0x238   : > { %v3064_v2 = vpop.eup %3063  ;;  %v1620_v35 = vmul.f32 %v1556_v28, %v983_v16  ;;  %v986_v1 = vpop.f32.mrb[34].mxu1  ;;  %v1374_v50 = vadd.f32 1.0, %v3062_v38  ;;  %3087 = vrcp.f32 %v1395_v63  ;;  %v2611_v38 = vmul.f32 -1.442695, %v4756_v5 }
 0x239   : > { %v3066_v31 = vpop.eup %3065  ;;  %v987_v20 = vadd.f32 %v986_v1, %v4725_v58  ;;  %v988_v13 = vpop.f32.mrb[35].mxu1  ;;  %v1558_v4 = vmul.f32 %v3064_v2, %v4569_v55  ;;  %3089 = vrcp.f32 %v1373_v24 }
 0x23a   : > { %v3068_v36 = vpop.eup %3067  ;;  %v989_v43 = vadd.f32 %v988_v13, %v4731_v14  ;;  %1875 = vmatprep.mubr.f32.mxu0 %v1620_v35  ;;  %3091 = vpow2.f32 %v2610_v7  ;;  %v1559_v22 = vmul.f32 %v3066_v31, %v4580_v3  ;;  %v1397_v35 = vadd.f32 1.0, %v4678_v59 }
 0x23b   : > { %v3070_v56 = vpop.eup %3069  ;;  %v1621_v28 = vmul.f32 %v1557_v62, %v987_v20  ;;  %1876 = vmatmul.mubr.f32.vlgmr.msra.gmra.mrb[32].mxu0 %v1619_v21  ;;  %3093 = vrcp.f32 %v1374_v50  ;;  %v1560_v21 = vmul.f32 %v3068_v36, %v4587_v10  ;;  %v1398_v3 = vadd.f32 1.0, %v4690_v34 }
 0x23c   : > { %v3072_v19 = vpop.eup %3071  ;;  %v1375_v6 = vadd.f32 1.0, %v3070_v56  ;;  %v1622_v29 = vmul.f32 %v1558_v4, %v989_v43  ;;  %v992_v40 = vpop.f32.mrb[36].mxu1  ;;  %3095 = vrcp.f32 %v1396_v42  ;;  %v4777_v56 = vadd.f32 %v4590_v30, %v4486_v54 }
 0x23d   : > { %v4764_v47 = vpop.eup %3073  ;;  %v1376_v55 = vadd.f32 1.0, %v3072_v19  ;;  %v993_v63 = vadd.f32 %v992_v40, %v4725_v58  ;;  %v994_v16 = vpop.f32.mrb[37].mxu1 }
 0x23e   : > { %v3076_v2 = vpop.eup %3075  ;;  %v995_v24 = vadd.f32 %v994_v16, %v4731_v14  ;;  %1881 = vmatprep.mubr.f32.mxu0 %v1622_v29  ;;  %3097 = vrcp.f32 %v1375_v6  ;;  %v2612_v16 = vmul.f32 -1.442695, %v4777_v56 }
 0x23f   : > { %v3078_v7 = vpop.eup %3077  ;;  %v1623_v1 = vmul.f32 %v1559_v22, %v993_v63  ;;  %1882 = vmatmul.mubr.f32.gmra.mrb[34].mxu0 %v1621_v28  ;;  %3099 = vpow2.f32 %v2611_v38  ;;  %v1561_v13 = vmul.f32 %v3076_v2, %v4604_v15  ;;  %v4782_v15 = vadd.f32 %v4596_v11, %v4491_v53 }
 0x240   : > { %v3080_v62 = vpop.eup %3079  ;;  %v1624_v31 = vmul.f32 %v1560_v21, %v995_v24  ;;  %v998_v50 = vpop.f32.mrb[38].mxu1  ;;  %3101 = vrcp.f32 %v1376_v55  ;;  %v1562_v59 = vmul.f32 %v3078_v7, %v4608_v52  ;;  %v2633_v52 = vmul.f32 -1.442695, %v4515_v32 }
 0x241   : > { %v3082_v20 = vpop.eup %3081  ;;  %v1377_v10 = vadd.f32 1.0, %v3080_v62  ;;  %v999_v36 = vadd.f32 %v998_v50, %v4725_v58  ;;  %v1000_v42 = vpop.f32.mrb[39].mxu1  ;;  %3103 = vrcp.f32 %v1397_v35  ;;  %v2613_v7 = vmul.f32 -1.442695, %v4782_v15 }
 0x242   : > { %v3084_v4 = vpop.eup %3083  ;;  %v1378_v43 = vadd.f32 1.0, %v3082_v20  ;;  %v1001_v34 = vadd.f32 %v1000_v42, %v4731_v14  ;;  %1887 = vmatprep.mubr.f32.mxu0 %v1624_v31  ;;  %v4802_v62 = vadd.f32 %v4620_v45, %v4491_v53  ;;  %v2635_v20 = vmul.f32 -1.442695, %v4523_v61 }
 0x243   : > { %v3086_v28 = vpop.eup %3085  ;;  %v1625_v19 = vmul.f32 %v1561_v13, %v999_v36  ;;  %1888 = vmatmul.mubr.f32.gmra.mrb[36].mxu0 %v1623_v1  ;;  %3105 = vrcp.f32 %v1377_v10  ;;  %v1563_v40 = vmul.f32 %v3084_v4, %v4625_v9  ;;  %v4795_v9 = vadd.f32 %v4614_v51, %v4486_v54 }
 0x244   : > { %v4784_v6 = vpop.eup %3087  ;;  %v1626_v38 = vmul.f32 %v1562_v59, %v1001_v34  ;;  %v1004_v29 = vpop.f32.mrb[40].mxu1  ;;  %3107 = vrcp.f32 %v1378_v43  ;;  %v1564_v11 = vmul.f32 %v3086_v28, %v4630_v23  ;;  %v2634_v23 = vmul.f32 -1.442695, %v4518_v27 }
 0x245   : > { %v3090_v30 = vpop.eup %3089  ;;  %v1005_v22 = vadd.f32 %v1004_v29, %v4725_v58  ;;  %v1006_v55 = vpop.f32.mrb[41].mxu1  ;;  %3109 = vrcp.f32 %v1398_v3  ;;  %v1399_v42 = vadd.f32 1.0, %v4695_v12  ;;  %v2614_v34 = vmul.f32 -1.442695, %v4795_v9 }
 0x246   : > { %v3092_v63 = vpop.eup %3091  ;;  %v1007_v2 = vadd.f32 %v1006_v55, %v4731_v14  ;;  %1893 = vmatprep.mubr.f32.mxu0 %v1626_v38  ;;  %3111 = vpow2.f32 %v2633_v52  ;;  %v1565_v13 = vmul.f32 %v3090_v30, %v4642_v46  ;;  %v1400_v46 = vadd.f32 1.0, %v4714_v37 }
 0x247   : > { %v3094_v21 = vpop.eup %3093  ;;  %v1379_v24 = vadd.f32 1.0, %v3092_v63  ;;  %v1627_v35 = vmul.f32 %v1563_v40, %v1005_v22  ;;  %1894 = vmatmul.mubr.f32.gmra.mrb[38].mxu0 %v1625_v19  ;;  %v2615_v19 = vmul.f32 -1.442695, %v4802_v62  ;;  %v4818_v29 = vadd.f32 %v4632_v33, %v4486_v54 }
 0x248   : > { %v4797_v1 = vpop.eup %3095  ;;  %v1628_v3 = vmul.f32 %v1564_v11, %v1007_v2  ;;  %v1010_v31 = vpop.f32.mrb[42].mxu1  ;;  %v1566_v4 = vmul.f32 %v3094_v21, %v4651_v44  ;;  %v4824_v55 = vadd.f32 %v4638_v17, %v4491_v53  ;;  %v1401_v11 = vadd.f32 1.0, %v4764_v47 }
 0x249   : > { %v3098_v50 = vpop.eup %3097  ;;  %3113 = vrcp.f32 %v1379_v24  ;;  %v1011_v51 = vadd.f32 %v1010_v31, %v4725_v58  ;;  %v1012_v10 = vpop.f32.mrb[43].mxu1  ;;  %v2616_v17 = vmul.f32 -1.442695, %v4818_v29 }
 0x24a   : > { %v3100_v36 = vpop.eup %3099  ;;  %3115 = vpow2.f32 %v2612_v16  ;;  %v1013_v45 = vadd.f32 %v1012_v10, %v4731_v14  ;;  %1899 = vmatprep.mubr.f32.mxu0 %v1628_v3  ;;  %v1567_v44 = vmul.f32 %v3098_v50, %v4673_v57  ;;  %v2636_v16 = vmul.f32 -1.442695, %v4528_v26 }
 0x24b   : > { %v3102_v59 = vpop.eup %3101  ;;  %v1380_v43 = vadd.f32 1.0, %v3100_v36  ;;  %3117 = vpow2.f32 %v2613_v7  ;;  %v1629_v28 = vmul.f32 %v1565_v13, %v1011_v51  ;;  %1900 = vmatmul.mubr.f32.gmra.mrb[40].mxu0 %v1627_v35  ;;  %v2617_v35 = vmul.f32 -1.442695, %v4824_v55 }
 0x24c   : > { %3119 = vpow2.f32 %v2634_v23  ;;  %v1630_v52 = vmul.f32 %v1566_v4, %v1013_v45  ;;  %v1016_v12 = vpop.f32.mrb[44].mxu1  ;;  %v4813_v38 = vpop.eup %3103  ;;  %v1568_v37 = vmul.f32 %v3102_v59, %v4682_v8 }
 0x24d   : > { %3121 = vrcp.f32 %v1380_v43  ;;  %v1017_v30 = vadd.f32 %v1016_v12, %v4725_v58  ;;  %v1018_v40 = vpop.f32.mrb[45].mxu1  ;;  %v3106_v22 = vpop.eup %3105 }
 0x24e   : > { %3123 = vpow2.f32 %v2635_v20  ;;  %v1019_v63 = vadd.f32 %v1018_v40, %v4731_v14  ;;  %1905 = vmatprep.mubr.f32.mxu0 %v1630_v52  ;;  %v3108_v57 = vpop.eup %3107  ;;  %v1569_v53 = vmul.f32 %v3106_v22, %v4706_v60  ;;  %v2637_v60 = vmul.f32 -1.442695, %v4533_v48 }
 0x24f   : > { %3125 = vpow2.f32 %v2614_v34  ;;  %v1631_v54 = vmul.f32 %v1567_v44, %v1017_v30  ;;  %1906 = vmatmul.mubr.f32.gmra.mrb[42].mxu0 %v1629_v28  ;;  %v4828_v33 = vpop.eup %3109  ;;  %v1570_v47 = vmul.f32 %v3108_v57, %v4719_v25  ;;  %v2638_v28 = vmul.f32 -1.442695, %v4541_v18 }
 0x250   : > { %3127 = vpow2.f32 %v2615_v19  ;;  %v1632_v2 = vmul.f32 %v1568_v37, %v1019_v63  ;;  %v1022_v8 = vpop.f32.mrb[46].mxu1  ;;  %v3112_v7 = vpop.eup %3111  ;;  %v2639_v40 = vmul.f32 -1.442695, %v4546_v41 }
 0x251   : > { %3129 = vrcp.f32 %v1399_v42  ;;  %v1023_v21 = vadd.f32 %v1022_v8, %v4725_v58  ;;  %v1024_v24 = vpop.f32.mrb[47].mxu1  ;;  %v1402_v45 = vadd.f32 1.0, %v3112_v7  ;;  %v2618_v8 = vmul.f32 -1.442695, %v4663_v49 }
 0x252   : > { %3131 = vrcp.f32 %v1400_v46  ;;  %v1025_v23 = vadd.f32 %v1024_v24, %v4731_v14  ;;  %1911 = vmatprep.mubr.f32.mxu0 %v1632_v2 }
 0x253   : > { %v3114_v3 = vpop.eup %3113  ;;  %3133 = vrcp.f32 %v1401_v11  ;;  %v1633_v31 = vmul.f32 %v1569_v53, %v1023_v21  ;;  %1912 = vmatmul.mubr.f32.gmra.mrb[44].mxu0 %v1631_v54 }
 0x254   : > { %v3116_v50 = vpop.eup %3115  ;;  %3135 = vpow2.f32 %v2636_v16  ;;  %v1634_v20 = vmul.f32 %v1570_v47, %v1025_v23  ;;  %v1028_v13 = vpop.f32.mrb[48].mxu1  ;;  %v1571_v10 = vmul.f32 %v3114_v3, %v4746_v0  ;;  %v2619_v47 = vmul.f32 -1.442695, %v4668_v39 }
 0x255   : > { %v3118_v51 = vpop.eup %3117  ;;  %v1381_v36 = vadd.f32 1.0, %v3116_v50  ;;  %3137 = vpow2.f32 %v2616_v17  ;;  %v1029_v25 = vadd.f32 %v1028_v13, %v4725_v58  ;;  %v1030_v42 = vpop.f32.mrb[49].mxu1 }
 0x256   : > { %v3120_v4 = vpop.eup %3119  ;;  %v1382_v59 = vadd.f32 1.0, %v3118_v51  ;;  %3139 = vpow2.f32 %v2617_v35  ;;  %v1031_v43 = vadd.f32 %v1030_v42, %v4731_v14  ;;  %1917 = vmatprep.mubr.f32.mxu0 %v1634_v20 }
 0x257   : > { %v3122_v34 = vpop.eup %3121  ;;  %3141 = vrcp.f32 %v1381_v36  ;;  %v1635_v46 = vmul.f32 %v1571_v10, %v1029_v25  ;;  %1918 = vmatmul.mubr.f32.gmra.mrb[46].mxu0 %v1633_v31  ;;  %v1403_v57 = vadd.f32 1.0, %v3120_v4  ;;  %v5465_v31 = vld [vmem:[#allocation33_spill] sm:$0xff]  ;;  %v5466_v10 = vld [vmem:[#allocation34_spill] sm:$0xff] }
 0x258   : > { %v3124_v19 = vpop.eup %3123  ;;  %v1572_v0 = vmul.f32 %v3122_v34, %v4756_v5  ;;  %3143 = vrcp.f32 %v1382_v59  ;;  %v1034_v52 = vpop.f32.mrb[50].mxu1  ;;  %v2640_v50 = vmul.f32 -1.442695, %v5465_v31  ;;  %v2641_v36 = vmul.f32 -1.442695, %v5466_v10 }
 0x259   : > { %v3126_v12 = vpop.eup %3125  ;;  %3145 = vpow2.f32 %v2637_v60  ;;  %v1036_v44 = vpop.f32.mrb[51].mxu1  ;;  %v1404_v16 = vadd.f32 1.0, %v3124_v19  ;;  %v1035_v35 = vadd.f32 %v1034_v52, %v4725_v58 }
 0x25a   : > { %v3128_v30 = vpop.eup %3127  ;;  %3147 = vrcp.f32 %v1402_v45  ;;  %v1383_v22 = vadd.f32 1.0, %v3126_v12  ;;  %v1636_v37 = vmul.f32 %v1572_v0, %v1031_v43  ;;  %v1037_v20 = vadd.f32 %v1036_v44, %v4731_v14  ;;  %v5467_v43 = vld [vmem:[#allocation47_spill] sm:$0xff]  ;;  %v5468_v0 = vld [vmem:[#allocation48_spill] sm:$0xff] }
 0x25b   : > { %v4844_v63 = vpop.eup %3129  ;;  %3149 = vpow2.f32 %v2638_v28  ;;  %v1384_v11 = vadd.f32 1.0, %v3128_v30  ;;  %v2620_v34 = vmul.f32 -1.442695, %v5467_v43  ;;  %v2621_v52 = vmul.f32 -1.442695, %v5468_v0 }
 0x25c   : > { %v4846_v54 = vpop.eup %3131  ;;  %3151 = vrcp.f32 %v1383_v22  ;;  %1923 = vmatprep.mubr.f32.mxu0 %v1636_v37  ;;  %v1040_v5 = vpop.f32.mrb[52].mxu1 }
 0x25d   : > { %v4848_v2 = vpop.eup %3133  ;;  %3153 = vrcp.f32 %v1384_v11  ;;  %1924 = vmatmul.mubr.f32.gmra.mrb[48].mxu0 %v1635_v46  ;;  %v1042_v53 = vpop.f32.mrb[53].mxu1  ;;  %v5470_v11 = vld [vmem:[#allocation52_spill] sm:$0xff] }
 0x25e   : > { %v3136_v17 = vpop.eup %3135  ;;  %3155 = vpow2.f32 %v2639_v40  ;;  %v1043_v22 = vadd.f32 %v1042_v53, %v4731_v14 }
 0x25f   : > { %v3138_v21 = vpop.eup %3137  ;;  %3157 = vrcp.f32 %v1403_v57  ;;  %v1405_v4 = vadd.f32 1.0, %v3136_v17 }
 0x260   : > { %v3140_v24 = vpop.eup %3139  ;;  %3159 = vrcp.f32 %v1404_v16  ;;  %v1385_v7 = vadd.f32 1.0, %v3138_v21  ;;  %v1046_v23 = vpop.f32.mrb[54].mxu1  ;;  %v2623_v16 = vmul.f32 -1.442695, %v5470_v11 }
 0x261   : > { %v3142_v3 = vpop.eup %3141  ;;  %v1386_v60 = vadd.f32 1.0, %v3140_v24  ;;  %3161 = vpow2.f32 %v2618_v8  ;;  %v1048_v13 = vpop.f32.mrb[55].mxu1 }
 0x262   : > { %v3144_v51 = vpop.eup %3143  ;;  %v1573_v25 = vmul.f32 %v3142_v3, %v4777_v56  ;;  %3163 = vrcp.f32 %v1385_v7  ;;  %v1041_v56 = vadd.f32 %v1040_v5, %v4725_v58  ;;  %v5471_v7 = vld [vmem:[#allocation55_spill] sm:$0xff] }
 0x263   : > { %v3146_v42 = vpop.eup %3145  ;;  %v1574_v45 = vmul.f32 %v3144_v51, %v4782_v15  ;;  %3165 = vrcp.f32 %v1386_v60  ;;  %v5469_v15 = vld [vmem:[#allocation51_spill] sm:$0xff]  ;;  %v2624_v53 = vmul.f32 -1.442695, %v5471_v7  ;;  %v5472_v60 = vld [vmem:[#allocation56_spill] sm:$0xff] }
 0x264   : > { %v4858_v59 = vpop.eup %3147  ;;  %3167 = vpow2.f32 %v2619_v47  ;;  %v1637_v28 = vmul.f32 %v1573_v25, %v1035_v35  ;;  %v4861_v46 = vpop.f32.mrb[56].mxu1  ;;  %v2622_v40 = vmul.f32 -1.442695, %v5469_v15  ;;  %v1406_v17 = vadd.f32 1.0, %v3146_v42 }
 0x265   : > { %v3150_v19 = vpop.eup %3149  ;;  %3169 = vpow2.f32 %v2640_v50  ;;  %v1638_v12 = vmul.f32 %v1574_v45, %v1037_v20  ;;  %v4865_v44 = vpop.f32.mrb[57].mxu1  ;;  %v1047_v20 = vadd.f32 %v1046_v23, %v4725_v58  ;;  %v1049_v42 = vadd.f32 %v1048_v13, %v4731_v14 }
 0x266   : > { %v3152_v30 = vpop.eup %3151  ;;  %3171 = vpow2.f32 %v2641_v36  ;;  %v1407_v36 = vadd.f32 1.0, %v3150_v19  ;;  %v5473_v19 = vld [vmem:[#allocation35_spill] sm:$0xff] }
 0x267   : > { %v3154_v37 = vpop.eup %3153  ;;  %3173 = vrcp.f32 %v1405_v4  ;;  %v1575_v57 = vmul.f32 %v3152_v30, %v4795_v9  ;;  %1929 = vmatprep.mubr.f32.mxu0 %v1638_v12  ;;  %v2642_v30 = vmul.f32 -1.442695, %v5473_v19 }
 0x268   : > { %v3156_v8 = vpop.eup %3155  ;;  %v1576_v21 = vmul.f32 %v3154_v37, %v4802_v62  ;;  %3175 = vpow2.f32 %v2620_v34  ;;  %1930 = vmatmul.mubr.f32.gmra.mrb[50].mxu0 %v1637_v28  ;;  %v4872_v5 = vpop.f32.mrb[58].mxu1  ;;  %v2625_v62 = vmul.f32 -1.442695, %v5472_v60  ;;  %v5474_v37 = vld [vmem:[#allocation36_spill] sm:$0xff] }
 0x269   : > { %v4874_v24 = vpop.eup %3157  ;;  %3177 = vpow2.f32 %v2621_v52  ;;  %v1639_v47 = vmul.f32 %v1575_v57, %v1041_v56  ;;  %v4877_v35 = vpop.f32.mrb[59].mxu1  ;;  %v1408_v12 = vadd.f32 1.0, %v3156_v8  ;;  %v2643_v57 = vmul.f32 -1.442695, %v5474_v37 }
 0x26a   : > { %v4879_v9 = vpop.eup %3159  ;;  %3179 = vpow2.f32 %v2622_v40  ;;  %v1640_v3 = vmul.f32 %v1576_v21, %v1043_v22  ;;  %v5475_v21 = vld [vmem:[#allocation26_spill] sm:$0xff] }
 0x26b   : > { %v3162_v50 = vpop.eup %3161  ;;  %3181 = vpow2.f32 %v2623_v16  ;;  %v1587_v8 = vmul.f32 %v4784_v6, %v5475_v21 }
 0x26c   : > { %v3164_v51 = vpop.eup %3163  ;;  %3183 = vrcp.f32 %v1406_v17  ;;  %v1387_v25 = vadd.f32 1.0, %v3162_v50  ;;  %1935 = vmatprep.mubr.f32.mxu0 %v1640_v3  ;;  %v4884_v4 = vpop.f32.mrb[60].mxu1 }
 0x26d   : > { %v3166_v45 = vpop.eup %3165  ;;  %v1577_v34 = vmul.f32 %v3164_v51, %v4818_v29  ;;  %3185 = vpow2.f32 %v2624_v53  ;;  %1936 = vmatmul.mubr.f32.gmra.mrb[52].mxu0 %v1639_v47  ;;  %v4887_v28 = vpop.f32.mrb[61].mxu1  ;;  %v5477_v47 = vld [vmem:[#allocation28_spill] sm:$0xff] }
 0x26e   : > { %v3168_v52 = vpop.eup %3167  ;;  %v1578_v23 = vmul.f32 %v3166_v45, %v4824_v55  ;;  %3187 = vrcp.f32 %v1387_v25  ;;  %v5476_v55 = vld [vmem:[#allocation27_spill] sm:$0xff]  ;;  %v1589_v3 = vmul.f32 %v4813_v38, %v5477_v47  ;;  %v5481_v38 = vld [vmem:[#allocation37_spill] sm:$0xff] }
 0x26f   : > { %v3170_v56 = vpop.eup %3169  ;;  %v1388_v40 = vadd.f32 1.0, %v3168_v52  ;;  %3189 = vpow2.f32 %v2625_v62  ;;  %v1641_v13 = vmul.f32 %v1577_v34, %v1047_v20  ;;  %v1588_v53 = vmul.f32 %v4797_v1, %v5476_v55  ;;  %v5478_v20 = vld [vmem:[#allocation29_spill] sm:$0xff]  ;;  %v5482_v34 = vld [vmem:[#allocation38_spill] sm:$0xff] }
 0x270   : > { %v3172_v22 = vpop.eup %3171  ;;  %3191 = vrcp.f32 %v1407_v36  ;;  %v1642_v29 = vmul.f32 %v1578_v23, %v1049_v42  ;;  %v4892_v16 = vpop.f32.mrb[62].mxu1  ;;  %v1590_v51 = vmul.f32 %v4828_v33, %v5478_v20  ;;  %v5479_v36 = vld [vmem:[#allocation30_spill] sm:$0xff]  ;;  %v5480_v42 = vld [vmem:[#allocation31_spill] sm:$0xff]  ;;  %v2644_v45 = vmul.f32 -1.442695, %v5481_v38  ;;  %v5483_v33 = vld [vmem:[#allocation32_spill] sm:$0xff] }
 0x271   : > { %v4894_v17 = vpop.eup %3173  ;;  %3193 = vrcp.f32 %v1388_v40  ;;  %v4902_v50 = vpop.f32.mrb[63].mxu1  ;;  %v4908_v25 = vmul.f32 %v4844_v63, %v5479_v36  ;;  %v4912_v6 = vmul.f32 %v4846_v54, %v5480_v42  ;;  %v2645_v52 = vmul.f32 -1.442695, %v5482_v34  ;;  %v5484_v63 = vld [vmem:[#allocation39_spill] sm:$0xff] }
 0x272   : > { %v3176_v62 = vpop.eup %3175  ;;  %3195 = vrcp.f32 %v1408_v12  ;;  %1941 = vmatprep.mubr.f32.mxu0 %v1642_v29  ;;  %v4918_v21 = vmul.f32 %v4848_v2, %v5483_v33  ;;  %v2646_v55 = vmul.f32 -1.442695, %v5484_v63  ;;  %v5485_v29 = vld [vmem:[#allocation40_spill] sm:$0xff]  ;;  %v1409_v38 = vadd.f32 1.0, %v3170_v56 }
 0x273   : > { %v3178_v1 = vpop.eup %3177  ;;  %3197 = vpow2.f32 %v2642_v30  ;;  %v1389_v23 = vadd.f32 1.0, %v3176_v62  ;;  %1942 = vmatmul.mubr.f32.gmra.mrb[54].mxu0 %v1641_v13  ;;  %v2647_v20 = vmul.f32 -1.442695, %v5485_v29  ;;  %v5486_v13 = vld [vmem:[#allocation41_spill] sm:$0xff]  ;;  %v5487_v29 = vld [vmem:[#allocation42_spill] sm:$0xff] }
 0x274   : > { %v3180_v40 = vpop.eup %3179  ;;  %3199 = vpow2.f32 %v2643_v57  ;;  %v1390_v54 = vadd.f32 1.0, %v3178_v1  ;;  %v1076_v47 = vpop.f32.mrb[64].mxu1  ;;  %v2648_v34 = vmul.f32 -1.442695, %v5486_v13  ;;  %v4929_v1 = vmul.f32 %v4858_v59, %v4515_v32 }
 0x275   : > { %v3182_v12 = vpop.eup %3181  ;;  %3201 = vrcp.f32 %v1389_v23  ;;  %v1391_v30 = vadd.f32 1.0, %v3180_v40  ;;  %v1077_v36 = vadd.f32 %v1076_v47, %v4725_v58  ;;  %v1078_v42 = vpop.f32.mrb[65].mxu1  ;;  %v1053_v23 = vadd.f32 %v4861_v46, %v4725_v58 }
 0x276   : > { %v4923_v62 = vpop.eup %3183  ;;  %3203 = vrcp.f32 %v1390_v54  ;;  %v1392_v2 = vadd.f32 1.0, %v3182_v12  ;;  %v1079_v57 = vadd.f32 %v1078_v42, %v4731_v14  ;;  %v4936_v63 = vmul.f32 -1.442695, %v5487_v29 }
 0x277   : > { %v3186_v33 = vpop.eup %3185  ;;  %3205 = vrcp.f32 %v1391_v30  ;;  %v4933_v40 = vmul.f32 %v1587_v8, %v1077_v36  ;;  %v1055_v36 = vadd.f32 %v4865_v44, %v4731_v14 }
 0x278   : > { %v3188_v47 = vpop.eup %3187  ;;  %3207 = vrcp.f32 %v1392_v2  ;;  %v1393_v54 = vadd.f32 1.0, %v3186_v33  ;;  %v4938_v12 = vmul.f32 %v1588_v53, %v1079_v57  ;;  %v1082_v42 = vpop.f32.mrb[66].mxu1  ;;  %v1410_v57 = vadd.f32 1.0, %v3172_v22  ;;  %v5489_v22 = vld [vmem:[#allocation44_spill] sm:$0xff] }
 0x279   : > { %v3190_v13 = vpop.eup %3189  ;;  %3209 = vpow2.f32 %v2644_v45  ;;  %v1579_v32 = vmul.f32 %v3188_v47, %v4663_v49  ;;  %v1083_v59 = vadd.f32 %v1082_v42, %v4725_v58  ;;  %v1084_v30 = vpop.f32.mrb[67].mxu1  ;;  %v5488_v49 = vld [vmem:[#allocation43_spill] sm:$0xff] }
 0x27a   : > { %v4942_v46 = vpop.eup %3191  ;;  %3211 = vrcp.f32 %v1393_v54  ;;  %v1394_v8 = vadd.f32 1.0, %v3190_v13  ;;  %v1085_v2 = vadd.f32 %v1084_v30, %v4731_v14  ;;  %v4952_v47 = vmul.f32 -1.442695, %v5488_v49 }
 0x27b   : > { %v3194_v53 = vpop.eup %3193  ;;  %3213 = vpow2.f32 %v2645_v52  ;;  %v1643_v33 = vmul.f32 %v1579_v32, %v1053_v23  ;;  %v4947_v56 = vmul.f32 %v1589_v3, %v1083_v59  ;;  %v4959_v30 = vmul.f32 %v4874_v24, %v4518_v27 }
 0x27c   : > { %v4949_v45 = vpop.eup %3195  ;;  %v1580_v42 = vmul.f32 %v3194_v53, %v4668_v39  ;;  %3215 = vrcp.f32 %v1394_v8  ;;  %v4955_v13 = vmul.f32 %v1590_v51, %v1085_v2  ;;  %v1088_v54 = vpop.f32.mrb[68].mxu1  ;;  %v4962_v3 = vmul.f32 -1.442695, %v5489_v22 }
 0x27d   : > { %v3198_v44 = vpop.eup %3197  ;;  %3217 = vpow2.f32 %v2646_v55  ;;  %v1089_v52 = vadd.f32 %v1088_v54, %v4725_v58  ;;  %v1090_v23 = vpop.f32.mrb[69].mxu1  ;;  %v1059_v39 = vadd.f32 %v4872_v5, %v4725_v58  ;;  %v1596_v27 = vmul.f32 %v4879_v9, %v4523_v61 }
 0x27e   : > { %v3200_v32 = vpop.eup %3199  ;;  %3219 = vrcp.f32 %v1409_v38  ;;  %v1644_v59 = vmul.f32 %v1580_v42, %v1055_v36  ;;  %v1091_v51 = vadd.f32 %v1090_v23, %v4731_v14  ;;  %v1061_v24 = vadd.f32 %v4877_v35, %v4731_v14 }
 0x27f   : > { %v3202_v8 = vpop.eup %3201  ;;  %3221 = vrcp.f32 %v1410_v57  ;;  %v4973_v55 = vmul.f32 %v4908_v25, %v1089_v52  ;;  %v1065_v5 = vadd.f32 %v4884_v4, %v4725_v58  ;;  %v1067_v35 = vadd.f32 %v4887_v28, %v4731_v14 }
 0x280   : > { %v3204_v2 = vpop.eup %3203  ;;  %3223 = vpow2.f32 %v2647_v20  ;;  %v1581_v38 = vmul.f32 %v3202_v8, %v5467_v43  ;;  %1947 = vmatprep.mubr.f32.mxu0 %v1644_v59  ;;  %v4979_v36 = vmul.f32 %v4912_v6, %v1091_v51  ;;  %v1094_v53 = vpop.f32.mrb[70].mxu1  ;;  %v1411_v57 = vadd.f32 1.0, %v3198_v44 }
 0x281   : > { %v3206_v61 = vpop.eup %3205  ;;  %3225 = vpow2.f32 %v2648_v34  ;;  %v1582_v9 = vmul.f32 %v3204_v2, %v5468_v0  ;;  %1948 = vmatmul.mubr.f32.gmra.mrb[56].mxu0 %v1643_v33  ;;  %v1095_v25 = vadd.f32 %v1094_v53, %v4725_v58  ;;  %v1096_v20 = vpop.f32.mrb[71].mxu1  ;;  %v1071_v0 = vadd.f32 %v4892_v16, %v4725_v58 }
 0x282   : > { %v3208_v43 = vpop.eup %3207  ;;  %v1583_v42 = vmul.f32 %v3206_v61, %v5469_v15  ;;  %v1645_v4 = vmul.f32 %v1581_v38, %v1059_v39  ;;  %v1097_v6 = vadd.f32 %v1096_v20, %v4731_v14  ;;  %v1412_v23 = vadd.f32 1.0, %v3200_v32 }
 0x283   : > { %v3210_v54 = vpop.eup %3209  ;;  %v1584_v52 = vmul.f32 %v3208_v43, %v5470_v11  ;;  %v1646_v34 = vmul.f32 %v1582_v9, %v1061_v24  ;;  %v4991_v33 = vmul.f32 %v4918_v21, %v1095_v25  ;;  %3227 = vpow2.f32 %v4936_v63  ;;  %v5490_v63 = vld [vmem:[#allocation45_spill] sm:$0xff]  ;;  %v5491_v9 = vld [vmem:[#allocation46_spill] sm:$0xff] }
 0x284   : > { %v3212_v28 = vpop.eup %3211  ;;  %v1647_v44 = vmul.f32 %v1583_v42, %v1065_v5  ;;  %v4995_v15 = vmul.f32 %v4929_v1, %v1097_v6  ;;  %v1100_v59 = vpop.f32.mrb[72].mxu1  ;;  %v1073_v16 = vadd.f32 %v4902_v50, %v4731_v14  ;;  %3229 = vrcp.f32 %v1411_v57 }
 0x285   : > { %v3214_v39 = vpop.eup %3213  ;;  %v1585_v51 = vmul.f32 %v3212_v28, %v5471_v7  ;;  %v1648_v11 = vmul.f32 %v1584_v52, %v1067_v35  ;;  %1953 = vmatprep.mubr.f32.mxu0 %v1646_v34  ;;  %v1101_v21 = vadd.f32 %v1100_v59, %v4725_v58  ;;  %v1102_v8 = vpop.f32.mrb[73].mxu1  ;;  %v1413_v32 = vadd.f32 1.0, %v3210_v54  ;;  %v5493_v52 = vld [vmem:[#allocation50_spill] sm:$0xff] }
 0x286   : > { %v3216_v24 = vpop.eup %3215  ;;  %v2652_v2 = vmul.f32 -1.442695, %v5490_v63  ;;  %1954 = vmatmul.mubr.f32.gmra.mrb[58].mxu0 %v1645_v4  ;;  %v1103_v1 = vadd.f32 %v1102_v8, %v4731_v14  ;;  %3231 = vpow2.f32 %v4952_v47  ;;  %v1597_v61 = vmul.f32 %v4894_v17, %v4528_v26  ;;  %v5495_v8 = vld [vmem:[#allocation54_spill] sm:$0xff] }
 0x287   : > { %v3218_v38 = vpop.eup %3217  ;;  %v1586_v7 = vmul.f32 %v3216_v24, %v5472_v60  ;;  %v1649_v5 = vmul.f32 %v1585_v51, %v1071_v0  ;;  %1959 = vmatprep.mubr.f32.mxu0 %v1648_v11  ;;  %v5006_v50 = vmul.f32 %v4959_v30, %v1101_v21  ;;  %3233 = vpow2.f32 %v4962_v3 }
 0x288   : > { %v3220_v53 = vpop.eup %3219  ;;  %v2653_v35 = vmul.f32 -1.442695, %v5491_v9  ;;  %v5012_v25 = vmul.f32 %v1596_v27, %v1103_v1  ;;  %v1106_v20 = vpop.f32.mrb[74].mxu1  ;;  %3235 = vrcp.f32 %v1412_v23  ;;  %v1414_v47 = vadd.f32 1.0, %v3214_v39  ;;  %v5492_v27 = vld [vmem:[#allocation49_spill] sm:$0xff] }
 0x289   : > { %v3222_v43 = vpop.eup %3221  ;;  %v1650_v60 = vmul.f32 %v1586_v7, %v1073_v16  ;;  %v1107_v57 = vadd.f32 %v1106_v20, %v4725_v58  ;;  %v1108_v42 = vpop.f32.mrb[75].mxu1  ;;  %v1598_v4 = vmul.f32 %v4923_v62, %v4533_v48  ;;  %3237 = vrcp.f32 %v1413_v32  ;;  %v5494_v16 = vld [vmem:[#allocation53_spill] sm:$0xff] }
 0x28a   : > { %v3224_v30 = vpop.eup %3223  ;;  %v1415_v26 = vadd.f32 1.0, %v3218_v38  ;;  %1960 = vmatmul.mubr.f32.gmra.mrb[60].mxu0 %v1647_v44  ;;  %v1109_v17 = vadd.f32 %v1108_v42, %v4731_v14  ;;  %3239 = vpow2.f32 %v2652_v2  ;;  %v2654_v6 = vmul.f32 -1.442695, %v5492_v27 }
 0x28b   : > { %v3226_v3 = vpop.eup %3225  ;;  %1965 = vmatprep.mubr.f32.mxu0 %v1650_v60  ;;  %v5019_v54 = vmul.f32 %v1597_v61, %v1107_v57  ;;  %3241 = vpow2.f32 %v2653_v35  ;;  %v2655_v34 = vmul.f32 -1.442695, %v5493_v52  ;;  %v1599_v48 = vmul.f32 %v4942_v46, %v4541_v18 }
 0x28c   : > { %v5022_v0 = vmul.f32 %v1598_v4, %v1109_v17  ;;  %v1112_v28 = vpop.f32.mrb[76].mxu1  ;;  %3243 = vrcp.f32 %v1414_v47  ;;  %v1416_v62 = vadd.f32 1.0, %v3224_v30  ;;  %v1600_v39 = vmul.f32 %v4949_v45, %v4546_v41 }
 0x28d   : > { %v1113_v23 = vadd.f32 %v1112_v28, %v4725_v58  ;;  %v1114_v44 = vpop.f32.mrb[77].mxu1  ;;  %v3228_v59 = vpop.eup %3227  ;;  %3245 = vrcp.f32 %v1415_v26  ;;  %v1417_v51 = vadd.f32 1.0, %v3226_v3  ;;  %v2656_v21 = vmul.f32 -1.442695, %v5494_v16 }
 0x28e   : > { %1966 = vmatmul.mubr.f32.gmra.mrb[62].mxu0 %v1649_v5  ;;  %v1115_v11 = vadd.f32 %v1114_v44, %v4731_v14  ;;  %3247 = vpow2.f32 %v2654_v6  ;;  %v3230_v46 = vpop.eup %3229  ;;  %v2657_v24 = vmul.f32 -1.442695, %v5495_v8  ;;  %v1601_v45 = vmul.f32 %v3220_v53, %v5465_v31 }
 0x28f   : > { %1971 = vmatprep.mubr.f32.mxu0 %v4938_v12  ;;  %v5032_v18 = vmul.f32 %v1599_v48, %v1113_v23  ;;  %3249 = vpow2.f32 %v2655_v34  ;;  %v1418_v1 = vadd.f32 1.0, %v3228_v59  ;;  %v1602_v12 = vmul.f32 %v3222_v43, %v5466_v10  ;;  %v5496_v48 = vld [vmem:[#allocation37_spill] sm:$0xff]  ;;  %v5497_v59 = vld [vmem:[#allocation38_spill] sm:$0xff] }
 0x290   : > { %v5035_v32 = vmul.f32 %v1600_v39, %v1115_v11  ;;  %v1118_v2 = vpop.f32.mrb[78].mxu1  ;;  %v3232_v41 = vpop.eup %3231  ;;  %3251 = vrcp.f32 %v1416_v62  ;;  %v1603_v10 = vmul.f32 %v3230_v46, %v5473_v19 }
 0x291   : > { %v1119_v38 = vadd.f32 %v1118_v2, %v4725_v58  ;;  %v1120_v7 = vpop.f32.mrb[79].mxu1  ;;  %v3234_v5 = vpop.eup %3233  ;;  %3253 = vrcp.f32 %v1417_v51  ;;  %v1419_v53 = vadd.f32 1.0, %v3232_v41 }
 0x292   : > { %1972 = vmatmul.mubr.f32.gmra.mrb[64].mxu0 %v4933_v40  ;;  %v1121_v61 = vadd.f32 %v1120_v7, %v4731_v14  ;;  %v3236_v35 = vpop.eup %3235  ;;  %3255 = vpow2.f32 %v2656_v21  ;;  %v1420_v43 = vadd.f32 1.0, %v3234_v5 }
 0x293   : > { %1977 = vmatprep.mubr.f32.mxu0 %v4955_v13  ;;  %v5043_v20 = vmul.f32 %v1601_v45, %v1119_v38  ;;  %v3238_v31 = vpop.eup %3237  ;;  %3257 = vpow2.f32 %v2657_v24  ;;  %v1604_v4 = vmul.f32 %v3236_v35, %v5474_v37  ;;  %v5498_v45 = vld [vmem:[#allocation39_spill] sm:$0xff] }
 0x294   : > { %v5045_v47 = vmul.f32 %v1602_v12, %v1121_v61  ;;  %v1124_v60 = vpop.f32.mrb[80].mxu1  ;;  %v3240_v57 = vpop.eup %3239  ;;  %3259 = vrcp.f32 %v1418_v1  ;;  %v1605_v62 = vmul.f32 %v3238_v31, %v5496_v48  ;;  %v5499_v12 = vld [vmem:[#allocation40_spill] sm:$0xff] }
 0x295   : > { %v1125_v40 = vadd.f32 %v1124_v60, %v4725_v58  ;;  %v1126_v42 = vpop.f32.mrb[81].mxu1  ;;  %v3242_v30 = vpop.eup %3241  ;;  %3261 = vrcp.f32 %v1419_v53  ;;  %v1421_v19 = vadd.f32 1.0, %v3240_v57 }
 0x296   : > { %1978 = vmatmul.mubr.f32.gmra.mrb[66].mxu0 %v4947_v56  ;;  %v1127_v13 = vadd.f32 %v1126_v42, %v4731_v14  ;;  %v3244_v26 = vpop.eup %3243  ;;  %3263 = vrcp.f32 %v1420_v43  ;;  %v1422_v37 = vadd.f32 1.0, %v3242_v30 }
 0x297   : > { %1983 = vmatprep.mubr.f32.mxu0 %v4979_v36  ;;  %v5053_v17 = vmul.f32 %v1603_v10, %v1125_v40  ;;  %v3246_v3 = vpop.eup %3245  ;;  %v1606_v39 = vmul.f32 %v3244_v26, %v5497_v59  ;;  %3265 = vrcp.f32 %v1421_v19  ;;  %v5500_v10 = vld [vmem:[#allocation41_spill] sm:$0xff] }
 0x298   : > { %v5055_v6 = vmul.f32 %v1604_v4, %v1127_v13  ;;  %v1130_v34 = vpop.f32.mrb[82].mxu1  ;;  %v3248_v28 = vpop.eup %3247  ;;  %v1607_v1 = vmul.f32 %v3246_v3, %v5498_v45  ;;  %3267 = vrcp.f32 %v1422_v37 }
 0x299   : > { %v1131_v56 = vadd.f32 %v1130_v34, %v4725_v58  ;;  %v1132_v23 = vpop.f32.mrb[83].mxu1  ;;  %v3250_v44 = vpop.eup %3249  ;;  %v1423_v46 = vadd.f32 1.0, %v3248_v28 }
 0x29a   : > { %1984 = vmatmul.mubr.f32.gmra.mrb[68].mxu0 %v4973_v55  ;;  %v1133_v36 = vadd.f32 %v1132_v23, %v4731_v14  ;;  %v3252_v51 = vpop.eup %3251  ;;  %v1424_v38 = vadd.f32 1.0, %v3250_v44 }
 0x29b   : > { %1989 = vmatprep.mubr.f32.mxu0 %v4995_v15  ;;  %v5063_v11 = vmul.f32 %v1605_v62, %v1131_v56  ;;  %v3254_v21 = vpop.eup %3253  ;;  %v1608_v61 = vmul.f32 %v3252_v51, %v5499_v12  ;;  %3269 = vrcp.f32 %v1423_v46 }
 0x29c   : > { %v5065_v24 = vmul.f32 %v1606_v39, %v1133_v36  ;;  %v1136_v2 = vpop.f32.mrb[84].mxu1  ;;  %v3256_v41 = vpop.eup %3255  ;;  %v1609_v43 = vmul.f32 %v3254_v21, %v5500_v10  ;;  %3271 = vrcp.f32 %v1424_v38 }
 0x29d   : > { %v1137_v55 = vadd.f32 %v1136_v2, %v4725_v58  ;;  %v1138_v7 = vpop.f32.mrb[85].mxu1  ;;  %v3258_v5 = vpop.eup %3257  ;;  %v1425_v53 = vadd.f32 1.0, %v3256_v41 }
 0x29e   : > { %1990 = vmatmul.mubr.f32.gmra.mrb[70].mxu0 %v4991_v33  ;;  %v1139_v15 = vadd.f32 %v1138_v7, %v4731_v14  ;;  %v3260_v35 = vpop.eup %3259  ;;  %v1426_v40 = vadd.f32 1.0, %v3258_v5 }
 0x29f   : > { %1995 = vmatprep.mubr.f32.mxu0 %v5012_v25  ;;  %v5073_v31 = vmul.f32 %v1607_v1, %v1137_v55  ;;  %v3262_v33 = vpop.eup %3261  ;;  %v1610_v4 = vmul.f32 %v3260_v35, %v5487_v29  ;;  %3273 = vrcp.f32 %v1425_v53  ;;  %v1687_v53 = vld [vmem:[#allocation2 + $0x20] sm:$0xff] }
 0x2a0   : > { %v5075_v60 = vmul.f32 %v1608_v61, %v1139_v15  ;;  %v1142_v57 = vpop.f32.mrb[86].mxu1  ;;  %v3264_v13 = vpop.eup %3263  ;;  %v1611_v34 = vmul.f32 %v3262_v33, %v5488_v49  ;;  %3275 = vrcp.f32 %v1426_v40 }
 0x2a1   : > { %v1143_v42 = vadd.f32 %v1142_v57, %v4725_v58  ;;  %v1144_v30 = vpop.f32.mrb[87].mxu1  ;;  %v3266_v62 = vpop.eup %3265  ;;  %v1612_v29 = vmul.f32 %v3264_v13, %v5489_v22 }
 0x2a2   : > { %1996 = vmatmul.mubr.f32.gmra.mrb[72].mxu0 %v5006_v50  ;;  %v1145_v25 = vadd.f32 %v1144_v30, %v4731_v14  ;;  %v3268_v37 = vpop.eup %3267  ;;  %v1613_v44 = vmul.f32 %v3266_v62, %v5490_v63  ;;  %v1690_v30 = vld [vmem:[#allocation2 + $0x38] sm:$0xff]  ;;  %v1693_v62 = vld [vmem:[#allocation2 + $0x50] sm:$0xff] }
 0x2a3   : > { %2001 = vmatprep.mubr.f32.mxu0 %v5022_v0  ;;  %v1673_v26 = vmul.f32 %v1609_v43, %v1143_v42  ;;  %v1614_v36 = vmul.f32 %v3268_v37, %v5491_v9  ;;  %v1689_v42 = vld [vmem:[#allocation2 + $0x30] sm:$0xff] }
 0x2a4   : > { %v1674_v3 = vmul.f32 %v1610_v4, %v1145_v25  ;;  %v1148_v19 = vpop.f32.mrb[88].mxu1 }
 0x2a5   : > { %v1149_v28 = vadd.f32 %v1148_v19, %v4725_v58  ;;  %v1150_v48 = vpop.f32.mrb[89].mxu1  ;;  %v3270_v39 = vpop.eup %3269 }
 0x2a6   : > { %2002 = vmatmul.mubr.f32.gmra.mrb[74].mxu0 %v5019_v54  ;;  %v1151_v50 = vadd.f32 %v1150_v48, %v4731_v14  ;;  %v3272_v54 = vpop.eup %3271  ;;  %v1615_v46 = vmul.f32 %v3270_v39, %v5492_v27 }
 0x2a7   : > { %2007 = vmatprep.mubr.f32.mxu0 %v5035_v32  ;;  %v1675_v0 = vmul.f32 %v1611_v34, %v1149_v28  ;;  %v1616_v45 = vmul.f32 %v3272_v54, %v5493_v52  ;;  %v1698_v54 = vld [vmem:[#allocation2 + $0x78] sm:$0xff] }
 0x2a8   : > { %v1676_v56 = vmul.f32 %v1612_v29, %v1151_v50  ;;  %v1154_v23 = vpop.f32.mrb[90].mxu1  ;;  %v1694_v29 = vld [vmem:[#allocation2 + $0x58] sm:$0xff] }
 0x2a9   : > { %v1155_v49 = vadd.f32 %v1154_v23, %v4725_v58  ;;  %v1156_v59 = vpop.f32.mrb[91].mxu1  ;;  %v3274_v41 = vpop.eup %3273  ;;  %v1695_v23 = vld [vmem:[#allocation2 + $0x60] sm:$0xff] }
 0x2aa   : > { %2008 = vmatmul.mubr.f32.gmra.mrb[76].mxu0 %v5032_v18  ;;  %v1157_v22 = vadd.f32 %v1156_v59, %v4731_v14  ;;  %v3276_v18 = vpop.eup %3275  ;;  %v1617_v55 = vmul.f32 %v3274_v41, %v5494_v16 }
 0x2ab   : > { %2013 = vmatprep.mubr.f32.mxu0 %v5045_v47  ;;  %v1677_v51 = vmul.f32 %v1613_v44, %v1155_v49  ;;  %v1618_v5 = vmul.f32 %v3276_v18, %v5495_v8  ;;  %v1696_v44 = vld [vmem:[#allocation2 + $0x68] sm:$0xff] }
 0x2ac   : > { %v1678_v32 = vmul.f32 %v1614_v36, %v1157_v22  ;;  %v1160_v21 = vpop.f32.mrb[92].mxu1  ;;  %v1697_v22 = vld [vmem:[#allocation2 + $0x70] sm:$0xff] }
 0x2ad   : > { %v1161_v63 = vadd.f32 %v1160_v21, %v4725_v58  ;;  %v1162_v2 = vpop.f32.mrb[93].mxu1 }
 0x2ae   : > { %2014 = vmatmul.mubr.f32.gmra.mrb[78].mxu0 %v5043_v20  ;;  %v1163_v9 = vadd.f32 %v1162_v2, %v4731_v14  ;;  %v1700_v2 = vld [vmem:[#allocation2 + $0x88] sm:$0xff] }
 0x2af   : > { %2019 = vmatprep.mubr.f32.mxu0 %v5055_v6  ;;  %v1679_v1 = vmul.f32 %v1615_v46, %v1161_v63  ;;  %v1699_v63 = vld [vmem:[#allocation2 + $0x80] sm:$0xff] }
 0x2b0   : > { %v1680_v47 = vmul.f32 %v1616_v45, %v1163_v9  ;;  %v1166_v38 = vpop.f32.mrb[94].mxu1 }
 0x2b1   : > { %v1167_v27 = vadd.f32 %v1166_v38, %v4725_v58  ;;  %v1168_v7 = vpop.f32.mrb[95].mxu1  ;;  %v1683_v58 = vld [vmem:[#allocation2] sm:$0xff] }
 0x2b2   : > { %2020 = vmatmul.mubr.f32.gmra.mrb[80].mxu0 %v5053_v17  ;;  %v1169_v52 = vadd.f32 %v1168_v7, %v4731_v14  ;;  %v1684_v14 = vld [vmem:[#allocation2 + $0x8] sm:$0xff] }
 0x2b3   : > { %2025 = vmatprep.mubr.f32.mxu0 %v5065_v24  ;;  %v1681_v20 = vmul.f32 %v1617_v55, %v1167_v27  ;;  %v1686_v24 = vld [vmem:[#allocation2 + $0x18] sm:$0xff] }
 0x2b4   : > { %v1682_v12 = vmul.f32 %v1618_v5, %v1169_v52  ;;  %v1703_v5 = vld [vmem:[#allocation2 + $0xa0] sm:$0xff]  ;;  %v1704_v52 = vld [vmem:[#allocation2 + $0xa8] sm:$0xff] }
 0x2b6   : > { %2026 = vmatmul.mubr.f32.gmra.mrb[82].mxu0 %v5063_v11  ;;  %v1685_v11 = vld [vmem:[#allocation2 + $0x10] sm:$0xff] }
 0x2b7   : > { %2031 = vmatprep.mubr.f32.mxu0 %v5075_v60  ;;  %v1688_v60 = vld [vmem:[#allocation2 + $0x28] sm:$0xff] }
 0x2ba   : > { %2032 = vmatmul.mubr.f32.gmra.mrb[84].mxu0 %v5073_v31 }
 0x2bb   : > { %2037 = vmatprep.mubr.f32.mxu0 %v1674_v3  ;;  %v1692_v3 = vld [vmem:[#allocation2 + $0x48] sm:$0xff] }
 0x2be   : > { %2038 = vmatmul.mubr.f32.gmra.mrb[86].mxu0 %v1673_v26  ;;  %v1691_v26 = vld [vmem:[#allocation2 + $0x40] sm:$0xff] }
 0x2bf   : > { %2043 = vmatprep.mubr.f32.mxu0 %v1676_v56 }
 0x2c2   : > { %2044 = vmatmul.mubr.f32.gmra.mrb[88].mxu0 %v1675_v0 }
 0x2c3   : > { %2049 = vmatprep.mubr.f32.mxu0 %v1678_v32 }
 0x2c6   : > { %2050 = vmatmul.mubr.f32.gmra.mrb[90].mxu0 %v1677_v51 }
 0x2c7   : > { %2055 = vmatprep.mubr.f32.mxu0 %v1680_v47  ;;  %v1702_v47 = vld [vmem:[#allocation2 + $0x98] sm:$0xff] }
 0x2ca   : > { %2056 = vmatmul.mubr.f32.gmra.mrb[92].mxu0 %v1679_v1  ;;  %v1701_v1 = vld [vmem:[#allocation2 + $0x90] sm:$0xff] }
 0x2cb   : > { %2061 = vmatprep.mubr.f32.mxu0 %v1682_v12 }
 0x2ce   : > { %2062 = vmatmul.mubr.f32.gmra.mrb[94].mxu0 %v1681_v20 }
 0x30e   : > { %v1877_v16 = vpop.f32.mrb[32].mxu0 }
 0x30f   : > { %v2068_v8 = vadd.f32 %v1877_v16, %v1683_v58  ;;  %v1879_v17 = vpop.f32.mrb[33].mxu0  ;;  %v1705_v16 = vld [vmem:[#allocation2 + $0xb0] sm:$0xff] }
 0x310   : > { %v2069_v6 = vadd.f32 %v1879_v17, %v1684_v14 }
 0x311   : > { %2132 = vst [vmem:[#allocation2] sm:$0xff] %v2068_v8  ;;  %v1706_v8 = vld [vmem:[#allocation2 + $0xb8] sm:$0xff] }
 0x312   : > { %2133 = vst [vmem:[#allocation2 + $0x8] sm:$0xff] %v2069_v6  ;;  %v1883_v61 = vpop.f32.mrb[34].mxu0 }
 0x313   : > { %v2070_v15 = vadd.f32 %v1883_v61, %v1685_v11  ;;  %v1885_v35 = vpop.f32.mrb[35].mxu0  ;;  %v1707_v61 = vld [vmem:[#allocation2 + $0xc0] sm:$0xff] }
 0x314   : > { %v2071_v31 = vadd.f32 %v1885_v35, %v1686_v24 }
 0x315   : > { %2134 = vst [vmem:[#allocation2 + $0x10] sm:$0xff] %v2070_v15  ;;  %v1708_v15 = vld [vmem:[#allocation2 + $0xc8] sm:$0xff] }
 0x316   : > { %2135 = vst [vmem:[#allocation2 + $0x18] sm:$0xff] %v2071_v31  ;;  %v1889_v57 = vpop.f32.mrb[36].mxu0 }
 0x317   : > { %v2072_v10 = vadd.f32 %v1889_v57, %v1687_v53  ;;  %v1891_v43 = vpop.f32.mrb[37].mxu0  ;;  %v1709_v57 = vld [vmem:[#allocation2 + $0xd0] sm:$0xff] }
 0x318   : > { %v2073_v40 = vadd.f32 %v1891_v43, %v1688_v60 }
 0x319   : > { %2136 = vst [vmem:[#allocation2 + $0x20] sm:$0xff] %v2072_v10  ;;  %v1710_v10 = vld [vmem:[#allocation2 + $0xd8] sm:$0xff] }
 0x31a   : > { %2137 = vst [vmem:[#allocation2 + $0x28] sm:$0xff] %v2073_v40  ;;  %v1895_v33 = vpop.f32.mrb[38].mxu0 }
 0x31b   : > { %v2074_v4 = vadd.f32 %v1895_v33, %v1689_v42  ;;  %v1897_v25 = vpop.f32.mrb[39].mxu0  ;;  %v1711_v33 = vld [vmem:[#allocation2 + $0xe0] sm:$0xff] }
 0x31c   : > { %v2075_v13 = vadd.f32 %v1897_v25, %v1690_v30 }
 0x31d   : > { %2138 = vst [vmem:[#allocation2 + $0x30] sm:$0xff] %v2074_v4  ;;  %v1712_v4 = vld [vmem:[#allocation2 + $0xe8] sm:$0xff] }
 0x31e   : > { %2139 = vst [vmem:[#allocation2 + $0x38] sm:$0xff] %v2075_v13  ;;  %v1901_v19 = vpop.f32.mrb[40].mxu0 }
 0x31f   : > { %v2076_v34 = vadd.f32 %v1901_v19, %v1691_v26  ;;  %v1903_v28 = vpop.f32.mrb[41].mxu0  ;;  %v1713_v19 = vld [vmem:[#allocation2 + $0xf0] sm:$0xff] }
 0x320   : > { %v2077_v48 = vadd.f32 %v1903_v28, %v1692_v3 }
 0x321   : > { %2140 = vst [vmem:[#allocation2 + $0x40] sm:$0xff] %v2076_v34  ;;  %v1714_v34 = vld [vmem:[#allocation2 + $0xf8] sm:$0xff] }
 0x322   : > { %2141 = vst [vmem:[#allocation2 + $0x48] sm:$0xff] %v2077_v48  ;;  %v1907_v50 = vpop.f32.mrb[42].mxu0 }
 0x323   : > { %v2078_v37 = vadd.f32 %v1907_v50, %v1693_v62  ;;  %v1909_v0 = vpop.f32.mrb[43].mxu0  ;;  %v1715_v50 = vld [vmem:[#allocation2 + $0x100] sm:$0xff] }
 0x324   : > { %v2079_v56 = vadd.f32 %v1909_v0, %v1694_v29 }
 0x325   : > { %2142 = vst [vmem:[#allocation2 + $0x50] sm:$0xff] %v2078_v37  ;;  %v1716_v37 = vld [vmem:[#allocation2 + $0x108] sm:$0xff] }
 0x326   : > { %2143 = vst [vmem:[#allocation2 + $0x58] sm:$0xff] %v2079_v56  ;;  %v1913_v49 = vpop.f32.mrb[44].mxu0 }
 0x327   : > { %v2080_v59 = vadd.f32 %v1913_v49, %v1695_v23  ;;  %v1915_v39 = vpop.f32.mrb[45].mxu0  ;;  %v1717_v49 = vld [vmem:[#allocation2 + $0x110] sm:$0xff] }
 0x328   : > { %v2081_v36 = vadd.f32 %v1915_v39, %v1696_v44 }
 0x329   : > { %2144 = vst [vmem:[#allocation2 + $0x60] sm:$0xff] %v2080_v59  ;;  %v1718_v59 = vld [vmem:[#allocation2 + $0x118] sm:$0xff] }
 0x32a   : > { %2145 = vst [vmem:[#allocation2 + $0x68] sm:$0xff] %v2081_v36  ;;  %v1919_v51 = vpop.f32.mrb[46].mxu0 }
 0x32b   : > { %v2082_v32 = vadd.f32 %v1919_v51, %v1697_v22  ;;  %v1921_v21 = vpop.f32.mrb[47].mxu0  ;;  %v1719_v51 = vld [vmem:[#allocation2 + $0x120] sm:$0xff] }
 0x32c   : > { %v2083_v46 = vadd.f32 %v1921_v21, %v1698_v54 }
 0x32d   : > { %2146 = vst [vmem:[#allocation2 + $0x70] sm:$0xff] %v2082_v32  ;;  %v1720_v32 = vld [vmem:[#allocation2 + $0x128] sm:$0xff] }
 0x32e   : > { %2147 = vst [vmem:[#allocation2 + $0x78] sm:$0xff] %v2083_v46 }
 0x330   : > { %v1925_v41 = vpop.f32.mrb[48].mxu0 }
 0x331   : > { %v2084_v45 = vadd.f32 %v1925_v41, %v1699_v63  ;;  %v1927_v9 = vpop.f32.mrb[49].mxu0  ;;  %v1721_v41 = vld [vmem:[#allocation2 + $0x130] sm:$0xff] }
 0x332   : > { %v2085_v18 = vadd.f32 %v1927_v9, %v1700_v2 }
 0x333   : > { %2148 = vst [vmem:[#allocation2 + $0x80] sm:$0xff] %v2084_v45  ;;  %v1722_v45 = vld [vmem:[#allocation2 + $0x138] sm:$0xff] }
 0x334   : > { %2149 = vst [vmem:[#allocation2 + $0x88] sm:$0xff] %v2085_v18 }
 0x33b   : > { %v1931_v38 = vpop.f32.mrb[50].mxu0 }
 0x33c   : > { %v2086_v55 = vadd.f32 %v1931_v38, %v1701_v1  ;;  %v1933_v27 = vpop.f32.mrb[51].mxu0  ;;  %v1723_v38 = vld [vmem:[#allocation2 + $0x140] sm:$0xff] }
 0x33d   : > { %v2087_v7 = vadd.f32 %v1933_v27, %v1702_v47 }
 0x33e   : > { %2150 = vst [vmem:[#allocation2 + $0x90] sm:$0xff] %v2086_v55  ;;  %v1724_v55 = vld [vmem:[#allocation2 + $0x148] sm:$0xff] }
 0x33f   : > { %2151 = vst [vmem:[#allocation2 + $0x98] sm:$0xff] %v2087_v7 }
 0x340   : > { %v1937_v20 = vpop.f32.mrb[52].mxu0 }
 0x341   : > { %v2088_v12 = vadd.f32 %v1937_v20, %v1703_v5  ;;  %v1939_v58 = vpop.f32.mrb[53].mxu0  ;;  %v1725_v20 = vld [vmem:[#allocation2 + $0x150] sm:$0xff] }
 0x342   : > { %v2089_v14 = vadd.f32 %v1939_v58, %v1704_v52 }
 0x343   : > { %2152 = vst [vmem:[#allocation2 + $0xa0] sm:$0xff] %v2088_v12  ;;  %v1726_v12 = vld [vmem:[#allocation2 + $0x158] sm:$0xff] }
 0x344   : > { %2153 = vst [vmem:[#allocation2 + $0xa8] sm:$0xff] %v2089_v14 }
 0x346   : > { %v1943_v17 = vpop.f32.mrb[54].mxu0 }
 0x347   : > { %v2090_v6 = vadd.f32 %v1943_v17, %v1705_v16  ;;  %v1945_v11 = vpop.f32.mrb[55].mxu0  ;;  %v1727_v17 = vld [vmem:[#allocation2 + $0x160] sm:$0xff] }
 0x348   : > { %v2091_v24 = vadd.f32 %v1945_v11, %v1706_v8 }
 0x349   : > { %2154 = vst [vmem:[#allocation2 + $0xb0] sm:$0xff] %v2090_v6  ;;  %v1728_v6 = vld [vmem:[#allocation2 + $0x168] sm:$0xff] }
 0x34a   : > { %2155 = vst [vmem:[#allocation2 + $0xb8] sm:$0xff] %v2091_v24 }
 0x354   : > { %v1949_v35 = vpop.f32.mrb[56].mxu0 }
 0x355   : > { %v2092_v31 = vadd.f32 %v1949_v35, %v1707_v61  ;;  %v1951_v53 = vpop.f32.mrb[57].mxu0  ;;  %v1729_v35 = vld [vmem:[#allocation2 + $0x170] sm:$0xff] }
 0x356   : > { %v2093_v60 = vadd.f32 %v1951_v53, %v1708_v15 }
 0x357   : > { %2156 = vst [vmem:[#allocation2 + $0xc0] sm:$0xff] %v2092_v31  ;;  %v1730_v31 = vld [vmem:[#allocation2 + $0x178] sm:$0xff] }
 0x358   : > { %2157 = vst [vmem:[#allocation2 + $0xc8] sm:$0xff] %v2093_v60 }
 0x359   : > { %v1955_v43 = vpop.f32.mrb[58].mxu0 }
 0x35a   : > { %v2094_v40 = vadd.f32 %v1955_v43, %v1709_v57  ;;  %v1957_v42 = vpop.f32.mrb[59].mxu0  ;;  %v1731_v43 = vld [vmem:[#allocation2 + $0x180] sm:$0xff] }
 0x35b   : > { %v2095_v30 = vadd.f32 %v1957_v42, %v1710_v10 }
 0x35c   : > { %2158 = vst [vmem:[#allocation2 + $0xd0] sm:$0xff] %v2094_v40  ;;  %v1732_v40 = vld [vmem:[#allocation2 + $0x188] sm:$0xff] }
 0x35d   : > { %2159 = vst [vmem:[#allocation2 + $0xd8] sm:$0xff] %v2095_v30  ;;  %v1961_v25 = vpop.f32.mrb[60].mxu0 }
 0x35e   : > { %v2096_v13 = vadd.f32 %v1961_v25, %v1711_v33  ;;  %v1963_v26 = vpop.f32.mrb[61].mxu0  ;;  %v1733_v25 = vld [vmem:[#allocation2 + $0x190] sm:$0xff] }
 0x35f   : > { %v2097_v3 = vadd.f32 %v1963_v26, %v1712_v4 }
 0x360   : > { %2160 = vst [vmem:[#allocation2 + $0xe0] sm:$0xff] %v2096_v13  ;;  %v1734_v13 = vld [vmem:[#allocation2 + $0x198] sm:$0xff] }
 0x361   : > { %2161 = vst [vmem:[#allocation2 + $0xe8] sm:$0xff] %v2097_v3  ;;  %v1967_v28 = vpop.f32.mrb[62].mxu0 }
 0x362   : > { %v2098_v48 = vadd.f32 %v1967_v28, %v1713_v19  ;;  %v1969_v62 = vpop.f32.mrb[63].mxu0  ;;  %v1735_v28 = vld [vmem:[#allocation2 + $0x1a0] sm:$0xff] }
 0x363   : > { %v2099_v29 = vadd.f32 %v1969_v62, %v1714_v34 }
 0x364   : > { %2162 = vst [vmem:[#allocation2 + $0xf0] sm:$0xff] %v2098_v48  ;;  %v1736_v48 = vld [vmem:[#allocation2 + $0x1a8] sm:$0xff] }
 0x365   : > { %2163 = vst [vmem:[#allocation2 + $0xf8] sm:$0xff] %v2099_v29  ;;  %v1973_v0 = vpop.f32.mrb[64].mxu0 }
 0x366   : > { %v2100_v56 = vadd.f32 %v1973_v0, %v1715_v50  ;;  %v1975_v23 = vpop.f32.mrb[65].mxu0  ;;  %v1737_v0 = vld [vmem:[#allocation2 + $0x1b0] sm:$0xff] }
 0x367   : > { %v2101_v44 = vadd.f32 %v1975_v23, %v1716_v37 }
 0x368   : > { %2164 = vst [vmem:[#allocation2 + $0x100] sm:$0xff] %v2100_v56  ;;  %v1738_v56 = vld [vmem:[#allocation2 + $0x1b8] sm:$0xff] }
 0x369   : > { %2165 = vst [vmem:[#allocation2 + $0x108] sm:$0xff] %v2101_v44  ;;  %v1979_v39 = vpop.f32.mrb[66].mxu0 }
 0x36a   : > { %v2102_v36 = vadd.f32 %v1979_v39, %v1717_v49  ;;  %v1981_v22 = vpop.f32.mrb[67].mxu0  ;;  %v1739_v39 = vld [vmem:[#allocation2 + $0x1c0] sm:$0xff] }
 0x36b   : > { %v2103_v54 = vadd.f32 %v1981_v22, %v1718_v59 }
 0x36c   : > { %2166 = vst [vmem:[#allocation2 + $0x110] sm:$0xff] %v2102_v36  ;;  %v1740_v36 = vld [vmem:[#allocation2 + $0x1c8] sm:$0xff] }
 0x36d   : > { %2167 = vst [vmem:[#allocation2 + $0x118] sm:$0xff] %v2103_v54  ;;  %v1985_v21 = vpop.f32.mrb[68].mxu0 }
 0x36e   : > { %v2104_v46 = vadd.f32 %v1985_v21, %v1719_v51  ;;  %v1987_v63 = vpop.f32.mrb[69].mxu0  ;;  %v1741_v21 = vld [vmem:[#allocation2 + $0x1d0] sm:$0xff] }
 0x36f   : > { %v2105_v2 = vadd.f32 %v1987_v63, %v1720_v32 }
 0x370   : > { %2168 = vst [vmem:[#allocation2 + $0x120] sm:$0xff] %v2104_v46  ;;  %v1742_v46 = vld [vmem:[#allocation2 + $0x1d8] sm:$0xff] }
 0x371   : > { %2169 = vst [vmem:[#allocation2 + $0x128] sm:$0xff] %v2105_v2  ;;  %v1991_v9 = vpop.f32.mrb[70].mxu0 }
 0x372   : > { %v2106_v18 = vadd.f32 %v1991_v9, %v1721_v41  ;;  %v1993_v1 = vpop.f32.mrb[71].mxu0  ;;  %v1743_v9 = vld [vmem:[#allocation2 + $0x1e0] sm:$0xff] }
 0x373   : > { %v2107_v47 = vadd.f32 %v1993_v1, %v1722_v45 }
 0x374   : > { %2170 = vst [vmem:[#allocation2 + $0x130] sm:$0xff] %v2106_v18  ;;  %v1744_v18 = vld [vmem:[#allocation2 + $0x1e8] sm:$0xff] }
 0x375   : > { %2171 = vst [vmem:[#allocation2 + $0x138] sm:$0xff] %v2107_v47  ;;  %v1997_v27 = vpop.f32.mrb[72].mxu0 }
 0x376   : > { %v2108_v7 = vadd.f32 %v1997_v27, %v1723_v38  ;;  %v1999_v5 = vpop.f32.mrb[73].mxu0  ;;  %v1745_v27 = vld [vmem:[#allocation2 + $0x1f0] sm:$0xff] }
 0x377   : > { %v2109_v52 = vadd.f32 %v1999_v5, %v1724_v55 }
 0x378   : > { %2172 = vst [vmem:[#allocation2 + $0x140] sm:$0xff] %v2108_v7  ;;  %v1746_v7 = vld [vmem:[#allocation2 + $0x1f8] sm:$0xff] }
 0x379   : > { %2173 = vst [vmem:[#allocation2 + $0x148] sm:$0xff] %v2109_v52  ;;  %v2003_v58 = vpop.f32.mrb[74].mxu0 }
 0x37a   : > { %v2110_v14 = vadd.f32 %v2003_v58, %v1725_v20  ;;  %v2005_v16 = vpop.f32.mrb[75].mxu0  ;;  %v2200_v58 = vld [vmem:[#allocation2] sm:$0xff] (!%p2658_p8) }
 0x37b   : > { %v2111_v8 = vadd.f32 %v2005_v16, %v1726_v12  ;;  %v2201_v16 = vld [vmem:[#allocation2 + $0x8] sm:$0xff] (!%p2658_p8) }
 0x37c   : > { %2174 = vst [vmem:[#allocation2 + $0x150] sm:$0xff] %v2110_v14  ;;  %v2264_v14 = vld [vmem:[%s5502_s13] sm:$0x3] (!%p2658_p8) }
 0x37d   : > { %2175 = vst [vmem:[#allocation2 + $0x158] sm:$0xff] %v2111_v8  ;;  %v2009_v11 = vpop.f32.mrb[76].mxu0  ;;  %v5503_v8 = vld [vmem:[#allocation25_spill] sm:$0xff] (!%p2658_p8) }
 0x37e   : > { %v2112_v24 = vadd.f32 %v2009_v11, %v1727_v17  ;;  %v2011_v61 = vpop.f32.mrb[77].mxu0  ;;  %v5504_v17 = vsub.s32 (!%p2658_p8), 0, %v5503_v8  ;;  %v5505_v11 = vsub.s32 (!%p2658_p8), 1, %v5503_v8 }
 0x37f   : > { %v2113_v15 = vadd.f32 %v2011_v61, %v1728_v6  ;;  %v2202_v61 = vld [vmem:[#allocation2 + $0x10] sm:$0xff] (!%p2658_p8) }
 0x380   : > { %2176 = vst [vmem:[#allocation2 + $0x160] sm:$0xff] %v2112_v24  ;;  %v5116_v6 = vrot.slane (!%p2658_p8), %v2264_v14, %v5504_v17  ;;  %v5120_v24 = vrot.slane (!%p2658_p8), %v2264_v14, %v5505_v11  ;;  %v2230_v14 = vld [vmem:[#allocation2 + $0xf0] sm:$0xff] (!%p2658_p8) }
 0x381   : > { %2177 = vst [vmem:[#allocation2 + $0x168] sm:$0xff] %v2113_v15  ;;  %v2015_v53 = vpop.f32.mrb[78].mxu0  ;;  %v2203_v15 = vld [vmem:[#allocation2 + $0x18] sm:$0xff] (!%p2658_p8) }
 0x382   : > { %v2114_v60 = vadd.f32 %v2015_v53, %v1729_v35  ;;  %v2017_v57 = vpop.f32.mrb[79].mxu0  ;;  %v2204_v35 = vld [vmem:[#allocation2 + $0x20] sm:$0xff] (!%p2658_p8)  ;;  %v2206_v53 = vld [vmem:[#allocation2 + $0x30] sm:$0xff] (!%p2658_p8)  ;;  %v2306_v17 = vadd.f32 (!%p2658_p8), %v5116_v6, %v2230_v14 }
 0x383   : > { %v2115_v10 = vadd.f32 %v2017_v57, %v1730_v31  ;;  %v2205_v31 = vld [vmem:[#allocation2 + $0x28] sm:$0xff] (!%p2658_p8)  ;;  %v2276_v57 = vadd.f32 (!%p2658_p8), %v5116_v6, %v2200_v58 }
 0x384   : > { %2178 = vst [vmem:[#allocation2 + $0x170] sm:$0xff] %v2114_v60  ;;  %v2207_v60 = vld [vmem:[#allocation2 + $0x38] sm:$0xff] (!%p2658_p8)  ;;  %v2229_v58 = vld [vmem:[#allocation2 + $0xe8] sm:$0xff] (!%p2658_p8)  ;;  %2370 = vst [vmem:[%s3897_s8 + $0xf0] sm:$0xff] (!%p2658_p8), %v2306_v17 }
 0x385   : > { %2179 = vst [vmem:[#allocation2 + $0x178] sm:$0xff] %v2115_v10  ;;  %v2021_v42 = vpop.f32.mrb[80].mxu0  ;;  %v2277_v10 = vadd.f32 (!%p2658_p8), %v5120_v24, %v2201_v16  ;;  %2340 = vst [vmem:[%s3897_s8] sm:$0xff] (!%p2658_p8), %v2276_v57  ;;  %v2231_v16 = vld [vmem:[#allocation2 + $0xf8] sm:$0xff] (!%p2658_p8)  ;;  %v2305_v8 = vadd.f32 (!%p2658_p8), %v5120_v24, %v2229_v58 }
 0x386   : > { %v2116_v30 = vadd.f32 %v2021_v42, %v1731_v43  ;;  %v2023_v33 = vpop.f32.mrb[81].mxu0  ;;  %v2278_v43 = vadd.f32 (!%p2658_p8), %v5116_v6, %v2202_v61  ;;  %v2208_v42 = vld [vmem:[#allocation2 + $0x40] sm:$0xff] (!%p2658_p8)  ;;  %v2307_v11 = vadd.f32 (!%p2658_p8), %v5120_v24, %v2231_v16  ;;  %v2235_v57 = vld [vmem:[#allocation2 + $0x118] sm:$0xff] (!%p2658_p8) }
 0x387   : > { %v2117_v4 = vadd.f32 %v2023_v33, %v1732_v40  ;;  %v2279_v40 = vadd.f32 (!%p2658_p8), %v5120_v24, %v2203_v15  ;;  %v2210_v33 = vld [vmem:[#allocation2 + $0x50] sm:$0xff] (!%p2658_p8)  ;;  %2341 = vst [vmem:[%s3897_s8 + $0x8] sm:$0xff] (!%p2658_p8), %v2277_v10  ;;  %v2232_v61 = vld [vmem:[#allocation2 + $0x100] sm:$0xff] (!%p2658_p8)  ;;  %v2233_v15 = vld [vmem:[#allocation2 + $0x108] sm:$0xff] (!%p2658_p8) }
 0x388   : > { %2180 = vst [vmem:[#allocation2 + $0x180] sm:$0xff] %v2116_v30  ;;  %v2209_v30 = vld [vmem:[#allocation2 + $0x48] sm:$0xff] (!%p2658_p8)  ;;  %2342 = vst [vmem:[%s3897_s8 + $0x10] sm:$0xff] (!%p2658_p8), %v2278_v43  ;;  %v2236_v10 = vld [vmem:[#allocation2 + $0x120] sm:$0xff] (!%p2658_p8) }
 0x389   : > { %2181 = vst [vmem:[#allocation2 + $0x188] sm:$0xff] %v2117_v4  ;;  %v2027_v26 = vpop.f32.mrb[82].mxu0  ;;  %v2280_v4 = vadd.f32 (!%p2658_p8), %v5116_v6, %v2204_v35  ;;  %2343 = vst [vmem:[%s3897_s8 + $0x18] sm:$0xff] (!%p2658_p8), %v2279_v40  ;;  %v2234_v35 = vld [vmem:[#allocation2 + $0x110] sm:$0xff] (!%p2658_p8)  ;;  %v2237_v43 = vld [vmem:[#allocation2 + $0x128] sm:$0xff] (!%p2658_p8)  ;;  %v2311_v40 = vadd.f32 (!%p2658_p8), %v5120_v24, %v2235_v57 }
 0x38a   : > { %v2118_v3 = vadd.f32 %v2027_v26, %v1733_v25  ;;  %v2029_v19 = vpop.f32.mrb[83].mxu0  ;;  %v2281_v25 = vadd.f32 (!%p2658_p8), %v5120_v24, %v2205_v31  ;;  %v2283_v26 = vadd.f32 (!%p2658_p8), %v5120_v24, %v2207_v60  ;;  %v2308_v31 = vadd.f32 (!%p2658_p8), %v5116_v6, %v2232_v61  ;;  %2369 = vst [vmem:[%s3897_s8 + $0xe8] sm:$0xff] (!%p2658_p8), %v2305_v8 }
 0x38b   : > { %v2119_v34 = vadd.f32 %v2029_v19, %v1734_v13  ;;  %v2282_v13 = vadd.f32 (!%p2658_p8), %v5116_v6, %v2206_v53  ;;  %v2212_v19 = vld [vmem:[#allocation2 + $0x60] sm:$0xff] (!%p2658_p8)  ;;  %2344 = vst [vmem:[%s3897_s8 + $0x20] sm:$0xff] (!%p2658_p8), %v2280_v4  ;;  %v2309_v53 = vadd.f32 (!%p2658_p8), %v5120_v24, %v2233_v15  ;;  %v2310_v60 = vadd.f32 (!%p2658_p8), %v5116_v6, %v2234_v35  ;;  %v2239_v4 = vld [vmem:[#allocation2 + $0x138] sm:$0xff] (!%p2658_p8) }
 0x38c   : > { %2182 = vst [vmem:[#allocation2 + $0x190] sm:$0xff] %v2118_v3  ;;  %v2211_v3 = vld [vmem:[#allocation2 + $0x58] sm:$0xff] (!%p2658_p8)  ;;  %2345 = vst [vmem:[%s3897_s8 + $0x28] sm:$0xff] (!%p2658_p8), %v2281_v25  ;;  %v2240_v25 = vld [vmem:[#allocation2 + $0x140] sm:$0xff] (!%p2658_p8) }
 0x38d   : > { %2183 = vst [vmem:[#allocation2 + $0x198] sm:$0xff] %v2119_v34  ;;  %v2033_v62 = vpop.f32.mrb[84].mxu0  ;;  %v2213_v34 = vld [vmem:[#allocation2 + $0x68] sm:$0xff] (!%p2658_p8)  ;;  %2346 = vst [vmem:[%s3897_s8 + $0x30] sm:$0xff] (!%p2658_p8), %v2282_v13 }
 0x38e   : > { %v2120_v29 = vadd.f32 %v2033_v62, %v1735_v28  ;;  %v2035_v50 = vpop.f32.mrb[85].mxu0  ;;  %v2284_v28 = vadd.f32 (!%p2658_p8), %v5116_v6, %v2208_v42  ;;  %v2286_v62 = vadd.f32 (!%p2658_p8), %v5116_v6, %v2210_v33  ;;  %2347 = vst [vmem:[%s3897_s8 + $0x38] sm:$0xff] (!%p2658_p8), %v2283_v26  ;;  %2371 = vst [vmem:[%s3897_s8 + $0xf8] sm:$0xff] (!%p2658_p8), %v2307_v11  ;;  %v2238_v33 = vld [vmem:[#allocation2 + $0x130] sm:$0xff] (!%p2658_p8) }
 0x38f   : > { %v2121_v37 = vadd.f32 %v2035_v50, %v1736_v48  ;;  %v2285_v48 = vadd.f32 (!%p2658_p8), %v5120_v24, %v2209_v30  ;;  %v2214_v50 = vld [vmem:[#allocation2 + $0x70] sm:$0xff] (!%p2658_p8)  ;;  %v2312_v42 = vadd.f32 (!%p2658_p8), %v5116_v6, %v2236_v10  ;;  %v2313_v30 = vadd.f32 (!%p2658_p8), %v5120_v24, %v2237_v43  ;;  %2372 = vst [vmem:[%s3897_s8 + $0x100] sm:$0xff] (!%p2658_p8), %v2308_v31 }
 0x390   : > { %2184 = vst [vmem:[#allocation2 + $0x1a0] sm:$0xff] %v2120_v29  ;;  %v2287_v29 = vadd.f32 (!%p2658_p8), %v5120_v24, %v2211_v3  ;;  %2348 = vst [vmem:[%s3897_s8 + $0x40] sm:$0xff] (!%p2658_p8), %v2284_v28  ;;  %v2314_v13 = vadd.f32 (!%p2658_p8), %v5116_v6, %v2238_v33  ;;  %v2315_v26 = vadd.f32 (!%p2658_p8), %v5120_v24, %v2239_v4  ;;  %v2243_v28 = vld [vmem:[#allocation2 + $0x158] sm:$0xff] (!%p2658_p8) }
 0x391   : > { %2185 = vst [vmem:[#allocation2 + $0x1a8] sm:$0xff] %v2121_v37  ;;  %v2039_v23 = vpop.f32.mrb[86].mxu0  ;;  %v2215_v37 = vld [vmem:[#allocation2 + $0x78] sm:$0xff] (!%p2658_p8)  ;;  %2349 = vst [vmem:[%s3897_s8 + $0x48] sm:$0xff] (!%p2658_p8), %v2285_v48  ;;  %v2316_v3 = vadd.f32 (!%p2658_p8), %v5116_v6, %v2240_v25 }
 0x392   : > { %v2122_v44 = vadd.f32 %v2039_v23, %v1737_v0  ;;  %v2041_v49 = vpop.f32.mrb[87].mxu0  ;;  %v2216_v0 = vld [vmem:[#allocation2 + $0x80] sm:$0xff] (!%p2658_p8)  ;;  %v2289_v23 = vadd.f32 (!%p2658_p8), %v5120_v24, %v2213_v34  ;;  %2350 = vst [vmem:[%s3897_s8 + $0x50] sm:$0xff] (!%p2658_p8), %v2286_v62  ;;  %2351 = vst [vmem:[%s3897_s8 + $0x58] sm:$0xff] (!%p2658_p8), %v2287_v29  ;;  %v2242_v34 = vld [vmem:[#allocation2 + $0x150] sm:$0xff] (!%p2658_p8)  ;;  %v2319_v29 = vadd.f32 (!%p2658_p8), %v5120_v24, %v2243_v28 }
 0x393   : > { %v2123_v59 = vadd.f32 %v2041_v49, %v1738_v56  ;;  %v2288_v56 = vadd.f32 (!%p2658_p8), %v5116_v6, %v2212_v19  ;;  %v2291_v49 = vadd.f32 (!%p2658_p8), %v5120_v24, %v2215_v37  ;;  %2373 = vst [vmem:[%s3897_s8 + $0x108] sm:$0xff] (!%p2658_p8), %v2309_v53  ;;  %2374 = vst [vmem:[%s3897_s8 + $0x110] sm:$0xff] (!%p2658_p8), %v2310_v60  ;;  %v2241_v19 = vld [vmem:[#allocation2 + $0x148] sm:$0xff] (!%p2658_p8) }
 0x394   : > { %2186 = vst [vmem:[#allocation2 + $0x1b0] sm:$0xff] %v2122_v44  ;;  %v2290_v44 = vadd.f32 (!%p2658_p8), %v5116_v6, %v2214_v50  ;;  %2353 = vst [vmem:[%s3897_s8 + $0x68] sm:$0xff] (!%p2658_p8), %v2289_v23  ;;  %v2317_v48 = vadd.f32 (!%p2658_p8), %v5120_v24, %v2241_v19  ;;  %v2318_v62 = vadd.f32 (!%p2658_p8), %v5116_v6, %v2242_v34  ;;  %v2244_v50 = vld [vmem:[#allocation2 + $0x160] sm:$0xff] (!%p2658_p8)  ;;  %v2245_v37 = vld [vmem:[#allocation2 + $0x168] sm:$0xff] (!%p2658_p8) }
 0x395   : > { %2187 = vst [vmem:[#allocation2 + $0x1b8] sm:$0xff] %v2123_v59  ;;  %v2045_v22 = vpop.f32.mrb[88].mxu0  ;;  %v2217_v59 = vld [vmem:[#allocation2 + $0x88] sm:$0xff] (!%p2658_p8)  ;;  %2352 = vst [vmem:[%s3897_s8 + $0x60] sm:$0xff] (!%p2658_p8), %v2288_v56  ;;  %v2320_v56 = vadd.f32 (!%p2658_p8), %v5116_v6, %v2244_v50  ;;  %v2321_v23 = vadd.f32 (!%p2658_p8), %v5120_v24, %v2245_v37 }
 0x396   : > { %v2124_v54 = vadd.f32 %v2045_v22, %v1739_v39  ;;  %v2047_v51 = vpop.f32.mrb[89].mxu0  ;;  %v2218_v39 = vld [vmem:[#allocation2 + $0x90] sm:$0xff] (!%p2658_p8)  ;;  %v2292_v22 = vadd.f32 (!%p2658_p8), %v5116_v6, %v2216_v0  ;;  %2354 = vst [vmem:[%s3897_s8 + $0x70] sm:$0xff] (!%p2658_p8), %v2290_v44  ;;  %2355 = vst [vmem:[%s3897_s8 + $0x78] sm:$0xff] (!%p2658_p8), %v2291_v49  ;;  %v2247_v49 = vld [vmem:[#allocation2 + $0x178] sm:$0xff] (!%p2658_p8) }
 0x397   : > { %v2125_v32 = vadd.f32 %v2047_v51, %v1740_v36  ;;  %v2219_v36 = vld [vmem:[#allocation2 + $0x98] sm:$0xff] (!%p2658_p8)  ;;  %v2294_v51 = vadd.f32 (!%p2658_p8), %v5116_v6, %v2218_v39  ;;  %2375 = vst [vmem:[%s3897_s8 + $0x118] sm:$0xff] (!%p2658_p8), %v2311_v40  ;;  %2376 = vst [vmem:[%s3897_s8 + $0x120] sm:$0xff] (!%p2658_p8), %v2312_v42  ;;  %v2246_v0 = vld [vmem:[#allocation2 + $0x170] sm:$0xff] (!%p2658_p8) }
 0x398   : > { %2188 = vst [vmem:[#allocation2 + $0x1c0] sm:$0xff] %v2124_v54  ;;  %v2293_v54 = vadd.f32 (!%p2658_p8), %v5120_v24, %v2217_v59  ;;  %2356 = vst [vmem:[%s3897_s8 + $0x80] sm:$0xff] (!%p2658_p8), %v2292_v22  ;;  %v2322_v44 = vadd.f32 (!%p2658_p8), %v5116_v6, %v2246_v0  ;;  %v2248_v59 = vld [vmem:[#allocation2 + $0x180] sm:$0xff] (!%p2658_p8)  ;;  %v2249_v39 = vld [vmem:[#allocation2 + $0x188] sm:$0xff] (!%p2658_p8) }
 0x399   : > { %2189 = vst [vmem:[#allocation2 + $0x1c8] sm:$0xff] %v2125_v32  ;;  %v2051_v63 = vpop.f32.mrb[90].mxu0  ;;  %v2295_v32 = vadd.f32 (!%p2658_p8), %v5120_v24, %v2219_v36  ;;  %2358 = vst [vmem:[%s3897_s8 + $0x90] sm:$0xff] (!%p2658_p8), %v2294_v51  ;;  %v2323_v36 = vadd.f32 (!%p2658_p8), %v5120_v24, %v2247_v49  ;;  %v2324_v22 = vadd.f32 (!%p2658_p8), %v5116_v6, %v2248_v59  ;;  %v2250_v51 = vld [vmem:[#allocation2 + $0x190] sm:$0xff] (!%p2658_p8) }
 0x39a   : > { %v2126_v2 = vadd.f32 %v2051_v63, %v1741_v21  ;;  %v2053_v41 = vpop.f32.mrb[91].mxu0  ;;  %v2220_v21 = vld [vmem:[#allocation2 + $0xa0] sm:$0xff] (!%p2658_p8)  ;;  %v2222_v63 = vld [vmem:[#allocation2 + $0xb0] sm:$0xff] (!%p2658_p8)  ;;  %2357 = vst [vmem:[%s3897_s8 + $0x88] sm:$0xff] (!%p2658_p8), %v2293_v54  ;;  %2377 = vst [vmem:[%s3897_s8 + $0x128] sm:$0xff] (!%p2658_p8), %v2313_v30  ;;  %v2325_v54 = vadd.f32 (!%p2658_p8), %v5120_v24, %v2249_v39 }
 0x39b   : > { %v2127_v45 = vadd.f32 %v2053_v41, %v1742_v46  ;;  %v2221_v46 = vld [vmem:[#allocation2 + $0xa8] sm:$0xff] (!%p2658_p8)  ;;  %2359 = vst [vmem:[%s3897_s8 + $0x98] sm:$0xff] (!%p2658_p8), %v2295_v32  ;;  %2378 = vst [vmem:[%s3897_s8 + $0x130] sm:$0xff] (!%p2658_p8), %v2314_v13  ;;  %v2251_v32 = vld [vmem:[#allocation2 + $0x198] sm:$0xff] (!%p2658_p8) }
 0x39c   : > { %2190 = vst [vmem:[#allocation2 + $0x1d0] sm:$0xff] %v2126_v2  ;;  %v2296_v2 = vadd.f32 (!%p2658_p8), %v5116_v6, %v2220_v21  ;;  %v2297_v41 = vadd.f32 (!%p2658_p8), %v5120_v24, %v2221_v46  ;;  %2379 = vst [vmem:[%s3897_s8 + $0x138] sm:$0xff] (!%p2658_p8), %v2315_v26  ;;  %v2252_v21 = vld [vmem:[#allocation2 + $0x1a0] sm:$0xff] (!%p2658_p8)  ;;  %v2326_v46 = vadd.f32 (!%p2658_p8), %v5116_v6, %v2250_v51 }
 0x39d   : > { %2191 = vst [vmem:[#allocation2 + $0x1d8] sm:$0xff] %v2127_v45  ;;  %v2057_v1 = vpop.f32.mrb[92].mxu0  ;;  %v2298_v45 = vadd.f32 (!%p2658_p8), %v5116_v6, %v2222_v63  ;;  %2380 = vst [vmem:[%s3897_s8 + $0x140] sm:$0xff] (!%p2658_p8), %v2316_v3  ;;  %v2327_v63 = vadd.f32 (!%p2658_p8), %v5120_v24, %v2251_v32 }
 0x39e   : > { %v2128_v47 = vadd.f32 %v2057_v1, %v1743_v9  ;;  %v2059_v38 = vpop.f32.mrb[93].mxu0  ;;  %v2223_v9 = vld [vmem:[#allocation2 + $0xb8] sm:$0xff] (!%p2658_p8)  ;;  %v2225_v1 = vld [vmem:[#allocation2 + $0xc8] sm:$0xff] (!%p2658_p8)  ;;  %2360 = vst [vmem:[%s3897_s8 + $0xa0] sm:$0xff] (!%p2658_p8), %v2296_v2  ;;  %2361 = vst [vmem:[%s3897_s8 + $0xa8] sm:$0xff] (!%p2658_p8), %v2297_v41  ;;  %v2328_v2 = vadd.f32 (!%p2658_p8), %v5116_v6, %v2252_v21 }
 0x39f   : > { %v2129_v55 = vadd.f32 %v2059_v38, %v1744_v18  ;;  %2199 = sbr.rel (%p2658_p8) target bundleno = 944 (0x3b0), region = 64  ;;  %v2224_v18 = vld [vmem:[#allocation2 + $0xc0] sm:$0xff] (!%p2658_p8)  ;;  %2362 = vst [vmem:[%s3897_s8 + $0xb0] sm:$0xff] (!%p2658_p8), %v2298_v45  ;;  %2381 = vst [vmem:[%s3897_s8 + $0x148] sm:$0xff] (!%p2658_p8), %v2317_v48  ;;  %v2253_v41 = vld [vmem:[#allocation2 + $0x1a8] sm:$0xff] (!%p2658_p8) }
 0x3a0   : > { %2192 = vst [vmem:[#allocation2 + $0x1e0] sm:$0xff] %v2128_v47  ;;  %v2299_v47 = vadd.f32 (!%p2658_p8), %v5120_v24, %v2223_v9  ;;  %v2300_v38 = vadd.f32 (!%p2658_p8), %v5116_v6, %v2224_v18  ;;  %2382 = vst [vmem:[%s3897_s8 + $0x150] sm:$0xff] (!%p2658_p8), %v2318_v62  ;;  %v2254_v45 = vld [vmem:[#allocation2 + $0x1b0] sm:$0xff] (!%p2658_p8)  ;;  %v2255_v9 = vld [vmem:[#allocation2 + $0x1b8] sm:$0xff] (!%p2658_p8)  ;;  %v2329_v18 = vadd.f32 (!%p2658_p8), %v5120_v24, %v2253_v41 }
 0x3a1   : > { %2193 = vst [vmem:[#allocation2 + $0x1e8] sm:$0xff] %v2129_v55  ;;  %v2063_v5 = vpop.f32.mrb[94].mxu0  ;;  %v2301_v55 = vadd.f32 (!%p2658_p8), %v5120_v24, %v2225_v1  ;;  %2383 = vst [vmem:[%s3897_s8 + $0x158] sm:$0xff] (!%p2658_p8), %v2319_v29  ;;  %v2330_v1 = vadd.f32 (!%p2658_p8), %v5116_v6, %v2254_v45 }
 0x3a2   : > { %v2130_v52 = vadd.f32 %v2063_v5, %v1745_v27  ;;  %v2065_v20 = vpop.f32.mrb[95].mxu0  ;;  %v2226_v27 = vld [vmem:[#allocation2 + $0xd0] sm:$0xff] (!%p2658_p8)  ;;  %v2228_v5 = vld [vmem:[#allocation2 + $0xe0] sm:$0xff] (!%p2658_p8)  ;;  %2363 = vst [vmem:[%s3897_s8 + $0xb8] sm:$0xff] (!%p2658_p8), %v2299_v47  ;;  %2364 = vst [vmem:[%s3897_s8 + $0xc0] sm:$0xff] (!%p2658_p8), %v2300_v38  ;;  %v2331_v47 = vadd.f32 (!%p2658_p8), %v5120_v24, %v2255_v9 }
 0x3a3   : > { %v2131_v12 = vadd.f32 %v2065_v20, %v1746_v7  ;;  %v2227_v7 = vld [vmem:[#allocation2 + $0xd8] sm:$0xff] (!%p2658_p8)  ;;  %2365 = vst [vmem:[%s3897_s8 + $0xc8] sm:$0xff] (!%p2658_p8), %v2301_v55  ;;  %2384 = vst [vmem:[%s3897_s8 + $0x160] sm:$0xff] (!%p2658_p8), %v2320_v56  ;;  %v2256_v38 = vld [vmem:[#allocation2 + $0x1c0] sm:$0xff] (!%p2658_p8) }
 0x3a4   : > { %2194 = vst [vmem:[#allocation2 + $0x1f0] sm:$0xff] %v2130_v52  ;;  %v2302_v52 = vadd.f32 (!%p2658_p8), %v5116_v6, %v2226_v27  ;;  %v2303_v20 = vadd.f32 (!%p2658_p8), %v5120_v24, %v2227_v7  ;;  %2385 = vst [vmem:[%s3897_s8 + $0x168] sm:$0xff] (!%p2658_p8), %v2321_v23  ;;  %v2257_v55 = vld [vmem:[#allocation2 + $0x1c8] sm:$0xff] (!%p2658_p8)  ;;  %v2258_v27 = vld [vmem:[#allocation2 + $0x1d0] sm:$0xff] (!%p2658_p8)  ;;  %v2332_v7 = vadd.f32 (!%p2658_p8), %v5116_v6, %v2256_v38 }
 0x3a5   : > { %2195 = vst [vmem:[#allocation2 + $0x1f8] sm:$0xff] %v2131_v12  ;;  %v2304_v12 = vadd.f32 (!%p2658_p8), %v5116_v6, %v2228_v5  ;;  %2386 = vst [vmem:[%s3897_s8 + $0x170] sm:$0xff] (!%p2658_p8), %v2322_v44  ;;  %v2333_v5 = vadd.f32 (!%p2658_p8), %v5120_v24, %v2257_v55 }
 0x3a6   : > { %2366 = vst [vmem:[%s3897_s8 + $0xd0] sm:$0xff] %v2302_v52  ;;  %2367 = vst [vmem:[%s3897_s8 + $0xd8] sm:$0xff] %v2303_v20  ;;  %v2334_v52 = vadd.f32 %v5116_v6, %v2258_v27  ;;  %v2259_v20 = vld [vmem:[#allocation2 + $0x1d8] sm:$0xff] }
 0x3a7   : > { %2368 = vst [vmem:[%s3897_s8 + $0xe0] sm:$0xff] %v2304_v12  ;;  %2387 = vst [vmem:[%s3897_s8 + $0x178] sm:$0xff] %v2323_v36  ;;  %v2260_v12 = vld [vmem:[#allocation2 + $0x1e0] sm:$0xff]  ;;  %v2335_v14 = vadd.f32 %v5120_v24, %v2259_v20 }
 0x3a8   : > { %2388 = vst [vmem:[%s3897_s8 + $0x180] sm:$0xff] %v2324_v22  ;;  %2389 = vst [vmem:[%s3897_s8 + $0x188] sm:$0xff] %v2325_v54  ;;  %v2261_v58 = vld [vmem:[#allocation2 + $0x1e8] sm:$0xff]  ;;  %v2336_v16 = vadd.f32 %v5116_v6, %v2260_v12 }
 0x3a9   : > { %2390 = vst [vmem:[%s3897_s8 + $0x190] sm:$0xff] %v2326_v46  ;;  %2391 = vst [vmem:[%s3897_s8 + $0x198] sm:$0xff] %v2327_v63  ;;  %v2337_v8 = vadd.f32 %v5120_v24, %v2261_v58 }
 0x3aa   : > { %2392 = vst [vmem:[%s3897_s8 + $0x1a0] sm:$0xff] %v2328_v2  ;;  %2393 = vst [vmem:[%s3897_s8 + $0x1a8] sm:$0xff] %v2329_v18 }
 0x3ab   : > { %2394 = vst [vmem:[%s3897_s8 + $0x1b0] sm:$0xff] %v2330_v1  ;;  %2395 = vst [vmem:[%s3897_s8 + $0x1b8] sm:$0xff] %v2331_v47  ;;  %v2262_v17 = vld [vmem:[#allocation2 + $0x1f0] sm:$0xff] }
 0x3ac   : > { %v2263_v11 = vld [vmem:[#allocation2 + $0x1f8] sm:$0xff]  ;;  %2396 = vst [vmem:[%s3897_s8 + $0x1c0] sm:$0xff] %v2332_v7  ;;  %2397 = vst [vmem:[%s3897_s8 + $0x1c8] sm:$0xff] %v2333_v5  ;;  %v2338_v61 = vadd.f32 %v5116_v6, %v2262_v17 }
 0x3ad   : > { %2398 = vst [vmem:[%s3897_s8 + $0x1d0] sm:$0xff] %v2334_v52  ;;  %v2339_v15 = vadd.f32 %v5120_v24, %v2263_v11  ;;  %2399 = vst [vmem:[%s3897_s8 + $0x1d8] sm:$0xff] %v2335_v14 }
 0x3ae   : > { %2400 = vst [vmem:[%s3897_s8 + $0x1e0] sm:$0xff] %v2336_v16  ;;  %2401 = vst [vmem:[%s3897_s8 + $0x1e8] sm:$0xff] %v2337_v8 }
 0x3af   : > { %2402 = vst [vmem:[%s3897_s8 + $0x1f0] sm:$0xff] %v2338_v61  ;;  %2403 = vst [vmem:[%s3897_s8 + $0x1f8] sm:$0xff] %v2339_v15 }
 0x3b0 PF: > { %s5506_s29 = sld [smem:[#allocation19_spill]]  ;;  %s5507_s7 = sld [smem:[#allocation60_spill]] }
 0x3b1   : > { %s2419_s16 = sshll.u32 %s3897_s8, 4  ;;  %s2405_s4 = scalar_lea.sflag [#allocation5], %s3871_s12  ;;  %s5257_s16 = int_to_ptr.vmem [resolvable:$true] %s2419_s16 }
 0x3b2   : > { %s3397_s17 = scalar_lea.vmem %s5257_s16, 8192  ;;  %p5508_p2 = scmp.ne.s32.totalorder %s5406_s14, 0 }
 0x3b3   : > { %p3398_p6 = scmp.ne.s32.totalorder %s5257_s16, %s3397_s17  ;;  %s3538_s24 = smov [#allocation11]  }
 0x3b4   : > { %s3401_s0 = sshll.u32 %s3538_s24, 4  ;;  %s3402_s0 = int_to_ptr.vmem [resolvable:$false] %s3401_s0 }
 0x3b5   : > { %p3399_p7 = pnand %p3398_p6, %p5508_p2  ;;  %s3403_s11 = scalar_lea.vmem %s3402_s0, 16384 }
 0x3b6   : > { %s2672_s1 = sshll.u32 %s5506_s29, 13  ;;  %p3404_p0 = scmp.lt.s32.totalorder %s5257_s16, %s3402_s0 }
 0x3b7   : > { %s5254_s9 = scalar_lea.hbm %s5507_s7, %s2672_s1  ;;  %p3400_p3 = pneg %p3399_p7 }
 0x3b8   : > { %p3405_p12 = scmp.lt.s32.totalorder %s3403_s11, %s3397_s17 }
 0x3ba   : > { %p3406_p13 = por %p3405_p12, %p3404_p0 }
 0x3bc   : > { %p3407_p11 = pnand %p3406_p13, %p3400_p3 }
 0x3be   : > { %3410 = shalt.err (!%p3407_p11)
}
 0x3bf   : > { %s3411_s6 = scalar_lea.hbm %s5254_s9, 8192  ;;  %s3415_s8 = scalar_lea.hbm %s5507_s7, 16384 }
 0x3c0   : > { %p3412_p4 = scmp.ne.s32.totalorder %s5254_s9, %s3411_s6  ;;  %p3416_p10 = scmp.lt.u32.totalorder %s5254_s9, %s5507_s7 }
 0x3c1   : > { %p3417_p1 = scmp.lt.u32.totalorder %s3415_s8, %s3411_s6  ;;  %p3419_p6 = scmp.lt.u32.totalorder %s3411_s6, %s5254_s9 }
 0x3c2   : > { %p3413_p9 = pnand %p3412_p4, %p5508_p2 }
 0x3c3   : > { %p3418_p8 = por %p3417_p1, %p3416_p10 }
 0x3c4   : > { %p3414_p5 = pneg %p3413_p9 }
 0x3c5   : > { %p3420_p7 = por %p3419_p6, %p3418_p8 }
 0x3c7   : > { %p3421_p3 = pnand %p3420_p7, %p3414_p5 }
 0x3c9   : > { %3424 = shalt.err (!%p3421_p3)
}
 0x3ca   : > { %s3539_s15 = smov 256   ;;  %s3540_s23 = smov 16  }
 0x3cb   : > { %2905 = dma.vmem_to_hbm [thread:$0]  (%p5508_p2), %s5257_s16, 8192, %s5254_s9, %s2405_s4, %s3539_s15, %s3539_s15, %s3540_s23  }
 0x3cc PF: > { %p2925_p0 = scmp.ge.s32.totalorder %s3527_s28, 2  ;;  %s2434_s13 = sand.u32 1, %s3499_s21  }
 0x3cd   : > { %p5509_p12 = scmp.ne.s32.totalorder %s5408_s5, 0  ;;  %s2435_s29 = scalar_lea.sflag [#allocation5], %s2434_s13 }
 0x3cf   : > { %p2921_p13 = pnand %p2925_p0, %p5509_p12 }
 0x3d1   : > { %3482 = dma.done.wait (!%p2921_p13), %s2435_s29, 8192  }
 0x3d2   : > { %3484 = vsyncadd (!%p2921_p13), %s2435_s29, 4294959104  ;;  %s27_s28 = sadd.s32 1, %s3527_s28   ;;  %s5510_s1 = sld [smem:[#allocation16_spill]] }
 0x3d3   : > { %p24_p11 = scmp.ge.s32.totalorder %s27_s28, 6   ;;  %s5511_s20 = sld [smem:[#allocation22_spill]] }
 0x3d4   : > { %s5512_s14 = sld [smem:[#allocation17_spill]]  ;;  %s5513_s23 = sld [smem:[#allocation24_spill]] }
 0x3d5   : > { %s5514_s25 = sld [smem:[#allocation20_spill]]  ;;  %s5515_s12 = sld [smem:[#allocation21_spill]] }
 0x3d6   : > { %s5516_s27 = sld [smem:[#allocation23_spill]]  ;;  %s5517_s18 = smov %s3491_s19 }
 0x3d7   : > { %s5519_s21 = smov %s3503_s22  ;;  %s5521_s24 = smov %s3519_s26 }
 0x3d8   : > { %s5518_s19 = smov %s5510_s1  ;;  %26 = sbr.rel (!%p24_p11) target bundleno = 18 (0x12), region = 130 }
 0x3da   : > { %s5520_s22 = smov %s5512_s14 }
 0x3db   : > { %s5522_s26 = smov %s5515_s12 }
 0x3df   :  { %2440 = vsyncpa [#allocation4], 1 }
 0x3e0   :  { %2442 = vsyncpa [#allocation4 + $0x1], 1 }
 0x3e1   :  { %2443 = vsyncpa [#allocation7], 1 }
 0x3e2   :  { %2445 = vsyncpa [#allocation7 + $0x1], 1 }
 0x3e3   :  { %2446 = vsyncpa [#allocation10], 1 }
 0x3e4   :  { %2448 = vsyncpa [#allocation10 + $0x1], 1 }
 0x3e5   :  { %2449 = vsyncpa [#allocation5], 1 }
 0x3e6   :  { %2451 = vsyncpa [#allocation5 + $0x1], 1 }

</bundles_post_ra>
